<compile_context>
chip_gen: v7x
topology: tpu7x:2x2x1
jax: 0.10.0
libtpu: 0.0.40
codegen_flags: <defaults>
</compile_context>

<pallas_src>
import functools

import jax
import jax.numpy as jnp
import numpy as np
from jax.experimental import pallas as pl
from jax.experimental.pallas import tpu as pltpu

EPS = 1e-5          # PyTorch InstanceNorm2d default eps
NHIDDEN = 128
_VMEM_LIMIT = 48 * 1024 * 1024   # explicit scoped-VMEM limit; headroom under v7x 64 MiB


# ---------------------------------------------------------------------------
# Kernel 1: mlp_shared = Conv2d(label_nc, 128, 3, pad=1) + ReLU
#   im2col patches of the (small) resized segmap are built in plain JAX;
#   the matmul + bias + ReLU run on the MXU in bf16 with f32 accumulation.
# ---------------------------------------------------------------------------
def seg_conv_relu_kernel(p_ref, w_ref, b_ref, o_ref):
    # p_ref: (TRW, K) bf16, w_ref: (K, NH) bf16, b_ref: (1, NH) f32, o_ref: (TRW, NH) bf16
    acc = jnp.dot(p_ref[...], w_ref[...], preferred_element_type=jnp.float32)
    acc = acc + b_ref[...]
    o_ref[...] = jnp.maximum(acc, 0.0).astype(o_ref.dtype)


def seg_conv_relu_pallas(patches, w_bf16, b_f32, *, rows, width):
    N, HW, K = patches.shape
    NH = w_bf16.shape[-1]
    trw = rows * width
    T = HW // trw
    cost = pl.CostEstimate(
        flops=2 * N * HW * K * NH,
        transcendentals=0,
        bytes_accessed=int(patches.size) * 2 + N * HW * NH * 2 + int(w_bf16.size) * 2,
    )
    return pl.pallas_call(
        seg_conv_relu_kernel,
        out_shape=jax.ShapeDtypeStruct((N, HW, NH), jnp.bfloat16),
        grid=(N, T),
        in_specs=[
            pl.BlockSpec((None, trw, K), lambda n, t: (n, t, 0)),
            pl.BlockSpec((K, NH), lambda n, t: (0, 0)),
            pl.BlockSpec((1, NH), lambda n, t: (0, 0)),
        ],
        out_specs=pl.BlockSpec((None, trw, NH), lambda n, t: (n, t, 0)),
        compiler_params=pltpu.CompilerParams(
            dimension_semantics=("parallel", "parallel"),
            vmem_limit_bytes=_VMEM_LIMIT),
        cost_estimate=cost,
    )(patches, w_bf16, b_f32)


# ---------------------------------------------------------------------------
# Kernel 2: per-instance, per-channel mean / rsqrt(var + eps)
#   Tiled reduction over the spatial axis (P3 accumulator pattern), so the
#   fused modulation kernel can tile HW without breaking InstanceNorm semantics.
# ---------------------------------------------------------------------------
def instance_stats_kernel(x_ref, o_ref, sum_ref, sq_ref, *, inv_hw):
    @pl.when(pl.program_id(1) == 0)
    def _():
        sum_ref[...] = jnp.zeros_like(sum_ref)
        sq_ref[...] = jnp.zeros_like(sq_ref)

    x = x_ref[...].astype(jnp.float32)                       # (TRW, C)
    sum_ref[...] += jnp.sum(x, axis=0, keepdims=True)
    sq_ref[...] += jnp.sum(x * x, axis=0, keepdims=True)

    @pl.when(pl.program_id(1) == pl.num_programs(1) - 1)
    def _():
        mean = sum_ref[...] * inv_hw                          # (1, C)
        var = sq_ref[...] * inv_hw - mean * mean              # biased var
        rstd = jax.lax.rsqrt(var + EPS)
        o_ref[...] = jnp.concatenate([mean, rstd], axis=0)    # (2, C)


def instance_stats_pallas(x_flat, *, rows, width):
    N, HW, C = x_flat.shape
    trw = rows * width
    T = HW // trw
    kernel = functools.partial(instance_stats_kernel, inv_hw=1.0 / HW)
    return pl.pallas_call(
        kernel,
        out_shape=jax.ShapeDtypeStruct((N, 2, C), jnp.float32),
        grid=(N, T),
        in_specs=[pl.BlockSpec((None, trw, C), lambda n, t: (n, t, 0))],
        out_specs=pl.BlockSpec((None, 2, C), lambda n, t: (n, 0, 0)),
        scratch_shapes=[pltpu.VMEM((1, C), jnp.float32),
                        pltpu.VMEM((1, C), jnp.float32)],
        compiler_params=pltpu.CompilerParams(
            dimension_semantics=("parallel", "arbitrary"),
            vmem_limit_bytes=_VMEM_LIMIT),
    )(x_flat)


# ---------------------------------------------------------------------------
# Kernel 3: fused gamma/beta 3x3 conv + InstanceNorm apply + modulation
#   actv arrives as a (TR+2, W+2, 128) bf16 halo tile; the two 3x3 convs are a
#   single packed weight (9*128, 2C) applied as 9 shifted K=128 MXU passes.
# ---------------------------------------------------------------------------
def spade_fuse_kernel(x_ref, stats_ref, actv_ref, wgb_ref, bgb_ref, o_ref, acc_ref,
                      *, rows, width, nh, c):
    # x_ref:    (TRW, C)  f32        stats_ref: (2, C) f32 [mean; rsqrt]
    # actv_ref: (TR+2, W+2, NH) bf16 (zero-padded halo of the shared activation)
    # wgb_ref:  (9*NH, 2C) bf16      bgb_ref:  (1, 2C) f32
    # o_ref:    (TRW, C)             acc_ref:  (TRW, 2C) f32 scratch
    acc_ref[...] = jnp.zeros_like(acc_ref)
    for dy in range(3):
        for dx in range(3):
            tap = dy * 3 + dx
            win = actv_ref[dy:dy + rows, dx:dx + width, :].reshape(rows * width, nh)
            w_tap = wgb_ref[tap * nh:(tap + 1) * nh, :]
            acc_ref[...] += jnp.dot(win, w_tap, preferred_element_type=jnp.float32)

    gb = acc_ref[...] + bgb_ref[...]          # (TRW, 2C) f32
    gamma = gb[:, :c]
    beta = gb[:, c:]

    x = x_ref[...].astype(jnp.float32)        # (TRW, C) — keep VPU math in f32
    mean = stats_ref[0:1, :]
    rstd = stats_ref[1:2, :]
    normalized = (x - mean) * rstd
    o_ref[...] = (normalized * (1.0 + gamma) + beta).astype(o_ref.dtype)


def spade_fuse_pallas(x_flat, stats, actv_tiles, wgb_bf16, bgb_f32, *, rows, width):
    N, HW, C = x_flat.shape
    trw = rows * width
    T = HW // trw
    NT, trp2, wp2, NH = actv_tiles.shape
    kernel = functools.partial(spade_fuse_kernel, rows=rows, width=width, nh=NH, c=C)
    cost = pl.CostEstimate(
        flops=2 * N * HW * 9 * NH * 2 * C + 6 * N * HW * C,
        transcendentals=0,
        bytes_accessed=int(x_flat.size) * 4 + int(actv_tiles.size) * 2
        + int(wgb_bf16.size) * 2 + N * HW * C * 4,
    )
    return pl.pallas_call(
        kernel,
        out_shape=jax.ShapeDtypeStruct((N, HW, C), jnp.float32),
        grid=(N, T),
        in_specs=[
            pl.BlockSpec((None, trw, C), lambda n, t: (n, t, 0)),
            pl.BlockSpec((None, 2, C), lambda n, t: (n, 0, 0)),
            pl.BlockSpec((None, trp2, wp2, NH), lambda n, t: (n * T + t, 0, 0, 0)),
            pl.BlockSpec((9 * NH, 2 * C), lambda n, t: (0, 0)),
            pl.BlockSpec((1, 2 * C), lambda n, t: (0, 0)),
        ],
        out_specs=pl.BlockSpec((None, trw, C), lambda n, t: (n, t, 0)),
        scratch_shapes=[pltpu.VMEM((trw, 2 * C), jnp.float32)],
        compiler_params=pltpu.CompilerParams(
            dimension_semantics=("parallel", "parallel"),
            vmem_limit_bytes=_VMEM_LIMIT),
        cost_estimate=cost,
    )(x_flat, stats, actv_tiles, wgb_bf16, bgb_f32)


# ---------------------------------------------------------------------------
# Plain-JAX glue: nearest resize, im2col (segmap only), tile sizing, params.
# ---------------------------------------------------------------------------
def nearest_resize_nhwc(seg, out_h, out_w):
    # Matches torch F.interpolate(mode='nearest'): src = floor(dst * in/out)
    N, Hin, Win, C = seg.shape
    rows = (jnp.arange(out_h) * Hin) // out_h
    cols = (jnp.arange(out_w) * Win) // out_w
    return seg[:, rows][:, :, cols]


def im2col_3x3(x_nhwc):
    N, H, W, C = x_nhwc.shape
    xp = jnp.pad(x_nhwc, ((0, 0), (1, 1), (1, 1), (0, 0)))
    cols = [xp[:, dy:dy + H, dx:dx + W, :] for dy in range(3) for dx in range(3)]
    # ordering (dy, dx, cin) matches weight reshape (3,3,Cin,Cout) -> (9*Cin,Cout)
    return jnp.concatenate(cols, axis=-1).reshape(N, H * W, 9 * C)


def choose_row_tile(H, W, nh, c, max_rows=2048, vmem_budget=40 * 1024 * 1024):
    """Largest row-tile TR dividing H s.t. the fused kernel's tiles fit VMEM."""
    best = 1
    for tr in range(1, H + 1):
        if H % tr:
            continue
        trw = tr * W
        if trw % 8 != 0 and trw != H * W:   # (8,128) block constraint on 2nd-minor dim
            continue
        if trw > max_rows:
            continue
        est = 2 * (trw * c * 4                      # x tile (double-buffered)
                   + (tr + 2) * (W + 2) * nh * 2    # bf16 actv halo tile
                   + trw * c * 4)                   # output tile
        est += trw * 2 * c * 4                      # f32 accumulator scratch
        est += 9 * nh * 2 * c * 2 + 2 * c * 4       # packed weights + bias
        if est <= vmem_budget:
            best = tr
    return best


def init_params(key, norm_nc, label_nc):
    ks = jax.random.split(key, 6)

    def conv_init(kw, kb, cin, cout):
        fan_in = cin * 9
        w = jax.random.normal(kw, (3, 3, cin, cout), jnp.float32) / np.sqrt(fan_in)
        b = jax.random.normal(kb, (1, cout), jnp.float32) * 0.01
        return w.reshape(9 * cin, cout), b

    ws, bs = conv_init(ks[0], ks[1], label_nc, NHIDDEN)
    wg, bg = conv_init(ks[2], ks[3], NHIDDEN, norm_nc)
    wb, bb = conv_init(ks[4], ks[5], NHIDDEN, norm_nc)
    return dict(ws=ws, bs=bs, wg=wg, bg=bg, wb=wb, bb=bb)


def spade_forward(params, x_nchw, segmap_nchw, *, max_rows=2048):
    N, C, H, W = x_nchw.shape
    x_nhwc = jnp.transpose(x_nchw, (0, 2, 3, 1))
    seg_nhwc = jnp.transpose(segmap_nchw, (0, 2, 3, 1))

    tr = choose_row_tile(H, W, NHIDDEN, C, max_rows=max_rows)
    T = H // tr

    # F.interpolate(segmap, size=x.size()[2:], mode='nearest')
    seg_resized = nearest_resize_nhwc(seg_nhwc, H, W)

    # mlp_shared: 3x3 conv + ReLU (bf16 MXU operands, bf16 activation output).
    seg_patches = im2col_3x3(seg_resized).astype(jnp.bfloat16)
    ws_bf = params["ws"].astype(jnp.bfloat16)
    actv_flat = seg_conv_relu_pallas(seg_patches, ws_bf, params["bs"], rows=tr, width=W)

    # InstanceNorm statistics (tiled reduction kernel) — hoisted out of the tiled
    # modulation kernel so normalization stays per-instance, not per-tile.
    x_flat = x_nhwc.reshape(N, H * W, C)
    stats = instance_stats_pallas(x_flat, rows=tr, width=W)

    # Overlapping (1-row / 1-col zero-padded halo) bf16 tiles of actv; the 9x
    # im2col expansion of actv is never materialized in HBM.
    actv_nhwc = actv_flat.reshape(N, H, W, NHIDDEN)
    actv_padded = jnp.pad(actv_nhwc, ((0, 0), (1, 1), (1, 1), (0, 0)))
    tiles = [actv_padded[:, t * tr: t * tr + tr + 2] for t in range(T)]
    actv_tiles = jnp.stack(tiles, axis=1).reshape(N * T, tr + 2, W + 2, NHIDDEN)

    # Packed gamma|beta conv weights: one matmul with 2C output columns.
    wgb = jnp.concatenate([params["wg"], params["wb"]], axis=-1).astype(jnp.bfloat16)
    bgb = jnp.concatenate([params["bg"], params["bb"]], axis=-1)

    out_flat = spade_fuse_pallas(x_flat, stats, actv_tiles, wgb, bgb, rows=tr, width=W)
    return jnp.transpose(out_flat.reshape(N, H, W, C), (0, 3, 1, 2))  # back to NCHW


# ---------------------------------------------------------------------------
# Pure-JAX f32 reference for a sanity check
# ---------------------------------------------------------------------------
def spade_reference(params, x_nchw, segmap_nchw):
    N, C, H, W = x_nchw.shape
    x_nhwc = jnp.transpose(x_nchw, (0, 2, 3, 1))
    seg_nhwc = jnp.transpose(segmap_nchw, (0, 2, 3, 1))
    seg_resized = nearest_resize_nhwc(seg_nhwc, H, W)

    mean = jnp.mean(x_nhwc, axis=(1, 2), keepdims=True)
    var = jnp.mean(jnp.square(x_nhwc - mean), axis=(1, 2), keepdims=True)
    normalized = (x_nhwc - mean) / jnp.sqrt(var + EPS)

    def conv(inp, w2d, b2d):
        n = inp.shape[0]
        p = im2col_3x3(inp)
        out = p @ w2d + b2d
        return out.reshape(n, H, W, w2d.shape[-1])

    actv = jax.nn.relu(conv(seg_resized, params["ws"], params["bs"]))
    gamma = conv(actv, params["wg"], params["bg"])
    beta = conv(actv, params["wb"], params["bb"])
    out = normalized * (1.0 + gamma) + beta
    return jnp.transpose(out, (0, 3, 1, 2))


if __name__ == "__main__":
    norm_nc = 4      # channels of x
    label_nc = 3     # channels of segmap
    N, H, W = 2, 16, 16
    seg_h, seg_w = 8, 8  # segmap at a different resolution, nearest-upsampled

    key = jax.random.PRNGKey(0)
    k_x, k_seg, k_par = jax.random.split(key, 3)
    x = jax.random.normal(k_x, (N, norm_nc, H, W), jnp.float32)
    segmap = jax.random.normal(k_seg, (N, label_nc, seg_h, seg_w), jnp.float32)
    params = init_params(k_par, norm_nc, label_nc)

    # max_rows=128 -> TR=8, T=2 at this toy size, exercising the (N, T) tiled grid
    # and the multi-step stats reduction.  Production sizes use the default cap.
    fwd = jax.jit(functools.partial(spade_forward, max_rows=128))
    out = jax.block_until_ready(fwd(params, x, segmap))

    ref = spade_reference(params, x, segmap)
    # bf16 MXU operands (f32 accumulation) vs an all-f32 reference.
    np.testing.assert_allclose(np.asarray(out), np.asarray(ref), atol=3e-2, rtol=3e-2)

    assert out.shape == (N, norm_nc, H, W)
    print("KERNEL_OK")
</pallas_src>

<mosaic_0001>
module attributes {stable_mosaic.version = 11 : i64} {
  func.func @seg_conv_relu_kernel(%arg0: i32, %arg1: i32, %arg2: memref<1x128x27xbf16, #tpu.memory_space<vmem>>, %arg3: memref<27x128xbf16, #tpu.memory_space<vmem>>, %arg4: memref<1x128xf32, #tpu.memory_space<vmem>>, %arg5: memref<1x128x128xbf16, #tpu.memory_space<vmem>>) attributes {dimension_semantics = [#tpu.dimension_semantics<parallel>, #tpu.dimension_semantics<parallel>], iteration_bounds = array<i64: 2, 2>, scalar_prefetch = 0 : i64, scratch_operands = 0 : i64, tpu.core_type = #tpu.core_type<tc>, window_params = [{transform_indices = @transform_0, window_bounds = array<i64: 1, 128, 27>}, {pipeline_mode = #tpu.pipeline_mode<synchronous>, transform_indices = @transform_1, window_bounds = array<i64: 27, 128>}, {pipeline_mode = #tpu.pipeline_mode<synchronous>, transform_indices = @transform_2, window_bounds = array<i64: 1, 128>}, {transform_indices = @transform_3, window_bounds = array<i64: 1, 128, 128>}]} {
    %c0 = arith.constant 0 : index
    %c0_0 = arith.constant 0 : index
    %c0_1 = arith.constant 0 : index
    %0 = vector.load %arg2[%c0, %c0_0, %c0_1] : memref<1x128x27xbf16, #tpu.memory_space<vmem>>, vector<1x128x27xbf16>
    %1 = vector.shape_cast %0 : vector<1x128x27xbf16> to vector<128x27xbf16>
    %c0_2 = arith.constant 0 : index
    %c0_3 = arith.constant 0 : index
    %2 = vector.load %arg3[%c0_2, %c0_3] : memref<27x128xbf16, #tpu.memory_space<vmem>>, vector<27x128xbf16>
    %cst = arith.constant dense<0.000000e+00> : vector<128x128xf32>
    %3 = tpu.matmul %1, %2, %cst {dimension_numbers = #tpu.dot_dimension_numbers<[1], [0], [0], [1], [0, 0, 1, 1], [], []>} : vector<128x27xbf16>, vector<27x128xbf16>, vector<128x128xf32> -> vector<128x128xf32>
    %c0_4 = arith.constant 0 : index
    %c0_5 = arith.constant 0 : index
    %4 = vector.load %arg4[%c0_4, %c0_5] : memref<1x128xf32, #tpu.memory_space<vmem>>, vector<1x128xf32>
    %5 = vector.broadcast %4 : vector<1x128xf32> to vector<128x128xf32>
    %6 = arith.addf %3, %5 : vector<128x128xf32>
    %cst_6 = arith.constant 0.000000e+00 : f32
    %7 = vector.broadcast %cst_6 : f32 to vector<128x128xf32>
    %8 = arith.maximumf %6, %7 : vector<128x128xf32>
    %9 = arith.truncf %8 : vector<128x128xf32> to vector<128x128xbf16>
    %c0_7 = arith.constant 0 : index
    %c0_8 = arith.constant 0 : index
    %c0_9 = arith.constant 0 : index
    %10 = vector.load %arg5[%c0_7, %c0_8, %c0_9] : memref<1x128x128xbf16, #tpu.memory_space<vmem>>, vector<1x128x128xbf16>
    %11 = vector.shape_cast %10 : vector<1x128x128xbf16> to vector<128x128xbf16>
    %12 = vector.shape_cast %9 : vector<128x128xbf16> to vector<1x128x128xbf16>
    tpu.vector_store %arg5[%c0_7, %c0_8, %c0_9], %12 {strides = array<i32>} : memref<1x128x128xbf16, #tpu.memory_space<vmem>>, vector<1x128x128xbf16>,
    return
  }
  func.func @transform_0(%arg0: i32, %arg1: i32) -> (i32, i32, i32) {
    %c0_i32 = arith.constant 0 : i32
    %c0_i32_0 = arith.constant 0 : i32
    return %arg0, %arg1, %c0_i32 : i32, i32, i32
  }
  func.func @transform_1(%arg0: i32, %arg1: i32) -> (i32, i32) {
    %c0_i32 = arith.constant 0 : i32
    %c0_i32_0 = arith.constant 0 : i32
    %c0_i32_1 = arith.constant 0 : i32
    return %c0_i32, %c0_i32_0 : i32, i32
  }
  func.func @transform_2(%arg0: i32, %arg1: i32) -> (i32, i32) {
    %c0_i32 = arith.constant 0 : i32
    %c0_i32_0 = arith.constant 0 : i32
    %c0_i32_1 = arith.constant 0 : i32
    return %c0_i32, %c0_i32_0 : i32, i32
  }
  func.func @transform_3(%arg0: i32, %arg1: i32) -> (i32, i32, i32) {
    %c0_i32 = arith.constant 0 : i32
    %c0_i32_0 = arith.constant 0 : i32
    return %arg0, %arg1, %c0_i32 : i32, i32, i32
  }
}

module attributes {stable_mosaic.version = 11 : i64} {
  func.func @instance_stats_kernel(%arg0: i32, %arg1: i32, %arg2: memref<1x128x4xf32, #tpu.memory_space<vmem>>, %arg3: memref<1x2x4xf32, #tpu.memory_space<vmem>>, %arg4: memref<1x4xf32, #tpu.memory_space<vmem>>, %arg5: memref<1x4xf32, #tpu.memory_space<vmem>>) attributes {dimension_semantics = [#tpu.dimension_semantics<parallel>, #tpu.dimension_semantics<arbitrary>], iteration_bounds = array<i64: 2, 2>, scalar_prefetch = 0 : i64, scratch_operands = 2 : i64, tpu.core_type = #tpu.core_type<tc>, window_params = [{transform_indices = @transform_0, window_bounds = array<i64: 1, 128, 4>}, {transform_indices = @transform_1, window_bounds = array<i64: 1, 2, 4>}]} {
    %c0_i32 = arith.constant 0 : i32
    %0 = arith.cmpi eq, %arg1, %c0_i32 : i32
    %1 = arith.extui %0 : i1 to i32
    %c0_i32_0 = arith.constant 0 : i32
    %2 = arith.cmpi ne, %1, %c0_i32_0 : i32
    scf.if %2 {
      %cst_13 = arith.constant 0.000000e+00 : f32
      %19 = vector.broadcast %cst_13 : f32 to vector<1x4xf32>
      %c0_14 = arith.constant 0 : index
      %c0_15 = arith.constant 0 : index
      %20 = vector.load %arg4[%c0_14, %c0_15] : memref<1x4xf32, #tpu.memory_space<vmem>>, vector<1x4xf32>
      tpu.vector_store %arg4[%c0_14, %c0_15], %19 {strides = array<i32>} : memref<1x4xf32, #tpu.memory_space<vmem>>, vector<1x4xf32>,
      %cst_16 = arith.constant 0.000000e+00 : f32
      %21 = vector.broadcast %cst_16 : f32 to vector<1x4xf32>
      %c0_17 = arith.constant 0 : index
      %c0_18 = arith.constant 0 : index
      %22 = vector.load %arg5[%c0_17, %c0_18] : memref<1x4xf32, #tpu.memory_space<vmem>>, vector<1x4xf32>
      tpu.vector_store %arg5[%c0_17, %c0_18], %21 {strides = array<i32>} : memref<1x4xf32, #tpu.memory_space<vmem>>, vector<1x4xf32>,
    } else {
    }
    %c0 = arith.constant 0 : index
    %c0_1 = arith.constant 0 : index
    %c0_2 = arith.constant 0 : index
    %3 = vector.load %arg2[%c0, %c0_1, %c0_2] : memref<1x128x4xf32, #tpu.memory_space<vmem>>, vector<1x128x4xf32>
    %4 = vector.shape_cast %3 : vector<1x128x4xf32> to vector<128x4xf32>
    %c0_3 = arith.constant 0 : index
    %c0_4 = arith.constant 0 : index
    %5 = vector.load %arg4[%c0_3, %c0_4] : memref<1x4xf32, #tpu.memory_space<vmem>>, vector<1x4xf32>
    %cst = arith.constant dense<0.000000e+00> : vector<4xf32>
    %6 = vector.multi_reduction <add>, %4, %cst [0] : vector<128x4xf32> to vector<4xf32>
    %7 = vector.shape_cast %6 : vector<4xf32> to vector<1x4xf32>
    %8 = arith.addf %5, %7 : vector<1x4xf32>
    %c0_5 = arith.constant 0 : index
    %c0_6 = arith.constant 0 : index
    %9 = vector.load %arg4[%c0_5, %c0_6] : memref<1x4xf32, #tpu.memory_space<vmem>>, vector<1x4xf32>
    tpu.vector_store %arg4[%c0_5, %c0_6], %8 {strides = array<i32>} : memref<1x4xf32, #tpu.memory_space<vmem>>, vector<1x4xf32>,
    %c0_7 = arith.constant 0 : index
    %c0_8 = arith.constant 0 : index
    %10 = vector.load %arg5[%c0_7, %c0_8] : memref<1x4xf32, #tpu.memory_space<vmem>>, vector<1x4xf32>
    %11 = arith.mulf %4, %4 : vector<128x4xf32>
    %cst_9 = arith.constant dense<0.000000e+00> : vector<4xf32>
    %12 = vector.multi_reduction <add>, %11, %cst_9 [0] : vector<128x4xf32> to vector<4xf32>
    %13 = vector.shape_cast %12 : vector<4xf32> to vector<1x4xf32>
    %14 = arith.addf %10, %13 : vector<1x4xf32>
    %c0_10 = arith.constant 0 : index
    %c0_11 = arith.constant 0 : index
    %15 = vector.load %arg5[%c0_10, %c0_11] : memref<1x4xf32, #tpu.memory_space<vmem>>, vector<1x4xf32>
    tpu.vector_store %arg5[%c0_10, %c0_11], %14 {strides = array<i32>} : memref<1x4xf32, #tpu.memory_space<vmem>>, vector<1x4xf32>,
    %c1_i32 = arith.constant 1 : i32
    %16 = arith.cmpi eq, %arg1, %c1_i32 : i32
    %17 = arith.extui %16 : i1 to i32
    %c0_i32_12 = arith.constant 0 : i32
    %18 = arith.cmpi ne, %17, %c0_i32_12 : i32
    scf.if %18 {
      %c0_13 = arith.constant 0 : index
      %c0_14 = arith.constant 0 : index
      %19 = vector.load %arg4[%c0_13, %c0_14] : memref<1x4xf32, #tpu.memory_space<vmem>>, vector<1x4xf32>
      %cst_15 = arith.constant 3.906250e-03 : f32
      %20 = vector.broadcast %cst_15 : f32 to vector<1x4xf32>
      %21 = arith.mulf %19, %20 : vector<1x4xf32>
      %c0_16 = arith.constant 0 : index
      %c0_17 = arith.constant 0 : index
      %22 = vector.load %arg5[%c0_16, %c0_17] : memref<1x4xf32, #tpu.memory_space<vmem>>, vector<1x4xf32>
      %cst_18 = arith.constant 3.906250e-03 : f32
      %23 = vector.broadcast %cst_18 : f32 to vector<1x4xf32>
      %24 = arith.mulf %22, %23 : vector<1x4xf32>
      %25 = arith.mulf %21, %21 : vector<1x4xf32>
      %26 = arith.subf %24, %25 : vector<1x4xf32>
      %cst_19 = arith.constant 9.99999974E-6 : f32
      %27 = vector.broadcast %cst_19 : f32 to vector<1x4xf32>
      %28 = arith.addf %26, %27 : vector<1x4xf32>
      %29 = math.rsqrt %28 : vector<1x4xf32>
      %30 = tpu.concatenate %21, %29 in 0 : vector<1x4xf32>, vector<1x4xf32> -> vector<2x4xf32>
      %c0_20 = arith.constant 0 : index
      %c0_21 = arith.constant 0 : index
      %c0_22 = arith.constant 0 : index
      %31 = vector.load %arg3[%c0_20, %c0_21, %c0_22] : memref<1x2x4xf32, #tpu.memory_space<vmem>>, vector<1x2x4xf32>
      %32 = vector.shape_cast %31 : vector<1x2x4xf32> to vector<2x4xf32>
      %33 = vector.shape_cast %30 : vector<2x4xf32> to vector<1x2x4xf32>
      tpu.vector_store %arg3[%c0_20, %c0_21, %c0_22], %33 {strides = array<i32>} : memref<1x2x4xf32, #tpu.memory_space<vmem>>, vector<1x2x4xf32>,
    } else {
    }
    return
  }
  func.func @transform_0(%arg0: i32, %arg1: i32) -> (i32, i32, i32) {
    %c0_i32 = arith.constant 0 : i32
    %c0_i32_0 = arith.constant 0 : i32
    return %arg0, %arg1, %c0_i32 : i32, i32, i32
  }
  func.func @transform_1(%arg0: i32, %arg1: i32) -> (i32, i32, i32) {
    %c0_i32 = arith.constant 0 : i32
    %c0_i32_0 = arith.constant 0 : i32
    %c0_i32_1 = arith.constant 0 : i32
    return %arg0, %c0_i32, %c0_i32_0 : i32, i32, i32
  }
}

module attributes {stable_mosaic.version = 11 : i64} {
  func.func @spade_fuse_kernel(%arg0: i32, %arg1: i32, %arg2: memref<1x128x4xf32, #tpu.memory_space<vmem>>, %arg3: memref<1x2x4xf32, #tpu.memory_space<vmem>>, %arg4: memref<1x10x18x128xbf16, #tpu.memory_space<vmem>>, %arg5: memref<1152x8xbf16, #tpu.memory_space<vmem>>, %arg6: memref<1x8xf32, #tpu.memory_space<vmem>>, %arg7: memref<1x128x4xf32, #tpu.memory_space<vmem>>, %arg8: memref<128x8xf32, #tpu.memory_space<vmem>>) attributes {dimension_semantics = [#tpu.dimension_semantics<parallel>, #tpu.dimension_semantics<parallel>], iteration_bounds = array<i64: 2, 2>, scalar_prefetch = 0 : i64, scratch_operands = 1 : i64, tpu.core_type = #tpu.core_type<tc>, window_params = [{transform_indices = @transform_0, window_bounds = array<i64: 1, 128, 4>}, {transform_indices = @transform_1, window_bounds = array<i64: 1, 2, 4>}, {transform_indices = @transform_2, window_bounds = array<i64: 1, 10, 18, 128>}, {pipeline_mode = #tpu.pipeline_mode<synchronous>, transform_indices = @transform_3, window_bounds = array<i64: 1152, 8>}, {pipeline_mode = #tpu.pipeline_mode<synchronous>, transform_indices = @transform_4, window_bounds = array<i64: 1, 8>}, {transform_indices = @transform_5, window_bounds = array<i64: 1, 128, 4>}]} {
    %cst = arith.constant 0.000000e+00 : f32
    %0 = vector.broadcast %cst : f32 to vector<128x8xf32>
    %c0 = arith.constant 0 : index
    %c0_0 = arith.constant 0 : index
    %1 = vector.load %arg8[%c0, %c0_0] : memref<128x8xf32, #tpu.memory_space<vmem>>, vector<128x8xf32>
    tpu.vector_store %arg8[%c0, %c0_0], %0 {strides = array<i32>} : memref<128x8xf32, #tpu.memory_space<vmem>>, vector<128x8xf32>,
    %c0_1 = arith.constant 0 : index
    %c0_2 = arith.constant 0 : index
    %c0_3 = arith.constant 0 : index
    %c0_4 = arith.constant 0 : index
    %2 = vector.load %arg4[%c0_1, %c0_2, %c0_3, %c0_4] : memref<1x10x18x128xbf16, #tpu.memory_space<vmem>>, vector<1x8x16x128xbf16>
    %3 = vector.shape_cast %2 : vector<1x8x16x128xbf16> to vector<8x16x128xbf16>
    %4 = vector.shape_cast %3 : vector<8x16x128xbf16> to vector<128x128xbf16>
    %c0_5 = arith.constant 0 : index
    %c0_6 = arith.constant 0 : index
    %5 = vector.load %arg5[%c0_5, %c0_6] : memref<1152x8xbf16, #tpu.memory_space<vmem>>, vector<128x8xbf16>
    %c0_7 = arith.constant 0 : index
    %c0_8 = arith.constant 0 : index
    %6 = vector.load %arg8[%c0_7, %c0_8] : memref<128x8xf32, #tpu.memory_space<vmem>>, vector<128x8xf32>
    %cst_9 = arith.constant dense<0.000000e+00> : vector<128x8xf32>
    %7 = tpu.matmul %4, %5, %cst_9 {dimension_numbers = #tpu.dot_dimension_numbers<[1], [0], [0], [1], [0, 0, 1, 1], [], []>} : vector<128x128xbf16>, vector<128x8xbf16>, vector<128x8xf32> -> vector<128x8xf32>
    %8 = arith.addf %6, %7 : vector<128x8xf32>
    %c0_10 = arith.constant 0 : index
    %c0_11 = arith.constant 0 : index
    %9 = vector.load %arg8[%c0_10, %c0_11] : memref<128x8xf32, #tpu.memory_space<vmem>>, vector<128x8xf32>
    tpu.vector_store %arg8[%c0_10, %c0_11], %8 {strides = array<i32>} : memref<128x8xf32, #tpu.memory_space<vmem>>, vector<128x8xf32>,
    %c0_12 = arith.constant 0 : index
    %c0_13 = arith.constant 0 : index
    %c1 = arith.constant 1 : index
    %c0_14 = arith.constant 0 : index
    %10 = vector.load %arg4[%c0_12, %c0_13, %c1, %c0_14] : memref<1x10x18x128xbf16, #tpu.memory_space<vmem>>, vector<1x8x16x128xbf16>
    %11 = vector.shape_cast %10 : vector<1x8x16x128xbf16> to vector<8x16x128xbf16>
    %12 = vector.shape_cast %11 : vector<8x16x128xbf16> to vector<128x128xbf16>
    %c128 = arith.constant 128 : index
    %c0_15 = arith.constant 0 : index
    %13 = vector.load %arg5[%c128, %c0_15] : memref<1152x8xbf16, #tpu.memory_space<vmem>>, vector<128x8xbf16>
    %c0_16 = arith.constant 0 : index
    %c0_17 = arith.constant 0 : index
    %14 = vector.load %arg8[%c0_16, %c0_17] : memref<128x8xf32, #tpu.memory_space<vmem>>, vector<128x8xf32>
    %cst_18 = arith.constant dense<0.000000e+00> : vector<128x8xf32>
    %15 = tpu.matmul %12, %13, %cst_18 {dimension_numbers = #tpu.dot_dimension_numbers<[1], [0], [0], [1], [0, 0, 1, 1], [], []>} : vector<128x128xbf16>, vector<128x8xbf16>, vector<128x8xf32> -> vector<128x8xf32>
    %16 = arith.addf %14, %15 : vector<128x8xf32>
    %c0_19 = arith.constant 0 : index
    %c0_20 = arith.constant 0 : index
    %17 = vector.load %arg8[%c0_19, %c0_20] : memref<128x8xf32, #tpu.memory_space<vmem>>, vector<128x8xf32>
    tpu.vector_store %arg8[%c0_19, %c0_20], %16 {strides = array<i32>} : memref<128x8xf32, #tpu.memory_space<vmem>>, vector<128x8xf32>,
    %c0_21 = arith.constant 0 : index
    %c0_22 = arith.constant 0 : index
    %c2 = arith.constant 2 : index
    %c0_23 = arith.constant 0 : index
    %18 = vector.load %arg4[%c0_21, %c0_22, %c2, %c0_23] : memref<1x10x18x128xbf16, #tpu.memory_space<vmem>>, vector<1x8x16x128xbf16>
    %19 = vector.shape_cast %18 : vector<1x8x16x128xbf16> to vector<8x16x128xbf16>
    %20 = vector.shape_cast %19 : vector<8x16x128xbf16> to vector<128x128xbf16>
    %c256 = arith.constant 256 : index
    %c0_24 = arith.constant 0 : index
    %21 = vector.load %arg5[%c256, %c0_24] : memref<1152x8xbf16, #tpu.memory_space<vmem>>, vector<128x8xbf16>
    %c0_25 = arith.constant 0 : index
    %c0_26 = arith.constant 0 : index
    %22 = vector.load %arg8[%c0_25, %c0_26] : memref<128x8xf32, #tpu.memory_space<vmem>>, vector<128x8xf32>
    %cst_27 = arith.constant dense<0.000000e+00> : vector<128x8xf32>
    %23 = tpu.matmul %20, %21, %cst_27 {dimension_numbers = #tpu.dot_dimension_numbers<[1], [0], [0], [1], [0, 0, 1, 1], [], []>} : vector<128x128xbf16>, vector<128x8xbf16>, vector<128x8xf32> -> vector<128x8xf32>
    %24 = arith.addf %22, %23 : vector<128x8xf32>
    %c0_28 = arith.constant 0 : index
    %c0_29 = arith.constant 0 : index
    %25 = vector.load %arg8[%c0_28, %c0_29] : memref<128x8xf32, #tpu.memory_space<vmem>>, vector<128x8xf32>
    tpu.vector_store %arg8[%c0_28, %c0_29], %24 {strides = array<i32>} : memref<128x8xf32, #tpu.memory_space<vmem>>, vector<128x8xf32>,
    %c0_30 = arith.constant 0 : index
    %c1_31 = arith.constant 1 : index
    %c0_32 = arith.constant 0 : index
    %c0_33 = arith.constant 0 : index
    %26 = vector.load %arg4[%c0_30, %c1_31, %c0_32, %c0_33] : memref<1x10x18x128xbf16, #tpu.memory_space<vmem>>, vector<1x8x16x128xbf16>
    %27 = vector.shape_cast %26 : vector<1x8x16x128xbf16> to vector<8x16x128xbf16>
    %28 = vector.shape_cast %27 : vector<8x16x128xbf16> to vector<128x128xbf16>
    %c384 = arith.constant 384 : index
    %c0_34 = arith.constant 0 : index
    %29 = vector.load %arg5[%c384, %c0_34] : memref<1152x8xbf16, #tpu.memory_space<vmem>>, vector<128x8xbf16>
    %c0_35 = arith.constant 0 : index
    %c0_36 = arith.constant 0 : index
    %30 = vector.load %arg8[%c0_35, %c0_36] : memref<128x8xf32, #tpu.memory_space<vmem>>, vector<128x8xf32>
    %cst_37 = arith.constant dense<0.000000e+00> : vector<128x8xf32>
    %31 = tpu.matmul %28, %29, %cst_37 {dimension_numbers = #tpu.dot_dimension_numbers<[1], [0], [0], [1], [0, 0, 1, 1], [], []>} : vector<128x128xbf16>, vector<128x8xbf16>, vector<128x8xf32> -> vector<128x8xf32>
    %32 = arith.addf %30, %31 : vector<128x8xf32>
    %c0_38 = arith.constant 0 : index
    %c0_39 = arith.constant 0 : index
    %33 = vector.load %arg8[%c0_38, %c0_39] : memref<128x8xf32, #tpu.memory_space<vmem>>, vector<128x8xf32>
    tpu.vector_store %arg8[%c0_38, %c0_39], %32 {strides = array<i32>} : memref<128x8xf32, #tpu.memory_space<vmem>>, vector<128x8xf32>,
    %c0_40 = arith.constant 0 : index
    %c1_41 = arith.constant 1 : index
    %c1_42 = arith.constant 1 : index
    %c0_43 = arith.constant 0 : index
    %34 = vector.load %arg4[%c0_40, %c1_41, %c1_42, %c0_43] : memref<1x10x18x128xbf16, #tpu.memory_space<vmem>>, vector<1x8x16x128xbf16>
    %35 = vector.shape_cast %34 : vector<1x8x16x128xbf16> to vector<8x16x128xbf16>
    %36 = vector.shape_cast %35 : vector<8x16x128xbf16> to vector<128x128xbf16>
    %c512 = arith.constant 512 : index
    %c0_44 = arith.constant 0 : index
    %37 = vector.load %arg5[%c512, %c0_44] : memref<1152x8xbf16, #tpu.memory_space<vmem>>, vector<128x8xbf16>
    %c0_45 = arith.constant 0 : index
    %c0_46 = arith.constant 0 : index
    %38 = vector.load %arg8[%c0_45, %c0_46] : memref<128x8xf32, #tpu.memory_space<vmem>>, vector<128x8xf32>
    %cst_47 = arith.constant dense<0.000000e+00> : vector<128x8xf32>
    %39 = tpu.matmul %36, %37, %cst_47 {dimension_numbers = #tpu.dot_dimension_numbers<[1], [0], [0], [1], [0, 0, 1, 1], [], []>} : vector<128x128xbf16>, vector<128x8xbf16>, vector<128x8xf32> -> vector<128x8xf32>
    %40 = arith.addf %38, %39 : vector<128x8xf32>
    %c0_48 = arith.constant 0 : index
    %c0_49 = arith.constant 0 : index
    %41 = vector.load %arg8[%c0_48, %c0_49] : memref<128x8xf32, #tpu.memory_space<vmem>>, vector<128x8xf32>
    tpu.vector_store %arg8[%c0_48, %c0_49], %40 {strides = array<i32>} : memref<128x8xf32, #tpu.memory_space<vmem>>, vector<128x8xf32>,
    %c0_50 = arith.constant 0 : index
    %c1_51 = arith.constant 1 : index
    %c2_52 = arith.constant 2 : index
    %c0_53 = arith.constant 0 : index
    %42 = vector.load %arg4[%c0_50, %c1_51, %c2_52, %c0_53] : memref<1x10x18x128xbf16, #tpu.memory_space<vmem>>, vector<1x8x16x128xbf16>
    %43 = vector.shape_cast %42 : vector<1x8x16x128xbf16> to vector<8x16x128xbf16>
    %44 = vector.shape_cast %43 : vector<8x16x128xbf16> to vector<128x128xbf16>
    %c640 = arith.constant 640 : index
    %c0_54 = arith.constant 0 : index
    %45 = vector.load %arg5[%c640, %c0_54] : memref<1152x8xbf16, #tpu.memory_space<vmem>>, vector<128x8xbf16>
    %c0_55 = arith.constant 0 : index
    %c0_56 = arith.constant 0 : index
    %46 = vector.load %arg8[%c0_55, %c0_56] : memref<128x8xf32, #tpu.memory_space<vmem>>, vector<128x8xf32>
    %cst_57 = arith.constant dense<0.000000e+00> : vector<128x8xf32>
    %47 = tpu.matmul %44, %45, %cst_57 {dimension_numbers = #tpu.dot_dimension_numbers<[1], [0], [0], [1], [0, 0, 1, 1], [], []>} : vector<128x128xbf16>, vector<128x8xbf16>, vector<128x8xf32> -> vector<128x8xf32>
    %48 = arith.addf %46, %47 : vector<128x8xf32>
    %c0_58 = arith.constant 0 : index
    %c0_59 = arith.constant 0 : index
    %49 = vector.load %arg8[%c0_58, %c0_59] : memref<128x8xf32, #tpu.memory_space<vmem>>, vector<128x8xf32>
    tpu.vector_store %arg8[%c0_58, %c0_59], %48 {strides = array<i32>} : memref<128x8xf32, #tpu.memory_space<vmem>>, vector<128x8xf32>,
    %c0_60 = arith.constant 0 : index
    %c2_61 = arith.constant 2 : index
    %c0_62 = arith.constant 0 : index
    %c0_63 = arith.constant 0 : index
    %50 = vector.load %arg4[%c0_60, %c2_61, %c0_62, %c0_63] : memref<1x10x18x128xbf16, #tpu.memory_space<vmem>>, vector<1x8x16x128xbf16>
    %51 = vector.shape_cast %50 : vector<1x8x16x128xbf16> to vector<8x16x128xbf16>
    %52 = vector.shape_cast %51 : vector<8x16x128xbf16> to vector<128x128xbf16>
    %c768 = arith.constant 768 : index
    %c0_64 = arith.constant 0 : index
    %53 = vector.load %arg5[%c768, %c0_64] : memref<1152x8xbf16, #tpu.memory_space<vmem>>, vector<128x8xbf16>
    %c0_65 = arith.constant 0 : index
    %c0_66 = arith.constant 0 : index
    %54 = vector.load %arg8[%c0_65, %c0_66] : memref<128x8xf32, #tpu.memory_space<vmem>>, vector<128x8xf32>
    %cst_67 = arith.constant dense<0.000000e+00> : vector<128x8xf32>
    %55 = tpu.matmul %52, %53, %cst_67 {dimension_numbers = #tpu.dot_dimension_numbers<[1], [0], [0], [1], [0, 0, 1, 1], [], []>} : vector<128x128xbf16>, vector<128x8xbf16>, vector<128x8xf32> -> vector<128x8xf32>
    %56 = arith.addf %54, %55 : vector<128x8xf32>
    %c0_68 = arith.constant 0 : index
    %c0_69 = arith.constant 0 : index
    %57 = vector.load %arg8[%c0_68, %c0_69] : memref<128x8xf32, #tpu.memory_space<vmem>>, vector<128x8xf32>
    tpu.vector_store %arg8[%c0_68, %c0_69], %56 {strides = array<i32>} : memref<128x8xf32, #tpu.memory_space<vmem>>, vector<128x8xf32>,
    %c0_70 = arith.constant 0 : index
    %c2_71 = arith.constant 2 : index
    %c1_72 = arith.constant 1 : index
    %c0_73 = arith.constant 0 : index
    %58 = vector.load %arg4[%c0_70, %c2_71, %c1_72, %c0_73] : memref<1x10x18x128xbf16, #tpu.memory_space<vmem>>, vector<1x8x16x128xbf16>
    %59 = vector.shape_cast %58 : vector<1x8x16x128xbf16> to vector<8x16x128xbf16>
    %60 = vector.shape_cast %59 : vector<8x16x128xbf16> to vector<128x128xbf16>
    %c896 = arith.constant 896 : index
    %c0_74 = arith.constant 0 : index
    %61 = vector.load %arg5[%c896, %c0_74] : memref<1152x8xbf16, #tpu.memory_space<vmem>>, vector<128x8xbf16>
    %c0_75 = arith.constant 0 : index
    %c0_76 = arith.constant 0 : index
    %62 = vector.load %arg8[%c0_75, %c0_76] : memref<128x8xf32, #tpu.memory_space<vmem>>, vector<128x8xf32>
    %cst_77 = arith.constant dense<0.000000e+00> : vector<128x8xf32>
    %63 = tpu.matmul %60, %61, %cst_77 {dimension_numbers = #tpu.dot_dimension_numbers<[1], [0], [0], [1], [0, 0, 1, 1], [], []>} : vector<128x128xbf16>, vector<128x8xbf16>, vector<128x8xf32> -> vector<128x8xf32>
    %64 = arith.addf %62, %63 : vector<128x8xf32>
    %c0_78 = arith.constant 0 : index
    %c0_79 = arith.constant 0 : index
    %65 = vector.load %arg8[%c0_78, %c0_79] : memref<128x8xf32, #tpu.memory_space<vmem>>, vector<128x8xf32>
    tpu.vector_store %arg8[%c0_78, %c0_79], %64 {strides = array<i32>} : memref<128x8xf32, #tpu.memory_space<vmem>>, vector<128x8xf32>,
    %c0_80 = arith.constant 0 : index
    %c2_81 = arith.constant 2 : index
    %c2_82 = arith.constant 2 : index
    %c0_83 = arith.constant 0 : index
    %66 = vector.load %arg4[%c0_80, %c2_81, %c2_82, %c0_83] : memref<1x10x18x128xbf16, #tpu.memory_space<vmem>>, vector<1x8x16x128xbf16>
    %67 = vector.shape_cast %66 : vector<1x8x16x128xbf16> to vector<8x16x128xbf16>
    %68 = vector.shape_cast %67 : vector<8x16x128xbf16> to vector<128x128xbf16>
    %c1024 = arith.constant 1024 : index
    %c0_84 = arith.constant 0 : index
    %69 = vector.load %arg5[%c1024, %c0_84] : memref<1152x8xbf16, #tpu.memory_space<vmem>>, vector<128x8xbf16>
    %c0_85 = arith.constant 0 : index
    %c0_86 = arith.constant 0 : index
    %70 = vector.load %arg8[%c0_85, %c0_86] : memref<128x8xf32, #tpu.memory_space<vmem>>, vector<128x8xf32>
    %cst_87 = arith.constant dense<0.000000e+00> : vector<128x8xf32>
    %71 = tpu.matmul %68, %69, %cst_87 {dimension_numbers = #tpu.dot_dimension_numbers<[1], [0], [0], [1], [0, 0, 1, 1], [], []>} : vector<128x128xbf16>, vector<128x8xbf16>, vector<128x8xf32> -> vector<128x8xf32>
    %72 = arith.addf %70, %71 : vector<128x8xf32>
    %c0_88 = arith.constant 0 : index
    %c0_89 = arith.constant 0 : index
    %73 = vector.load %arg8[%c0_88, %c0_89] : memref<128x8xf32, #tpu.memory_space<vmem>>, vector<128x8xf32>
    tpu.vector_store %arg8[%c0_88, %c0_89], %72 {strides = array<i32>} : memref<128x8xf32, #tpu.memory_space<vmem>>, vector<128x8xf32>,
    %c0_90 = arith.constant 0 : index
    %c0_91 = arith.constant 0 : index
    %74 = vector.load %arg8[%c0_90, %c0_91] : memref<128x8xf32, #tpu.memory_space<vmem>>, vector<128x8xf32>
    %c0_92 = arith.constant 0 : index
    %c0_93 = arith.constant 0 : index
    %75 = vector.load %arg6[%c0_92, %c0_93] : memref<1x8xf32, #tpu.memory_space<vmem>>, vector<1x8xf32>
    %76 = vector.broadcast %75 : vector<1x8xf32> to vector<128x8xf32>
    %77 = arith.addf %74, %76 : vector<128x8xf32>
    %78 = vector.extract_strided_slice %77 {offsets = [0, 0], sizes = [128, 4], strides = [1, 1]} : vector<128x8xf32> to vector<128x4xf32>
    %79 = vector.extract_strided_slice %77 {offsets = [0, 4], sizes = [128, 4], strides = [1, 1]} : vector<128x8xf32> to vector<128x4xf32>
    %c0_94 = arith.constant 0 : index
    %c0_95 = arith.constant 0 : index
    %c0_96 = arith.constant 0 : index
    %80 = vector.load %arg2[%c0_94, %c0_95, %c0_96] : memref<1x128x4xf32, #tpu.memory_space<vmem>>, vector<1x128x4xf32>
    %81 = vector.shape_cast %80 : vector<1x128x4xf32> to vector<128x4xf32>
    %c0_97 = arith.constant 0 : index
    %c0_98 = arith.constant 0 : index
    %c0_99 = arith.constant 0 : index
    %82 = vector.load %arg3[%c0_97, %c0_98, %c0_99] : memref<1x2x4xf32, #tpu.memory_space<vmem>>, vector<1x1x4xf32>
    %83 = vector.shape_cast %82 : vector<1x1x4xf32> to vector<1x4xf32>
    %c0_100 = arith.constant 0 : index
    %c1_101 = arith.constant 1 : index
    %c0_102 = arith.constant 0 : index
    %84 = vector.load %arg3[%c0_100, %c1_101, %c0_102] : memref<1x2x4xf32, #tpu.memory_space<vmem>>, vector<1x1x4xf32>
    %85 = vector.shape_cast %84 : vector<1x1x4xf32> to vector<1x4xf32>
    %86 = vector.broadcast %83 : vector<1x4xf32> to vector<128x4xf32>
    %87 = arith.subf %81, %86 : vector<128x4xf32>
    %88 = vector.broadcast %85 : vector<1x4xf32> to vector<128x4xf32>
    %89 = arith.mulf %87, %88 : vector<128x4xf32>
    %cst_103 = arith.constant 1.000000e+00 : f32
    %90 = vector.broadcast %cst_103 : f32 to vector<128x4xf32>
    %91 = arith.addf %90, %78 : vector<128x4xf32>
    %92 = arith.mulf %89, %91 : vector<128x4xf32>
    %93 = arith.addf %92, %79 : vector<128x4xf32>
    %c0_104 = arith.constant 0 : index
    %c0_105 = arith.constant 0 : index
    %c0_106 = arith.constant 0 : index
    %94 = vector.load %arg7[%c0_104, %c0_105, %c0_106] : memref<1x128x4xf32, #tpu.memory_space<vmem>>, vector<1x128x4xf32>
    %95 = vector.shape_cast %94 : vector<1x128x4xf32> to vector<128x4xf32>
    %96 = vector.shape_cast %93 : vector<128x4xf32> to vector<1x128x4xf32>
    tpu.vector_store %arg7[%c0_104, %c0_105, %c0_106], %96 {strides = array<i32>} : memref<1x128x4xf32, #tpu.memory_space<vmem>>, vector<1x128x4xf32>,
    return
  }
  func.func @transform_0(%arg0: i32, %arg1: i32) -> (i32, i32, i32) {
    %c0_i32 = arith.constant 0 : i32
    %c0_i32_0 = arith.constant 0 : i32
    return %arg0, %arg1, %c0_i32 : i32, i32, i32
  }
  func.func @transform_1(%arg0: i32, %arg1: i32) -> (i32, i32, i32) {
    %c0_i32 = arith.constant 0 : i32
    %c0_i32_0 = arith.constant 0 : i32
    %c0_i32_1 = arith.constant 0 : i32
    return %arg0, %c0_i32, %c0_i32_0 : i32, i32, i32
  }
  func.func @transform_2(%arg0: i32, %arg1: i32) -> (i32, i32, i32, i32) {
    %c2_i32 = arith.constant 2 : i32
    %0 = arith.muli %arg0, %c2_i32 : i32
    %1 = arith.addi %0, %arg1 : i32
    %c0_i32 = arith.constant 0 : i32
    %c0_i32_0 = arith.constant 0 : i32
    %c0_i32_1 = arith.constant 0 : i32
    %c0_i32_2 = arith.constant 0 : i32
    return %1, %c0_i32, %c0_i32_0, %c0_i32_1 : i32, i32, i32, i32
  }
  func.func @transform_3(%arg0: i32, %arg1: i32) -> (i32, i32) {
    %c0_i32 = arith.constant 0 : i32
    %c0_i32_0 = arith.constant 0 : i32
    %c0_i32_1 = arith.constant 0 : i32
    return %c0_i32, %c0_i32_0 : i32, i32
  }
  func.func @transform_4(%arg0: i32, %arg1: i32) -> (i32, i32) {
    %c0_i32 = arith.constant 0 : i32
    %c0_i32_0 = arith.constant 0 : i32
    %c0_i32_1 = arith.constant 0 : i32
    return %c0_i32, %c0_i32_0 : i32, i32
  }
  func.func @transform_5(%arg0: i32, %arg1: i32) -> (i32, i32, i32) {
    %c0_i32 = arith.constant 0 : i32
    %c0_i32_0 = arith.constant 0 : i32
    return %arg0, %arg1, %c0_i32 : i32, i32, i32
  }
}

</mosaic_0001>

<bundles_post_ra>
// kernel: spade_forward.3
= control target key start
LH: loop header
LB: loop body
LE: loop exit
PB: predicated region body
PF: predicated region fallthrough
CT: control target
= control target key end

     0   :  { %s861_s12 = smov 0   ;;  %s863_s13 = smov 0   ;;  %s949_s0 = inlined_call_operand.vmem [shape: bf16[2,256,27], index: 0, kind: input, shape index: {}]   ;;  %s950_s1 = inlined_call_operand.vmem [shape: bf16[27,128], index: 1, kind: input, shape index: {}]   ;;  %s951_s2 = inlined_call_operand.vmem [shape: f32[1,128], index: 2, kind: input, shape index: {}]   ;;  %s952_s3 = inlined_call_operand.vmem [shape: bf16[2,256,128], index: 3, kind: output, shape index: {}]  }
   0x1   :  { %s865_s14 = smov 0   ;;  %s867_s15 = smov 0  }
   0x2   :  { %s869_s16 = smov 0  }
   0x3 LB: > { %s22_s17 = sadd.s32 1, %s830_s14  ;;  %s25_s18 = sadd.s32 1, %s834_s15  ;;  %s838_s16 = sphi %s869_s16, %s13_s16   ;;  %s834_s15 = sphi %s867_s15, %s956_s15   ;;  %s830_s14 = sphi %s865_s14, %s955_s14   ;;  %s826_s13 = sphi %s863_s13, %s954_s13   ;;  %s822_s12 = sphi %s861_s12, %s953_s12  }
   0x4   : > { %p23_p0 = scmp.ge.s32.totalorder %s22_s17, 2  ;;  %p608_p1 = scmp.ge.s32.totalorder %s838_s16, 1 }
   0x5   : > { %p158_p2 = scmp.lt.s32.totalorder %s838_s16, 5 }
   0x6   : > { %s958_s17 = smov (%p23_p0, %s22_s17), 0  ;;  %s960_s18 = smov (!%p23_p0, %s25_s18), %s834_s15 }
   0x7   : > { %p159_p3 = pnand %p608_p1, %p158_p2  ;;  %p27_p4 = scmp.ge.s32.totalorder %s960_s18, 2 }
   0x8   : > { %v790_v0 = vld [vmem:[%s950_s1] sm:$0xff] (!%p159_p3)   ;;  %vm314_vm0 = vcmask (!%p159_p3), 1044480   ;;  %v791_v1 = vld [vmem:[%s950_s1 + $0x8] sm:$0x3f] (!%p159_p3)   ;;  %vm315_vm1 = vcmask (!%p159_p3), 1045504   ;;  %s609_s23 = sshll.u32 (!%p159_p3), %s822_s12, 4 }
   0x9   : > { %s962_s18 = smov (%p27_p4, %s960_s18), 0  ;;  %162 = sbr.rel (%p159_p3) target bundleno = 254 (0xfe), region = 32 }
   0xa   : > { %725 = vmatprep.subr.bf16.mxu0 (!%p159_p3), %v790_v0  ;;  %745 = vmatprep.subr.bf16.mxu1 (!%p159_p3), %v790_v0  ;;  %p191_p5 = scmp.lt.s32.totalorder (!%p159_p3), %s826_s13, 1  ;;  %v840_v2 = vmov (!%p159_p3), 65535   ;;  %p193_p6 = scmp.lt.s32.totalorder (!%p159_p3), %s609_s23, 31  ;;  %vm289_vm2 = vcmask (!%p159_p3), 220160   ;;  %v615_v14 = vld [vmem:[%s951_s2] ss:$0 sm:$0xff] (!%p159_p3) }
   0xb   : > { %726 = vmatpush3.bf16.msra.mxu0 (!%p159_p3), %v790_v0  ;;  %747 = vmatpush3.bf16.msra.mxu1 (!%p159_p3), %v790_v0  ;;  %v316_v3 = vsel (!%p159_p3), %vm314_vm0, 4294967295, %v840_v2 }
   0xc   : > { %v317_v4 = vsel (!%p159_p3), %vm315_vm1, %v316_v3, 0 }
   0xd   : > { %v319_v5 = vand.u32 (!%p159_p3), %v791_v1, %v317_v4 }
   0xf   : > { %727 = vmatprep.subr.bf16.mxu0 (!%p159_p3), %v319_v5  ;;  %746 = vmatprep.subr.bf16.mxu1 (!%p159_p3), %v319_v5 }
  0x10   : > { %s964_s13 = smov (!%p191_p5, %s826_s13), 1  ;;  %s966_s23 = smov (!%p193_p6, %s609_s23), 31  ;;  %728 = vmatpush3.bf16.msra.mxu0 %v319_v5  ;;  %748 = vmatpush3.bf16.msra.mxu1 %v319_v5 }
  0x11   : > { %s610_s24 = sshll.u32 %s964_s13, 5 }
  0x12   : > { %s900_s25 = sadd.s32 %s610_s24, %s966_s23 }
  0x13   : > { %s611_s26 = sshll.u32 %s900_s25, 2 }
  0x14   : > { %s198_s29 = scalar_lea.vmem %s949_s0, %s611_s26  ;;  %s924_s7 = scalar_lea.vmem %s952_s3, %s611_s26 }
  0x15   : > { %v792_v6 = vld [vmem:[%s198_s29] sm:$0xff]   ;;  %v794_v8 = vld [vmem:[%s198_s29 + $0x8] sm:$0xff]   ;;  %v796_v10 = vld [vmem:[%s198_s29 + $0x10] sm:$0xff]  }
  0x16   : > { %v793_v7 = vld [vmem:[%s198_s29 + $0x20] sm:$0xff]   ;;  %729 = vmatprep.mubr.msk.bf16.mxu0 %vm289_vm2, %v792_v6  ;;  %v795_v9 = vld [vmem:[%s198_s29 + $0x28] sm:$0xff]   ;;  %v797_v11 = vld [vmem:[%s198_s29 + $0x30] sm:$0xff]  }
  0x17   : > { %737 = vmatprep.mubr.msk.bf16.mxu1 %vm289_vm2, %v793_v7  ;;  %730 = vmatmul.mubr.msk.bf16.vlgmr.msra.gmra.mrb[0].mxu0 %vm289_vm2, %v794_v8  ;;  %v798_v12 = vld [vmem:[%s198_s29 + $0x18] sm:$0xff]  }
  0x18   : > { %738 = vmatmul.mubr.msk.bf16.vlgmr.msra.gmra.mrb[0].mxu1 %vm289_vm2, %v795_v9  ;;  %733 = vmatprep.mubr.msk.bf16.mxu0 %vm289_vm2, %v796_v10  ;;  %v799_v13 = vld [vmem:[%s198_s29 + $0x38] sm:$0xff]  }
  0x19   : > { %741 = vmatprep.mubr.msk.bf16.mxu1 %vm289_vm2, %v797_v11 }
  0x1f   : > { %734 = vmatmul.mubr.msk.bf16.gmra.mrb[4].mxu0 %vm289_vm2, %v798_v12 }
  0x20   : > { %742 = vmatmul.mubr.msk.bf16.gmra.mrb[4].mxu1 %vm289_vm2, %v799_v13 }
  0xea   : > { %v731_v15 = vpop.f32.mrb[0].mxu0 }
  0xeb   : > { %v364_v16 = vadd.f32 %v731_v15, %v615_v14  ;;  %v739_v17 = vpop.f32.mrb[0].mxu1  ;;  %v355_v18 = vpop.f32.mrb[1].mxu0 }
  0xec   : > { %v396_v19 = vadd.f32 %v739_v17, %v615_v14  ;;  %v356_v20 = vadd.f32 %v615_v14, %v355_v18  ;;  %v387_v21 = vpop.f32.mrb[1].mxu1  ;;  %v732_v22 = vpop.f32.mrb[2].mxu0 }
  0xed   : > { %v388_v23 = vadd.f32 %v615_v14, %v387_v21  ;;  %v367_v24 = vadd.f32 %v732_v22, %v615_v14  ;;  %v740_v25 = vpop.f32.mrb[2].mxu1  ;;  %v358_v26 = vpop.f32.mrb[3].mxu0  ;;  %v420_v30 = vmax.f32 %v364_v16, 0.0 }
  0xee   : > { %v399_v27 = vadd.f32 %v740_v25, %v615_v14  ;;  %v359_v28 = vadd.f32 %v615_v14, %v358_v26  ;;  %v390_v29 = vpop.f32.mrb[3].mxu1  ;;  %v428_v33 = vmax.f32 %v396_v19, 0.0  ;;  %v418_v34 = vmax.f32 %v356_v20, 0.0 }
  0xef   : > { %v421_v31 = vmax.f32 %v367_v24, 0.0  ;;  %v391_v32 = vadd.f32 %v615_v14, %v390_v29  ;;  %v426_v37 = vmax.f32 %v388_v23, 0.0 }
  0xf0   : > { %v429_v35 = vmax.f32 %v399_v27, 0.0  ;;  %v419_v36 = vmax.f32 %v359_v28, 0.0 }
  0xf1   : > { %v676_v38 = vpack.c.bf16 %v421_v31, %v420_v30  ;;  %v427_v39 = vmax.f32 %v391_v32, 0.0 }
  0xf2   : > { %v696_v40 = vpack.c.bf16 %v429_v35, %v428_v33  ;;  %v671_v41 = vpack.c.bf16 %v419_v36, %v418_v34  ;;  %v735_v42 = vpop.f32.mrb[4].mxu0 }
  0xf3   : > { %708 = vst [vmem:[%s924_s7 + $0x8] sm:$0xff] %v676_v38   ;;  %v691_v43 = vpack.c.bf16 %v427_v39, %v426_v37  ;;  %v380_v44 = vadd.f32 %v735_v42, %v615_v14  ;;  %v743_v45 = vpop.f32.mrb[4].mxu1  ;;  %v371_v46 = vpop.f32.mrb[5].mxu0 }
  0xf4   : > { %712 = vst [vmem:[%s924_s7 + $0x28] sm:$0xff] %v696_v40   ;;  %672 = vst [vmem:[%s924_s7] sm:$0xff] %v671_v41   ;;  %v412_v47 = vadd.f32 %v743_v45, %v615_v14  ;;  %v372_v48 = vadd.f32 %v615_v14, %v371_v46  ;;  %v403_v49 = vpop.f32.mrb[5].mxu1  ;;  %v736_v50 = vpop.f32.mrb[6].mxu0 }
  0xf5   : > { %711 = vst [vmem:[%s924_s7 + $0x20] sm:$0xff] %v691_v43   ;;  %v404_v51 = vadd.f32 %v615_v14, %v403_v49  ;;  %v383_v52 = vadd.f32 %v736_v50, %v615_v14  ;;  %v744_v53 = vpop.f32.mrb[6].mxu1  ;;  %v374_v54 = vpop.f32.mrb[7].mxu0  ;;  %v424_v58 = vmax.f32 %v380_v44, 0.0 }
  0xf6   : > { %v415_v55 = vadd.f32 %v744_v53, %v615_v14  ;;  %v375_v56 = vadd.f32 %v615_v14, %v374_v54  ;;  %v406_v57 = vpop.f32.mrb[7].mxu1  ;;  %v432_v61 = vmax.f32 %v412_v47, 0.0  ;;  %v422_v62 = vmax.f32 %v372_v48, 0.0 }
  0xf7   : > { %v425_v59 = vmax.f32 %v383_v52, 0.0  ;;  %v407_v60 = vadd.f32 %v615_v14, %v406_v57  ;;  %v430_v1 = vmax.f32 %v404_v51, 0.0 }
  0xf8   : > { %v433_v63 = vmax.f32 %v415_v55, 0.0  ;;  %v423_v0 = vmax.f32 %v375_v56, 0.0 }
  0xf9   : > { %v686_v2 = vpack.c.bf16 %v425_v59, %v424_v58  ;;  %v431_v3 = vmax.f32 %v407_v60, 0.0 }
  0xfa   : > { %v706_v4 = vpack.c.bf16 %v433_v63, %v432_v61  ;;  %v681_v5 = vpack.c.bf16 %v423_v0, %v422_v62 }
  0xfb   : > { %710 = vst [vmem:[%s924_s7 + $0x18] sm:$0xff] %v686_v2   ;;  %v701_v6 = vpack.c.bf16 %v431_v3, %v430_v1 }
  0xfc   : > { %714 = vst [vmem:[%s924_s7 + $0x38] sm:$0xff] %v706_v4   ;;  %709 = vst [vmem:[%s924_s7 + $0x10] sm:$0xff] %v681_v5  }
  0xfd   : > { %713 = vst [vmem:[%s924_s7 + $0x30] sm:$0xff] %v701_v6  }
  0xfe PF: > { %s13_s16 = sadd.s32 1, %s838_s16   ;;  %s953_s12 = smov %s830_s14 }
  0xff   : > { %p10_p7 = scmp.ge.s32.totalorder %s13_s16, 6   ;;  %s954_s13 = smov %s834_s15 }
 0x100   : > { %s955_s14 = smov %s958_s17  ;;  %s956_s15 = smov %s962_s18 }
 0x101   :  { %12 = sbr.rel (!%p10_p7) target bundleno = 3 (0x3), region = 62 }

// kernel: spade_forward.4
= control target key start
LH: loop header
LB: loop body
LE: loop exit
PB: predicated region body
PF: predicated region fallthrough
CT: control target
= control target key end

     0   :  { %s463_s6 = smov 0   ;;  %s465_s7 = smov 0   ;;  %s572_s0 = inlined_call_operand.vmem [shape: f32[2,256,4], index: 0, kind: input, shape index: {}]   ;;  %s573_s1 = inlined_call_operand.vmem [shape: f32[2,2,4], index: 1, kind: output, shape index: {}]  }
   0x1   :  { %s467_s8 = smov 0   ;;  %s469_s9 = smov 0  }
   0x2   :  { %s471_s10 = smov 0  }
   0x3 LB: > { %s20_s11 = sadd.s32 1, %s442_s8  ;;  %s23_s12 = sadd.s32 1, %s446_s9  ;;  %s450_s10 = sphi %s471_s10, %s11_s10   ;;  %s446_s9 = sphi %s469_s9, %s577_s9   ;;  %s442_s8 = sphi %s467_s8, %s576_s8   ;;  %s438_s7 = sphi %s465_s7, %s575_s7   ;;  %s434_s6 = sphi %s463_s6, %s574_s6  }
   0x4   : > { %p21_p0 = scmp.ge.s32.totalorder %s20_s11, 2  ;;  %p360_p1 = scmp.ge.s32.totalorder %s450_s10, 1 }
   0x5   : > { %p106_p2 = scmp.lt.s32.totalorder %s450_s10, 5 }
   0x6   : > { %s579_s11 = smov (%p21_p0, %s20_s11), 0  ;;  %s581_s12 = smov (!%p21_p0, %s23_s12), %s446_s9 }
   0x7   : > { %p107_p3 = pnand %p360_p1, %p106_p2  ;;  %p25_p4 = scmp.ge.s32.totalorder %s581_s12, 2 }
   0x8   : > { %s361_s13 = sshll.u32 (!%p107_p3), %s434_s6, 4  ;;  %p130_p5 = scmp.lt.s32.totalorder (!%p107_p3), %s438_s7, 1 }
   0x9   : > { %s583_s12 = smov (%p25_p4, %s581_s12), 0  ;;  %110 = sbr.rel (%p107_p3) target bundleno = 104 (0x68), region = 24 }
   0xa   : > { %p132_p6 = scmp.lt.s32.totalorder (!%p107_p3), %s361_s13, 31  ;;  %p365_p7 = scmp.ne.s32.totalorder (!%p107_p3), %s434_s6, 0 }
  0x10   : > { %s585_s7 = smov (!%p130_p5, %s438_s7), 1  ;;  %s587_s13 = smov (!%p132_p6, %s361_s13), 31 }
  0x11   : > { %s362_s14 = sshll.u32 %s585_s7, 5  ;;  %s364_s15 = sshll.u32 %s585_s7, 1  ;;  %vm147_vm0 = vcmask (!%p365_p7), 24576   ;;  %v452_v0 = vmov (!%p365_p7), 0.0  }
  0x12   : > { %s135_s16 = sadd.s32 %s362_s14, %s587_s13  ;;  %s499_s19 = scalar_lea.vmem %s573_s1, %s364_s15  ;;  %148 = vst.msk [vmem:[#allocation2] sm:$0x1] (!%p365_p7), %vm147_vm0, %v452_v0  ;;  %149 = vst.msk [vmem:[#allocation3] sm:$0x1] (!%p365_p7), %vm147_vm0, %v452_v0 }
  0x13   : > { %s363_s20 = sshll.u32 %s135_s16, 3  ;;  %146 = sbr.rel (%p365_p7) target bundleno = 26 (0x1a), region = 28 }
  0x14   : > { %s504_s23 = scalar_lea.vmem %s572_s0, %s363_s20 }
  0x1a PF: > { %v150_v1 = vld [vmem:[%s504_s23] sm:$0xff]  ;;  %v151_v2 = vld [vmem:[%s504_s23 + $0x8] sm:$0xff]  ;;  %v152_v3 = vld [vmem:[%s504_s23 + $0x10] sm:$0xff]  ;;  %vm167_vm1 = vcmask 31744   ;;  %vm206_vm2 = vcmask 24576   ;;  %p366_p8 = scmp.ne.s32.totalorder %s434_s6, 1 }
  0x1b   : > { %v168_v4 = vsel %vm167_vm1, %v150_v1, 0.0  ;;  %v169_v5 = vsel %vm167_vm1, %v151_v2, 0.0  ;;  %v171_v6 = vsel %vm167_vm1, %v152_v3, 0.0  ;;  %v153_v7 = vld [vmem:[%s504_s23 + $0x18] sm:$0xff]  ;;  %v154_v10 = vld [vmem:[%s504_s23 + $0x20] sm:$0xff]  ;;  %v155_v13 = vld [vmem:[%s504_s23 + $0x28] sm:$0xff]  ;;  %v209_v15 = vmul.f32 %v150_v1, %v150_v1 }
  0x1c   : > { %v170_v8 = vadd.f32 %v169_v5, %v168_v4  ;;  %v173_v9 = vsel %vm167_vm1, %v153_v7, 0.0  ;;  %v175_v12 = vsel %vm167_vm1, %v154_v10, 0.0  ;;  %v210_v16 = vmul.f32 %v151_v2, %v151_v2  ;;  %v156_v19 = vld [vmem:[%s504_s23 + $0x30] sm:$0xff]  ;;  %v157_v24 = vld [vmem:[%s504_s23 + $0x38] sm:$0xff]  ;;  %v158_v31 = vld [vmem:[%s504_s23 + $0x40] sm:$0xff] }
  0x1d   : > { %v211_v17 = vmul.f32 %v152_v3, %v152_v3  ;;  %v177_v18 = vsel %vm167_vm1, %v155_v13, 0.0  ;;  %v212_v21 = vmul.f32 %v153_v7, %v153_v7  ;;  %v179_v22 = vsel %vm167_vm1, %v156_v19, 0.0  ;;  %v159_v37 = vld [vmem:[%s504_s23 + $0x48] sm:$0xff]  ;;  %v160_v43 = vld [vmem:[%s504_s23 + $0x50] sm:$0xff]  ;;  %v161_v49 = vld [vmem:[%s504_s23 + $0x58] sm:$0xff] }
  0x1e   : > { %v172_v11 = vadd.f32 %v171_v6, %v170_v8  ;;  %v213_v23 = vmul.f32 %v154_v10, %v154_v10  ;;  %v225_v26 = vsel %vm167_vm1, %v209_v15, 0.0  ;;  %v226_v27 = vsel %vm167_vm1, %v210_v16, 0.0  ;;  %v162_v55 = vld [vmem:[%s504_s23 + $0x60] sm:$0xff]  ;;  %v163_v61 = vld [vmem:[%s504_s23 + $0x68] sm:$0xff]  ;;  %v164_v3 = vld [vmem:[%s504_s23 + $0x70] sm:$0xff] }
  0x1f   : > { %v228_v28 = vsel %vm167_vm1, %v211_v17, 0.0  ;;  %v181_v29 = vsel %vm167_vm1, %v157_v24, 0.0  ;;  %v227_v30 = vadd.f32 %v226_v27, %v225_v26  ;;  %v214_v33 = vmul.f32 %v155_v13, %v155_v13 }
  0x20   : > { %v174_v14 = vadd.f32 %v173_v9, %v172_v11  ;;  %v230_v34 = vsel %vm167_vm1, %v212_v21, 0.0  ;;  %v183_v35 = vsel %vm167_vm1, %v158_v31, 0.0  ;;  %v215_v39 = vmul.f32 %v156_v19, %v156_v19  ;;  %v165_v9 = vld [vmem:[%s504_s23 + $0x78] sm:$0xff] }
  0x21   : > { %v229_v36 = vadd.f32 %v228_v28, %v227_v30  ;;  %v232_v40 = vsel %vm167_vm1, %v213_v23, 0.0  ;;  %v185_v41 = vsel %vm167_vm1, %v159_v37, 0.0  ;;  %v216_v45 = vmul.f32 %v157_v24, %v157_v24 }
  0x22   : > { %v176_v20 = vadd.f32 %v175_v12, %v174_v14  ;;  %v234_v46 = vsel %vm167_vm1, %v214_v33, 0.0  ;;  %v187_v47 = vsel %vm167_vm1, %v160_v43, 0.0  ;;  %v217_v51 = vmul.f32 %v158_v31, %v158_v31 }
  0x23   : > { %v231_v42 = vadd.f32 %v230_v34, %v229_v36  ;;  %v236_v52 = vsel %vm167_vm1, %v215_v39, 0.0  ;;  %v189_v53 = vsel %vm167_vm1, %v161_v49, 0.0  ;;  %v218_v57 = vmul.f32 %v159_v37, %v159_v37  ;;  %v166_v36 = vld [vmem:[#allocation2] sm:$0x1] }
  0x24   : > { %v178_v25 = vadd.f32 %v177_v18, %v176_v20  ;;  %v238_v58 = vsel %vm167_vm1, %v216_v45, 0.0  ;;  %v191_v59 = vsel %vm167_vm1, %v162_v55, 0.0  ;;  %v219_v63 = vmul.f32 %v160_v43, %v160_v43 }
  0x25   : > { %v233_v48 = vadd.f32 %v232_v40, %v231_v42  ;;  %v240_v0 = vsel %vm167_vm1, %v217_v51, 0.0  ;;  %v193_v1 = vsel %vm167_vm1, %v163_v61, 0.0  ;;  %v220_v5 = vmul.f32 %v161_v49, %v161_v49 }
  0x26   : > { %v180_v32 = vadd.f32 %v179_v22, %v178_v25  ;;  %v242_v6 = vsel %vm167_vm1, %v218_v57, 0.0  ;;  %v195_v7 = vsel %vm167_vm1, %v164_v3, 0.0  ;;  %v221_v11 = vmul.f32 %v162_v55, %v162_v55 }
  0x27   : > { %v235_v54 = vadd.f32 %v234_v46, %v233_v48  ;;  %v244_v12 = vsel %vm167_vm1, %v219_v63, 0.0  ;;  %v197_v13 = vsel %vm167_vm1, %v165_v9, 0.0  ;;  %v222_v16 = vmul.f32 %v163_v61, %v163_v61 }
  0x28   : > { %v182_v38 = vadd.f32 %v181_v29, %v180_v32  ;;  %v246_v17 = vsel %vm167_vm1, %v220_v5, 0.0  ;;  %v223_v20 = vmul.f32 %v164_v3, %v164_v3  ;;  %v248_v21 = vsel %vm167_vm1, %v221_v11, 0.0 }
  0x29   : > { %v237_v60 = vadd.f32 %v236_v52, %v235_v54  ;;  %v224_v24 = vmul.f32 %v165_v9, %v165_v9  ;;  %v250_v25 = vsel %vm167_vm1, %v222_v16, 0.0  ;;  %v277_v54 = vlaneseq (!%p366_p8) }
  0x2a   : > { %v184_v44 = vadd.f32 %v183_v35, %v182_v38  ;;  %v252_v28 = vsel %vm167_vm1, %v223_v20, 0.0  ;;  %vm282_vm3 = vcmask (!%p366_p8), 1040384   ;;  %vm284_vm4 = vcmask (!%p366_p8), 25600  }
  0x2b   : > { %v239_v2 = vadd.f32 %v238_v58, %v237_v60  ;;  %v254_v31 = vsel %vm167_vm1, %v224_v24, 0.0  ;;  %v278_v55 = vshrl.u32 (!%p366_p8), %v277_v54, 7 }
  0x2c   : > { %v186_v50 = vadd.f32 %v185_v41, %v184_v44  ;;  %v208_v44 = vld [vmem:[#allocation3] sm:$0x1] }
  0x2d   : > { %v241_v8 = vadd.f32 %v240_v0, %v239_v2 }
  0x2e   : > { %v188_v56 = vadd.f32 %v187_v47, %v186_v50 }
  0x2f   : > { %v243_v14 = vadd.f32 %v242_v6, %v241_v8 }
  0x30   : > { %v190_v62 = vadd.f32 %v189_v53, %v188_v56  ;;  %v279_v56 = vsub.s32 (!%p366_p8), 0, %v278_v55 }
  0x31   : > { %v245_v18 = vadd.f32 %v244_v12, %v243_v14 }
  0x32   : > { %v192_v4 = vadd.f32 %v191_v59, %v190_v62 }
  0x33   : > { %v247_v22 = vadd.f32 %v246_v17, %v245_v18 }
  0x34   : > { %v194_v10 = vadd.f32 %v193_v1, %v192_v4 }
  0x35   : > { %v249_v26 = vadd.f32 %v248_v21, %v247_v22 }
  0x36   : > { %v196_v15 = vadd.f32 %v195_v7, %v194_v10 }
  0x37   : > { %v251_v29 = vadd.f32 %v250_v25, %v249_v26 }
  0x38   : > { %v198_v19 = vadd.f32 %v197_v13, %v196_v15 }
  0x39   : > { %v253_v32 = vadd.f32 %v252_v28, %v251_v29 }
  0x3a   : > { %v199_v23 = vrot.slane %v198_v19, 4 }
  0x3b   : > { %v255_v34 = vadd.f32 %v254_v31, %v253_v32 }
  0x3c   : > { %v200_v27 = vadd.f32 %v199_v23, %v198_v19 }
  0x3d   : > { %v256_v37 = vrot.slane %v255_v34, 4 }
  0x3e   : > { %v201_v30 = vrot.slane %v200_v27, 2 }
  0x3f   : > { %v257_v39 = vadd.f32 %v256_v37, %v255_v34 }
  0x40   : > { %v202_v33 = vadd.f32 %v201_v30, %v200_v27 }
  0x41   : > { %v258_v41 = vrot.slane %v257_v39, 2 }
  0x42   : > { %v203_v35 = vrot.slane %v202_v33, 1 }
  0x43   : > { %v259_v42 = vadd.f32 %v258_v41, %v257_v39 }
  0x44   : > { %v204_v38 = vadd.f32 %v203_v35, %v202_v33 }
  0x45   : > { %v260_v43 = vrot.slane %v259_v42, 1  ;;  %267 = sbr.rel (%p366_p8) target bundleno = 104 (0x68), region = 32 }
  0x46   : > { %v205_v40 = vadd.f32 %v204_v38, %v166_v36 }
  0x47   : > { %v261_v45 = vadd.f32 %v260_v43, %v259_v42 }
  0x48   : > { %207 = vst.msk [vmem:[#allocation2] sm:$0x1] %vm206_vm2, %v205_v40 }
  0x49   : > { %v262_v46 = vadd.f32 %v261_v45, %v208_v44 }
  0x4b   : > { %263 = vst.msk [vmem:[#allocation3] sm:$0x1] %vm206_vm2, %v262_v46 }
  0x4f   : > { %v268_v47 = vld [vmem:[#allocation2] sm:$0x1] }
  0x50   : > { %v269_v49 = vmul.f32 0.00390625, %v268_v47 }
  0x52   : > { %v270_v48 = vld [vmem:[#allocation3] sm:$0x1]  ;;  %v272_v51 = vmul.f32 %v269_v49, %v269_v49 }
  0x53   : > { %v271_v50 = vmul.f32 0.00390625, %v270_v48 }
  0x55   : > { %v273_v52 = vsub.f32 %v271_v50, %v272_v51 }
  0x57   : > { %v274_v53 = vadd.f32 1e-05, %v273_v52 }
  0x59   : > { %410 = vrsqrt.f32 %v274_v53 }
  0x63   : > { %v411_v57 = vpop.eup %410 }
  0x64   : > { %v280_v58 = vrot.slane %v411_v57, %v279_v56 }
  0x66   : > { %v283_v59 = vsel %vm282_vm3, %v269_v49, %v280_v58 }
  0x67   : > { %285 = vst.msk [vmem:[%s499_s19] sm:$0x3] %vm284_vm4, %v283_v59 }
  0x68 PF: > { %s11_s10 = sadd.s32 1, %s450_s10   ;;  %s574_s6 = smov %s442_s8 }
  0x69   : > { %p8_p9 = scmp.ge.s32.totalorder %s11_s10, 6   ;;  %s575_s7 = smov %s446_s9 }
  0x6a   : > { %s576_s8 = smov %s579_s11  ;;  %s577_s9 = smov %s583_s12 }
  0x6b   :  { %10 = sbr.rel (!%p8_p9) target bundleno = 3 (0x3), region = 62 }

// kernel: spade_forward.5
= control target key start
LH: loop header
LB: loop body
LE: loop exit
PB: predicated region body
PF: predicated region fallthrough
CT: control target
= control target key end

     0   :  { %s4882_s18 = smov 0   ;;  %s4884_s19 = smov 0   ;;  %s5942_s0 = inlined_call_operand.vmem [shape: f32[2,256,4], index: 0, kind: input, shape index: {}]   ;;  %s5943_s1 = inlined_call_operand.vmem [shape: f32[2,2,4], index: 1, kind: input, shape index: {}]   ;;  %s5944_s2 = inlined_call_operand.vmem [shape: bf16[4,10,18,128], index: 2, kind: input, shape index: {}]   ;;  %s5945_s3 = inlined_call_operand.vmem [shape: bf16[1152,8], index: 3, kind: input, shape index: {}]   ;;  %s5946_s4 = inlined_call_operand.vmem [shape: f32[1,8], index: 4, kind: input, shape index: {}]   ;;  %s5947_s5 = inlined_call_operand.vmem [shape: f32[2,256,4], index: 5, kind: output, shape index: {}]  }
   0x1   :  { %s4886_s20 = smov 0   ;;  %s4888_s21 = smov 0  }
   0x2   :  { %s4890_s22 = smov 0  }
   0x3 LB: > { %s24_s23 = sadd.s32 1, %s4840_s20  ;;  %s27_s24 = sadd.s32 1, %s4844_s21  ;;  %s4848_s22 = sphi %s4890_s22, %s15_s22   ;;  %s4844_s21 = sphi %s4888_s21, %s5955_s21   ;;  %s4840_s20 = sphi %s4886_s20, %s5954_s20   ;;  %s4836_s19 = sphi %s4884_s19, %s5953_s19   ;;  %s4832_s18 = sphi %s4882_s18, %s5952_s18  }
   0x4   : > { %p25_p0 = scmp.ge.s32.totalorder %s24_s23, 2  ;;  %p3912_p1 = scmp.ge.s32.totalorder %s4848_s22, 1 }
   0x5   : > { %p235_p2 = scmp.lt.s32.totalorder %s4848_s22, 5 }
   0x6   : > { %s5957_s23 = smov (%p25_p0, %s24_s23), 0  ;;  %s5959_s24 = smov (!%p25_p0, %s27_s24), %s4844_s21 }
   0x7   : > { %p236_p3 = pnand %p3912_p1, %p235_p2  ;;  %p29_p4 = scmp.ge.s32.totalorder %s5959_s24, 2 }
   0x8   : > { %v4714_v0 = vld [vmem:[%s5945_s3] sm:$0xff] (!%p236_p3)   ;;  %s3917_s27 = sshll.u32 (!%p236_p3), %s4836_s19, 1  ;;  %v4715_v1 = vld [vmem:[%s5945_s3 + $0x8] sm:$0xff] (!%p236_p3)   ;;  %v4717_v3 = vld [vmem:[%s5945_s3 + $0x10] sm:$0xff] (!%p236_p3)   ;;  %vm630_vm0 = vsmask.f32 (!%p236_p3), 3328 }
   0x9   : > { %s5961_s24 = smov (%p29_p4, %s5959_s24), 0  ;;  %239 = sbr.rel (%p236_p3) target bundleno = 553 (0x229), region = 40 }
   0xa   : > { %s297_s30 = sadd.s32 (!%p236_p3), %s4832_s18, %s3917_s27  ;;  %4367 = vmatprep.subr.bf16.mxu0 (!%p236_p3), %v4714_v0  ;;  %v4716_v2 = vld [vmem:[%s5945_s3 + $0x40] sm:$0xff] (!%p236_p3)   ;;  %v4718_v4 = vld [vmem:[%s5945_s3 + $0x48] sm:$0xff] (!%p236_p3)   ;;  %v4720_v5 = vld [vmem:[%s5945_s3 + $0x50] sm:$0xff] (!%p236_p3)   ;;  %vm631_vm1 = vsmask.f32 (!%p236_p3), 7440  ;;  %vm1114_vm3 = vcmask (!%p236_p3), 1042432  }
   0xb   : > { %p298_p5 = scmp.lt.s32.totalorder (!%p236_p3), %s297_s30, 3  ;;  %4368 = vmatpush3.bf16.msra.mxu0 (!%p236_p3), %v4714_v0  ;;  %4399 = vmatprep.subr.bf16.mxu1 (!%p236_p3), %v4716_v2  ;;  %v4719_v6 = vld [vmem:[%s5945_s3 + $0x18] sm:$0xff] (!%p236_p3)   ;;  %v4721_v8 = vld [vmem:[%s5945_s3 + $0x20] sm:$0xff] (!%p236_p3)   ;;  %v4723_v11 = vld [vmem:[%s5945_s3 + $0x28] sm:$0xff] (!%p236_p3)   ;;  %vm1115_vm4 = vcmask (!%p236_p3), 1046532   ;;  %vm316_vm6 = vcmask (!%p236_p3), 64512  }
   0xc   : > { %4369 = vmatprep.subr.bf16.mxu0 (!%p236_p3), %v4715_v1  ;;  %4400 = vmatpush3.bf16.msra.mxu1 (!%p236_p3), %v4716_v2  ;;  %v4722_v7 = vld [vmem:[%s5945_s3 + $0x58] sm:$0xff] (!%p236_p3)   ;;  %v4724_v9 = vld [vmem:[%s5945_s3 + $0x60] sm:$0xff] (!%p236_p3)   ;;  %v4725_v12 = vld [vmem:[%s5945_s3 + $0x30] sm:$0xff] (!%p236_p3)   ;;  %s4851_s14 = smov (!%p236_p3), 124   ;;  %s3913_s15 = sshll.u32 (!%p236_p3), %s4832_s18, 4  ;;  %vm3775_vm7 = vcmask (!%p236_p3), 31744  }
   0xd   : > { %4401 = vmatprep.subr.bf16.mxu1 (!%p236_p3), %v4718_v4  ;;  %v4726_v13 = vld [vmem:[%s5945_s3 + $0x68] sm:$0xff] (!%p236_p3)   ;;  %v4728_v19 = vld [vmem:[%s5945_s3 + $0x70] sm:$0xff] (!%p236_p3)   ;;  %v4727_v24 = vld [vmem:[%s5945_s3 + $0x38] sm:$0xff] (!%p236_p3)   ;;  %p283_p6 = scmp.lt.s32.totalorder (!%p236_p3), %s4836_s19, 1  ;;  %p285_p7 = scmp.lt.s32.totalorder (!%p236_p3), %s3913_s15, 31 }
   0xe   : > { %v4731_v33 = vld [vmem:[%s5945_s3 + $0x78] sm:$0xff] (!%p236_p3)   ;;  %vm4980_vm2 = vmor (!%p236_p3), %vm630_vm0, %vm631_vm1  ;;  %v4732_v46 = vld [vmem:[%s5945_s3 + $0x80] sm:$0xff] (!%p236_p3)  }
   0xf   : > { %4370 = vmatpush3.bf16.msra.mxu0 (!%p236_p3), %v4715_v1  ;;  %v4733_v57 = vld [vmem:[%s5945_s3 + $0x88] sm:$0xff] (!%p236_p3)   ;;  %v4734_v58 = vld [vmem:[%s5945_s3 + $0xc0] sm:$0xff] (!%p236_p3)   ;;  %vm5089_vm5 = vmor (!%p236_p3), %vm1114_vm3, %vm1115_vm4 }
  0x10   : > { %s5963_s30 = smov (!%p298_p5, %s297_s30), 3  ;;  %4371 = vmatprep.subr.bf16.mxu0 %v4717_v3  ;;  %4402 = vmatpush3.bf16.msra.mxu1 %v4718_v4  ;;  %s5965_s19 = smov (!%p283_p6, %s4836_s19), 1 }
  0x11   : > { %4403 = vmatprep.subr.bf16.mxu1 %v4720_v5  ;;  %s4671_s25 = smul.u32 120, %s5963_s30  ;;  %s5967_s15 = smov (!%p285_p7, %s3913_s15), 31 }
  0x12   : > { %s3914_s16 = sshll.u32 %s5965_s19, 5  ;;  %s3916_s26 = sshll.u32 %s5965_s19, 1 }
  0x13   : > { %4372 = vmatpush3.bf16.msra.mxu0 %v4717_v3  ;;  %s4951_s8 = scalar_lea.vmem %s5944_s2, %s4671_s25  ;;  %s5811_s17 = sadd.s32 %s3914_s16, %s5967_s15 }
  0x14   : > { %4373 = vmatprep.subr.bf16.mxu0 %v4719_v6  ;;  %4404 = vmatpush3.bf16.msra.mxu1 %v4720_v5  ;;  %v4729_v10 = vld [vmem:[%s4951_s8] sm:$0xff]   ;;  %v608_v16 = vld [vmem:[%s4951_s8 + $0x8] sm:$0x1]  ;;  %v609_v23 = vld [vmem:[%s4951_s8 + $0xc] sm:$0xf]  ;;  %s3915_s25 = sshll.u32 %s5811_s17, 3  ;;  %s295_s18 = scalar_lea.vmem %s5943_s1, %s3916_s26 }
  0x15   : > { %4405 = vmatprep.subr.bf16.mxu1 %v4722_v7  ;;  %4383 = vmatprep.mubr.bf16.mxu0 %v4729_v10  ;;  %v606_v14 = vld [vmem:[%s4951_s8] sm:$0xf]  ;;  %v607_v15 = vld [vmem:[%s4951_s8 + $0x4] sm:$0xf]  ;;  %v653_v22 = vshll.u32 %v608_v16, 16  ;;  %v658_v32 = vshrl.u32 %v609_v23, 16  ;;  %s5817_s29 = scalar_lea.vmem %s5942_s0, %s3915_s25  ;;  %s5847_s9 = scalar_lea.vmem %s5947_s5, %s3915_s25 }
  0x16   : > { %v634_v17 = vshrl.u32 %v606_v14, 16  ;;  %v637_v18 = vshll.u32 %v606_v14, 16  ;;  %v643_v20 = vshll.u32 %v607_v15, 16  ;;  %v647_v21 = vshrl.u32 %v607_v15, 16  ;;  %v610_v27 = vld [vmem:[%s4951_s8 + $0x10] sm:$0xf] }
  0x17   : > { %4374 = vmatpush3.bf16.msra.mxu0 %v4719_v6  ;;  %v611_v28 = vld [vmem:[%s4951_s8 + $0x14] sm:$0x1]  ;;  %v655_v31 = vrot.slane %v653_v22, 5  ;;  %v661_v35 = vshll.u32 %v609_v23, 16  ;;  %v667_v36 = vshll.u32 %v610_v27, 16  ;;  %v671_v37 = vshrl.u32 %v610_v27, 16 }
  0x18   : > { %4375 = vmatprep.subr.bf16.mxu0 %v4721_v8  ;;  %4406 = vmatpush3.bf16.msra.mxu1 %v4722_v7  ;;  %v636_v25 = vrot.slane %v634_v17, 4  ;;  %v639_v26 = vrot.slane %v637_v18, 5  ;;  %v645_v29 = vrot.slane %v643_v20, 5  ;;  %v649_v30 = vrot.slane %v647_v21, 4  ;;  %v4730_v52 = vld [vmem:[%s4951_s8 + $0xc] sm:$0xff]   ;;  %v4735_v59 = vld [vmem:[%s4951_s8 + $0x18] sm:$0xff]  }
  0x19   : > { %4407 = vmatprep.subr.bf16.mxu1 %v4724_v9  ;;  %v660_v40 = vrot.slane %v658_v32, 4  ;;  %v677_v41 = vshll.u32 %v611_v28, 16  ;;  %v663_v43 = vrot.slane %v661_v35, 5  ;;  %v669_v44 = vrot.slane %v667_v36, 5  ;;  %v612_v60 = vld [vmem:[%s4951_s8 + $0x18] sm:$0xf] }
  0x1a   : > { %v640_v34 = vor.u32 %v639_v26, %v636_v25  ;;  %v650_v39 = vor.u32 %v649_v30, %v645_v29  ;;  %v673_v45 = vrot.slane %v671_v37, 4  ;;  %v613_v61 = vld [vmem:[%s4951_s8 + $0x1c] sm:$0xf]  ;;  %v614_v62 = vld [vmem:[%s4951_s8 + $0x20] sm:$0x1]  ;;  %v682_v1 = vshrl.u32 %v612_v60, 16 }
  0x1b   : > { %4376 = vmatpush3.bf16.msra.mxu0 %v4721_v8  ;;  %v679_v48 = vrot.slane %v677_v41, 5  ;;  %v664_v50 = vor.u32 %v663_v43, %v660_v40  ;;  %v685_v2 = vshll.u32 %v612_v60, 16  ;;  %v615_v3 = vld [vmem:[%s4951_s8 + $0x24] sm:$0xf]  ;;  %v616_v4 = vld [vmem:[%s4951_s8 + $0x28] sm:$0xf] }
  0x1c   : > { %4377 = vmatprep.subr.bf16.mxu0 %v4723_v11  ;;  %4408 = vmatpush3.bf16.msra.mxu1 %v4724_v9  ;;  %v641_v42 = vrot.slane %v640_v34, 4  ;;  %v651_v47 = vrot.slane %v650_v39, 4  ;;  %v674_v51 = vor.u32 %v673_v45, %v669_v44  ;;  %v4738_v6 = vld [vmem:[%s5945_s3 + $0xc8] sm:$0xff]   ;;  %v691_v7 = vshll.u32 %v613_v61, 16  ;;  %v4740_v25 = vld [vmem:[%s5945_s3 + $0xd0] sm:$0xff]   ;;  %v4739_v34 = vld [vmem:[%s5945_s3 + $0x98] sm:$0xff]  }
  0x1d   : > { %4409 = vmatprep.subr.bf16.mxu1 %v4726_v13  ;;  %v665_v55 = vrot.slane %v664_v50, 4  ;;  %v695_v8 = vshrl.u32 %v613_v61, 16  ;;  %v701_v9 = vshll.u32 %v614_v62, 16  ;;  %v617_v10 = vld [vmem:[%s4951_s8 + $0x2c] sm:$0x1]  ;;  %v706_v14 = vshrl.u32 %v615_v3, 16 }
  0x1e   : > { %v646_v49 = vsel %vm4980_vm2, %v641_v42, %v645_v29  ;;  %v656_v53 = vsel %vm4980_vm2, %v651_v47, %v655_v31  ;;  %v675_v56 = vrot.slane %v674_v51, 4  ;;  %v709_v15 = vshll.u32 %v615_v3, 16  ;;  %v4736_v20 = vld [vmem:[%s4951_s8 + $0x24] sm:$0xff]   ;;  %v4741_v35 = vld [vmem:[%s4951_s8 + $0x30] sm:$0xff]   ;;  %v4744_v40 = vld [vmem:[%s5945_s3 + $0xd8] sm:$0xff]  }
  0x1f   : > { %4378 = vmatpush3.bf16.msra.mxu0 %v4723_v11  ;;  %v3938_v54 = vcombine.low %v646_v49, %v656_v53  ;;  %v670_v63 = vsel %vm4980_vm2, %v665_v55, %v669_v44  ;;  %v4737_v11 = vld [vmem:[%s5945_s3 + $0x90] sm:$0xff]   ;;  %v693_v16 = vrot.slane %v691_v7, 5  ;;  %v697_v17 = vrot.slane %v695_v8, 4  ;;  %v4742_v61 = vld [vmem:[%s4951_s8 + $0x3c] sm:$0xff]  }
  0x20   : > { %4379 = vmatprep.subr.bf16.mxu0 %v4725_v12  ;;  %4410 = vmatpush3.bf16.msra.mxu1 %v4726_v13  ;;  %v680_v0 = vsel %vm4980_vm2, %v675_v56, %v679_v48  ;;  %v687_v13 = vrot.slane %v685_v2, 5  ;;  %v703_v18 = vrot.slane %v701_v9, 5  ;;  %v708_v22 = vrot.slane %v706_v14, 4  ;;  %v618_v42 = vld [vmem:[%s4951_s8 + $0x30] sm:$0xf] }
  0x21   : > { %4411 = vmatprep.subr.bf16.mxu1 %v4728_v19  ;;  %4415 = vmatprep.mubr.bf16.mxu1 %v3938_v54  ;;  %v3939_v5 = vcombine.low %v670_v63, %v680_v0  ;;  %v711_v23 = vrot.slane %v709_v15, 5  ;;  %v698_v26 = vor.u32 %v697_v17, %v693_v16  ;;  %v725_v28 = vshll.u32 %v617_v10, 16  ;;  %v619_v47 = vld [vmem:[%s4951_s8 + $0x34] sm:$0xf]  ;;  %v620_v48 = vld [vmem:[%s4951_s8 + $0x38] sm:$0x1] }
  0x22   : > { %v730_v49 = vshrl.u32 %v618_v42, 16  ;;  %v733_v50 = vshll.u32 %v618_v42, 16  ;;  %v739_v51 = vshll.u32 %v619_v47, 16  ;;  %v749_v53 = vshll.u32 %v620_v48, 16  ;;  %v621_v54 = vld [vmem:[%s4951_s8 + $0x3c] sm:$0xf] }
  0x23   : > { %4380 = vmatpush3.bf16.msra.mxu0 %v4725_v12  ;;  %v684_v12 = vrot.slane %v682_v1, 4  ;;  %v712_v30 = vor.u32 %v711_v23, %v708_v22  ;;  %v699_v32 = vrot.slane %v698_v26, 4  ;;  %v757_v3 = vshll.u32 %v621_v54, 16  ;;  %v4749_v22 = vld [vmem:[%s5945_s3 + $0xb0] sm:$0xff]   ;;  %v628_v42 = vld [vmem:[%s4951_s8 + $0x58] sm:$0xf] }
  0x24   : > { %4381 = vmatprep.subr.bf16.mxu0 %v4727_v24  ;;  %4412 = vmatpush3.bf16.msra.mxu1 %v4728_v19  ;;  %v715_v19 = vshll.u32 %v616_v4, 16  ;;  %v732_v56 = vrot.slane %v730_v49, 4  ;;  %v735_v62 = vrot.slane %v733_v50, 5  ;;  %v741_v63 = vrot.slane %v739_v51, 5  ;;  %v4753_v48 = vld [vmem:[%s5945_s3 + $0xf8] sm:$0xff]  }
  0x25   : > { %4413 = vmatprep.subr.bf16.mxu1 %v4731_v33  ;;  %v688_v21 = vor.u32 %v687_v13, %v684_v12  ;;  %v713_v37 = vrot.slane %v712_v30, 4  ;;  %v704_v41 = vsel %vm4980_vm2, %v699_v32, %v703_v18  ;;  %v751_v1 = vrot.slane %v749_v53, 5  ;;  %v4746_v12 = vld [vmem:[%s5945_s3 + $0xe0] sm:$0xff]   ;;  %v4747_v13 = vld [vmem:[%s4951_s8 + $0x48] sm:$0xff]  }
  0x26   : > { %v717_v27 = vrot.slane %v715_v19, 5  ;;  %v759_v10 = vrot.slane %v757_v3, 5 }
  0x27   : > { %4382 = vmatpush3.bf16.msra.mxu0 %v4727_v24  ;;  %v719_v24 = vshrl.u32 %v616_v4, 16  ;;  %v689_v29 = vrot.slane %v688_v21, 4 }
  0x28   : > { %4431 = vmatprep.subr.bf16.mxu0 %v4732_v46  ;;  %4414 = vmatpush3.bf16.msra.mxu1 %v4731_v33  ;;  %v727_v33 = vrot.slane %v725_v28, 5  ;;  %v718_v44 = vsel %vm4980_vm2, %v713_v37, %v717_v27  ;;  %v624_v28 = vld [vmem:[%s4951_s8 + $0x48] sm:$0xf] }
  0x29   : > { %4463 = vmatprep.subr.bf16.mxu1 %v4734_v58  ;;  %v721_v31 = vrot.slane %v719_v24, 4  ;;  %v694_v36 = vsel %vm4980_vm2, %v689_v29, %v693_v16  ;;  %v625_v29 = vld [vmem:[%s4951_s8 + $0x4c] sm:$0xf]  ;;  %v778_v32 = vshrl.u32 %v624_v28, 16 }
  0x2a   : > { %4384 = vmatmul.mubr.bf16.vlgmr.msra.gmra.mrb[0].mxu0 %v4730_v52  ;;  %v3940_v43 = vcombine.low %v694_v36, %v704_v41  ;;  %v743_v52 = vshrl.u32 %v619_v47, 16  ;;  %v4752_v36 = vld [vmem:[%s5945_s3 + $0xf0] sm:$0xff]   ;;  %v629_v47 = vld [vmem:[%s4951_s8 + $0x5c] sm:$0x1] }
  0x2b   : > { %4432 = vmatpush3.bf16.msra.mxu0 %v4732_v46  ;;  %4387 = vmatprep.mubr.bf16.mxu0 %v4735_v59  ;;  %v722_v39 = vor.u32 %v721_v31, %v717_v27  ;;  %v4743_v46 = vld [vmem:[%s5945_s3 + $0xa0] sm:$0xff]   ;;  %v754_v59 = vshrl.u32 %v621_v54, 16  ;;  %v4748_v27 = vld [vmem:[%s4951_s8 + $0x54] sm:$0xff]   ;;  %v626_v31 = vld [vmem:[%s4951_s8 + $0x50] sm:$0x1]  ;;  %v811_v54 = vshll.u32 %v628_v42, 16 }
  0x2c   : > { %4416 = vmatmul.mubr.bf16.vlgmr.msra.gmra.mrb[0].mxu1 %v3939_v5  ;;  %4433 = vmatprep.subr.bf16.mxu0 %v4733_v57  ;;  %v745_v0 = vrot.slane %v743_v52, 4  ;;  %v4745_v5 = vld [vmem:[%s5945_s3 + $0xa8] sm:$0xff]   ;;  %v627_v41 = vld [vmem:[%s4951_s8 + $0x54] sm:$0xf] }
  0x2d   : > { %4464 = vmatpush3.bf16.msra.mxu1 %v4734_v58  ;;  %v723_v45 = vrot.slane %v722_v39, 4  ;;  %4419 = vmatprep.mubr.bf16.mxu1 %v3940_v43  ;;  %v623_v58 = vld [vmem:[%s4951_s8 + $0x44] sm:$0x1]  ;;  %v756_v2 = vrot.slane %v754_v59, 4  ;;  %v791_v39 = vshrl.u32 %v625_v29, 16  ;;  %v802_v51 = vshrl.u32 %v627_v41, 16 }
  0x2e   : > { %4465 = vmatprep.subr.bf16.mxu1 %v4738_v6  ;;  %v746_v7 = vor.u32 %v745_v0, %v741_v63  ;;  %v773_v9 = vshll.u32 %v623_v58, 16  ;;  %v805_v52 = vshll.u32 %v627_v41, 16  ;;  %v4759_v41 = vld [vmem:[%s5945_s3 + $0x110] sm:$0xff]  }
  0x2f   : > { %4434 = vmatpush3.bf16.msra.mxu0 %v4733_v57  ;;  %v728_v55 = vsel %vm4980_vm2, %v723_v45, %v727_v33  ;;  %v622_v57 = vld [vmem:[%s4951_s8 + $0x40] sm:$0xf]  ;;  %v760_v17 = vor.u32 %v759_v10, %v756_v2  ;;  %v781_v33 = vshll.u32 %v624_v28, 16  ;;  %v793_v49 = vrot.slane %v791_v39, 4 }
  0x30   : > { %4435 = vmatprep.subr.bf16.mxu0 %v4737_v11  ;;  %v3941_v60 = vcombine.low %v718_v44, %v728_v55  ;;  %v763_v4 = vshll.u32 %v622_v57, 16  ;;  %v767_v8 = vshrl.u32 %v622_v57, 16  ;;  %v747_v15 = vrot.slane %v746_v7, 4  ;;  %v4754_v57 = vld [vmem:[%s5945_s3 + $0x100] sm:$0xff]  }
  0x31   : > { %4466 = vmatpush3.bf16.msra.mxu1 %v4738_v6  ;;  %v736_v6 = vor.u32 %v735_v62, %v732_v56  ;;  %v775_v21 = vrot.slane %v773_v9, 5  ;;  %v761_v24 = vrot.slane %v760_v17, 4  ;;  %v780_v44 = vrot.slane %v778_v32, 4  ;;  %v1074_v39 = vld [vmem:[%s4951_s8 + $0x20] sm:$0x1] }
  0x32   : > { %4388 = vmatmul.mubr.bf16.gmra.mrb[4].mxu0 %v4736_v20  ;;  %4467 = vmatprep.subr.bf16.mxu1 %v4740_v25  ;;  %v769_v16 = vrot.slane %v767_v8, 4  ;;  %v752_v19 = vsel %vm4980_vm2, %v747_v15, %v751_v1  ;;  %v783_v45 = vrot.slane %v781_v33, 5  ;;  %v815_v55 = vshrl.u32 %v628_v42, 16  ;;  %v1066_v1 = vld [vmem:[%s4951_s8] sm:$0xe]  ;;  %v4756_v42 = vld [vmem:[%s4951_s8 + $0x18] sm:$0xff]  }
  0x33   : > { %4436 = vmatpush3.bf16.msra.mxu0 %v4737_v11  ;;  %4391 = vmatprep.mubr.bf16.mxu0 %v4741_v35  ;;  %v765_v11 = vrot.slane %v763_v4, 5  ;;  %v737_v14 = vrot.slane %v736_v6, 4  ;;  %v4751_v35 = vld [vmem:[%s5945_s3 + $0xb8] sm:$0xff]   ;;  %v821_v56 = vshll.u32 %v629_v47, 16  ;;  %v804_v59 = vrot.slane %v802_v51, 4 }
  0x34   : > { %4437 = vmatprep.subr.bf16.mxu0 %v4739_v34  ;;  %4420 = vmatmul.mubr.bf16.gmra.mrb[4].mxu1 %v3941_v60  ;;  %v784_v53 = vor.u32 %v783_v45, %v780_v44  ;;  %v807_v60 = vrot.slane %v805_v52, 5  ;;  %v813_v62 = vrot.slane %v811_v54, 5  ;;  %v1067_v4 = vld [vmem:[%s4951_s8 + $0x4] sm:$0xf]  ;;  %v3954_v7 = vrot.slane %v1066_v1, 9 }
  0x35   : > { %4468 = vmatpush3.bf16.msra.mxu1 %v4740_v25  ;;  %v742_v18 = vsel %vm4980_vm2, %v737_v14, %v741_v63  ;;  %v770_v20 = vor.u32 %v769_v16, %v765_v11  ;;  %v4750_v25 = vld [vmem:[%s5945_s3 + $0xe8] sm:$0xff]   ;;  %v766_v30 = vsel %vm4980_vm2, %v761_v24, %v765_v11  ;;  %v817_v63 = vrot.slane %v815_v55, 4  ;;  %v1071_v16 = vld [vmem:[%s4951_s8 + $0x14] sm:$0x1]  ;;  %v1075_v45 = vld [vmem:[%s4951_s8 + $0x24] sm:$0xe] }
  0x36   : > { %4469 = vmatprep.subr.bf16.mxu1 %v4744_v40  ;;  %v3942_v23 = vcombine.low %v742_v18, %v752_v19  ;;  %v823_v0 = vrot.slane %v821_v56, 5  ;;  %v808_v3 = vor.u32 %v807_v60, %v804_v59  ;;  %v1119_v10 = vrot.slane %v1067_v4, 5  ;;  %v1077_v47 = vld [vmem:[%s4951_s8 + $0x2c] sm:$0x1]  ;;  %v4761_v59 = vld [vmem:[%s4951_s8 + $0x24] sm:$0xff]  }
  0x37   : > { %4438 = vmatpush3.bf16.msra.mxu0 %v4739_v34  ;;  %v771_v26 = vrot.slane %v770_v20, 4  ;;  %v787_v34 = vshll.u32 %v625_v29, 16  ;;  %v818_v9 = vor.u32 %v817_v63, %v813_v62  ;;  %v1136_v44 = vrot.slane %v1074_v39, 5  ;;  %v4760_v56 = vld [vmem:[%s5945_s3 + $0x148] sm:$0xff]   ;;  %v1078_v63 = vld [vmem:[%s4951_s8 + $0x30] sm:$0xe] }
  0x38   : > { %4439 = vmatprep.subr.bf16.mxu0 %v4743_v46  ;;  %4423 = vmatprep.mubr.bf16.mxu1 %v3942_v23  ;;  %v809_v15 = vrot.slane %v808_v3, 4  ;;  %v4755_v23 = vld [vmem:[%s4951_s8 + $0xc] sm:$0xff]   ;;  %v1143_v52 = vrot.slane %v1077_v47, 5  ;;  %v1079_v1 = vld [vmem:[%s4951_s8 + $0x34] sm:$0xf]  ;;  %v3958_v3 = vrot.slane %v1078_v63, 9 }
  0x39   : > { %4470 = vmatpush3.bf16.msra.mxu1 %v4744_v40  ;;  %v776_v37 = vsel %vm4980_vm2, %v771_v26, %v775_v21  ;;  %v797_v40 = vshll.u32 %v626_v31, 16  ;;  %v819_v20 = vrot.slane %v818_v9, 4  ;;  %v1120_v21 = vsel %vm5089_vm5, %v3954_v7, %v1119_v10  ;;  %v4765_v4 = vld [vmem:[%s5945_s3 + $0x120] sm:$0xff]   ;;  %v4013_v63 = vld [vmem:[%s4951_s8 + $0x18] sm:$0xf] }
  0x3a   : > { %4392 = vmatmul.mubr.bf16.gmra.mrb[8].mxu0 %v4742_v61  ;;  %4471 = vmatprep.subr.bf16.mxu1 %v4746_v12  ;;  %v3943_v43 = vcombine.low %v766_v30, %v776_v37  ;;  %v785_v61 = vrot.slane %v784_v53, 4  ;;  %v814_v24 = vsel %vm4980_vm2, %v809_v15, %v813_v62  ;;  %v1073_v37 = vld [vmem:[%s4951_s8 + $0x1c] sm:$0xf]  ;;  %v4764_v62 = vld [vmem:[%s5945_s3 + $0x150] sm:$0xff]   ;;  %v1082_v9 = vld [vmem:[%s4951_s8 + $0x40] sm:$0xf] }
  0x3b   : > { %4440 = vmatpush3.bf16.msra.mxu0 %v4743_v46  ;;  %4395 = vmatprep.mubr.bf16.mxu0 %v4747_v13  ;;  %v789_v46 = vrot.slane %v787_v34, 5  ;;  %v799_v50 = vrot.slane %v797_v40, 5  ;;  %v1070_v13 = vld [vmem:[%s4951_s8 + $0x10] sm:$0xf]  ;;  %v824_v28 = vsel %vm4980_vm2, %v819_v20, %v823_v0  ;;  %v4757_v34 = vld [vmem:[%s5945_s3 + $0x108] sm:$0xff]   ;;  %v4767_v20 = vld [vmem:[%s4951_s8 + $0x3c] sm:$0xff]  }
  0x3c   : > { %4441 = vmatprep.subr.bf16.mxu0 %v4745_v5  ;;  %4424 = vmatmul.mubr.bf16.gmra.mrb[8].mxu1 %v3943_v43  ;;  %v1126_v18 = vrot.slane %v1070_v13, 5  ;;  %v3945_v30 = vcombine.low %v814_v24, %v824_v28  ;;  %v1133_v43 = vrot.slane %v1073_v37, 5  ;;  %v4762_v0 = vld [vmem:[%s4951_s8 + $0x30] sm:$0xff]   ;;  %v4769_v24 = vld [vmem:[%s5945_s3 + $0x128] sm:$0xff]   ;;  %v1089_v37 = vld [vmem:[%s4951_s8 + $0x5c] sm:$0x1] }
  0x3d   : > { %4472 = vmatpush3.bf16.msra.mxu1 %v4746_v12  ;;  %v794_v58 = vor.u32 %v793_v49, %v789_v46  ;;  %v790_v8 = vsel %vm4980_vm2, %v785_v61, %v789_v46  ;;  %v1069_v12 = vld [vmem:[%s4951_s8 + $0xc] sm:$0xe]  ;;  %v1076_v46 = vld [vmem:[%s4951_s8 + $0x28] sm:$0xf]  ;;  %v4763_v61 = vld [vmem:[%s5945_s3 + $0x118] sm:$0xff]  }
  0x3e   : > { %4473 = vmatprep.subr.bf16.mxu1 %v4750_v25  ;;  %v3955_v17 = vrot.slane %v1069_v12, 9  ;;  %v1128_v26 = vrot.slane %v1126_v18, 4  ;;  %v1140_v49 = vrot.slane %v1076_v46, 5  ;;  %v1135_v51 = vrot.slane %v1133_v43, 4  ;;  %v1084_v28 = vld [vmem:[%s4951_s8 + $0x48] sm:$0xe] }
  0x3f   : > { %4442 = vmatpush3.bf16.msra.mxu0 %v4745_v5  ;;  %v795_v2 = vrot.slane %v794_v58, 4  ;;  %v1068_v5 = vld [vmem:[%s4951_s8 + $0x8] sm:$0x1]  ;;  %v1154_v12 = vrot.slane %v1082_v9, 5  ;;  %v1737_v9 = vshrl.u32 %v4013_v63, 16 }
  0x40   : > { %4443 = vmatprep.subr.bf16.mxu0 %v4749_v22  ;;  %v1122_v11 = vrot.slane %v1068_v5, 5  ;;  %v1142_v54 = vrot.slane %v1140_v49, 4  ;;  %v1137_v55 = vsel %vm5089_vm5, %v1135_v51, %v1136_v44  ;;  %v1147_v5 = vrot.slane %v1079_v1, 5  ;;  %v4772_v46 = vld [vmem:[%s5945_s3 + $0x168] sm:$0xff]  }
  0x41   : > { %4474 = vmatpush3.bf16.msra.mxu1 %v4750_v25  ;;  %v800_v14 = vsel %vm4980_vm2, %v795_v2, %v799_v50  ;;  %v1127_v25 = vsel %vm5089_vm5, %v3955_v17, %v1126_v18  ;;  %v1080_v2 = vld [vmem:[%s4951_s8 + $0x38] sm:$0x1]  ;;  %v1156_v17 = vrot.slane %v1154_v12, 4 }
  0x42   : > { %4396 = vmatmul.mubr.bf16.gmra.mrb[12].mxu0 %v4748_v27  ;;  %4475 = vmatprep.subr.bf16.mxu1 %v4752_v36  ;;  %v3944_v19 = vcombine.low %v790_v8, %v800_v14  ;;  %v1129_v27 = vrot.slane %v1071_v16, 5  ;;  %v1144_v58 = vsel %vm5089_vm5, %v1142_v54, %v1143_v52  ;;  %v1150_v7 = vrot.slane %v1080_v2, 5  ;;  %v1081_v8 = vld [vmem:[%s4951_s8 + $0x3c] sm:$0xe]  ;;  %v4774_v52 = vld [vmem:[%s4951_s8 + $0x60] sm:$0xff]   ;;  %v4776_v54 = vld [vmem:[%s5945_s3 + $0x170] sm:$0xff]  }
  0x43   : > { %4444 = vmatpush3.bf16.msra.mxu0 %v4749_v22  ;;  %v1121_v22 = vrot.slane %v1119_v10, 4  ;;  %v1083_v10 = vld [vmem:[%s4951_s8 + $0x44] sm:$0x1]  ;;  %v1148_v13 = vsel %vm5089_vm5, %v3958_v3, %v1147_v5  ;;  %v1149_v14 = vrot.slane %v1147_v5, 4  ;;  %v4766_v18 = vld [vmem:[%s5945_s3 + $0x158] sm:$0xff]  }
  0x44   : > { %4445 = vmatprep.subr.bf16.mxu0 %v4751_v35  ;;  %4427 = vmatprep.mubr.bf16.mxu1 %v3944_v19  ;;  %v1130_v32 = vsel %vm5089_vm5, %v1128_v26, %v1129_v27  ;;  %v1157_v15 = vrot.slane %v1083_v10, 5  ;;  %v4768_v26 = vld [vmem:[%s4951_s8 + $0x48] sm:$0xff]   ;;  %v4770_v27 = vld [vmem:[%s5945_s3 + $0x160] sm:$0xff]   ;;  %v4014_v3 = vld [vmem:[%s4951_s8 + $0x1c] sm:$0xf] }
  0x45   : > { %4476 = vmatpush3.bf16.msra.mxu1 %v4752_v36  ;;  %v1123_v29 = vsel %vm5089_vm5, %v1121_v22, %v1122_v11  ;;  %v3963_v33 = vcombine.low %v1127_v25, %v1130_v32  ;;  %v1072_v36 = vld [vmem:[%s4951_s8 + $0x18] sm:$0xe]  ;;  %v3959_v11 = vrot.slane %v1081_v8, 9  ;;  %v1151_v19 = vsel %vm5089_vm5, %v1149_v14, %v1150_v7  ;;  %v4771_v32 = vld [vmem:[%s5945_s3 + $0x130] sm:$0xff]   ;;  %v5232_v14 = vld [vmem:[%s5945_s3 + $0x180] sm:$0xff]  }
  0x46   : > { %4477 = vmatprep.subr.bf16.mxu1 %v4753_v48  ;;  %v3962_v31 = vcombine.low %v1120_v21, %v1123_v29  ;;  %4428 = vmatmul.mubr.bf16.gmra.mrb[12].mxu1 %v3945_v30  ;;  %v3956_v40 = vrot.slane %v1072_v36, 9  ;;  %v3966_v21 = vcombine.low %v1148_v13, %v1151_v19  ;;  %v1158_v22 = vsel %vm5089_vm5, %v1156_v17, %v1157_v15  ;;  %v1085_v29 = vld [vmem:[%s4951_s8 + $0x4c] sm:$0xf]  ;;  %v1086_v30 = vld [vmem:[%s4951_s8 + $0x50] sm:$0x1] }
  0x47   : > { %4446 = vmatpush3.bf16.msra.mxu0 %v4751_v35  ;;  %v4758_v35 = vld [vmem:[%s5945_s3 + $0x140] sm:$0xff]   ;;  %4479 = vmatprep.mubr.bf16.mxu1 %v4755_v23  ;;  %v1155_v16 = vsel %vm5089_vm5, %v3959_v11, %v1154_v12  ;;  %v4850_v25 = vmov 0.0   ;;  %v1088_v36 = vld [vmem:[%s4951_s8 + $0x58] sm:$0xf]  ;;  %v1740_v11 = vshll.u32 %v4013_v63, 16  ;;  %v1746_v12 = vshll.u32 %v4014_v3, 16 }
  0x48   : > { %4495 = vmatprep.subr.bf16.mxu0 %v4754_v57  ;;  %4447 = vmatprep.mubr.bf16.mxu0 %v3962_v31  ;;  %v1134_v50 = vsel %vm5089_vm5, %v3956_v40, %v1133_v43  ;;  %v3967_v23 = vcombine.low %v1155_v16, %v1158_v22  ;;  %319 = vst.msk [vmem:[#allocation2 + $0x10] sm:$0xff] %vm316_vm6, %v4850_v25  ;;  %317 = vst.msk [vmem:[#allocation2] sm:$0xff] %vm316_vm6, %v4850_v25  ;;  %v3960_v31 = vrot.slane %v1084_v28, 9  ;;  %v4050_v22 = vld [vmem:[%s4951_s8 + $0xc] sm:$0xe] }
  0x49   : > { %4478 = vmatpush3.bf16.msra.mxu1 %v4753_v48  ;;  %v3957_v48 = vrot.slane %v1075_v45, 9  ;;  %318 = vst.msk [vmem:[#allocation2 + $0x8] sm:$0xff] %vm316_vm6, %v4850_v25  ;;  %320 = vst.msk [vmem:[#allocation2 + $0x18] sm:$0xff] %vm316_vm6, %v4850_v25  ;;  %v1168_v40 = vrot.slane %v1088_v36, 5  ;;  %v1171_v43 = vrot.slane %v1089_v37, 5  ;;  %v1750_v13 = vshrl.u32 %v4014_v3, 16 }
  0x4a   : > { %4448 = vmatmul.mubr.bf16.vlgmr.msra.gmra.mrb[16].mxu0 %v3963_v33  ;;  %4527 = vmatprep.subr.bf16.mxu1 %v4758_v35  ;;  %321 = vst.msk [vmem:[#allocation2 + $0x20] sm:$0xff] %vm316_vm6, %v4850_v25  ;;  %322 = vst.msk [vmem:[#allocation2 + $0x28] sm:$0xff] %vm316_vm6, %v4850_v25  ;;  %v1161_v33 = vrot.slane %v1085_v29, 5  ;;  %v1739_v16 = vrot.slane %v1737_v9, 4  ;;  %v1742_v19 = vrot.slane %v1740_v11, 5 }
  0x4b   : > { %4496 = vmatpush3.bf16.msra.mxu0 %v4754_v57  ;;  %v1141_v53 = vsel %vm5089_vm5, %v3957_v48, %v1140_v49  ;;  %v3964_v57 = vcombine.low %v1134_v50, %v1137_v55  ;;  %323 = vst.msk [vmem:[#allocation2 + $0x30] sm:$0xff] %vm316_vm6, %v4850_v25  ;;  %324 = vst.msk [vmem:[#allocation2 + $0x38] sm:$0xff] %vm316_vm6, %v4850_v25  ;;  %v1170_v45 = vrot.slane %v1168_v40, 4  ;;  %v4773_v48 = vld [vmem:[%s4951_s8 + $0x54] sm:$0xff]   ;;  %v4010_v55 = vld [vmem:[%s4951_s8 + $0xc] sm:$0xf] }
  0x4c   : > { %4497 = vmatprep.subr.bf16.mxu0 %v4757_v34  ;;  %v3965_v60 = vcombine.low %v1141_v53, %v1144_v58  ;;  %325 = vst.msk [vmem:[#allocation2 + $0x40] sm:$0xff] %vm316_vm6, %v4850_v25  ;;  %326 = vst.msk [vmem:[#allocation2 + $0x48] sm:$0xff] %vm316_vm6, %v4850_v25  ;;  %v4775_v53 = vld [vmem:[%s5945_s3 + $0x138] sm:$0xff]   ;;  %v1713_v58 = vshrl.u32 %v4010_v55, 16  ;;  %v1743_v28 = vor.u32 %v1742_v19, %v1739_v16  ;;  %v4055_v36 = vld [vmem:[%s4951_s8 + $0x20] sm:$0x1] }
  0x4d   : > { %4451 = vmatprep.mubr.bf16.mxu0 %v3964_v57  ;;  %327 = vst.msk [vmem:[#allocation2 + $0x50] sm:$0xff] %vm316_vm6, %v4850_v25  ;;  %328 = vst.msk [vmem:[#allocation2 + $0x58] sm:$0xff] %vm316_vm6, %v4850_v25  ;;  %v1172_v50 = vsel %vm5089_vm5, %v1170_v45, %v1171_v43  ;;  %v4012_v57 = vld [vmem:[%s4951_s8 + $0x14] sm:$0x1]  ;;  %v4019_v63 = vld [vmem:[%s4951_s8 + $0x30] sm:$0xf] }
  0x4e   : > { %4480 = vmatmul.mubr.bf16.vlgmr.msra.gmra.mrb[16].mxu1 %v4756_v42  ;;  %329 = vst.msk [vmem:[#allocation2 + $0x60] sm:$0xff] %vm316_vm6, %v4850_v25  ;;  %330 = vst.msk [vmem:[#allocation2 + $0x68] sm:$0xff] %vm316_vm6, %v4850_v25  ;;  %v1163_v42 = vrot.slane %v1161_v33, 4  ;;  %v1715_v1 = vrot.slane %v1713_v58, 4  ;;  %v1788_v11 = vshll.u32 %v4019_v63, 16 }
  0x4f   : > { %4498 = vmatpush3.bf16.msra.mxu0 %v4757_v34  ;;  %4528 = vmatpush3.bf16.msra.mxu1 %v4758_v35  ;;  %331 = vst.msk [vmem:[#allocation2 + $0x70] sm:$0xff] %vm316_vm6, %v4850_v25  ;;  %332 = vst.msk [vmem:[#allocation2 + $0x78] sm:$0xff] %vm316_vm6, %v4850_v25  ;;  %v1164_v34 = vrot.slane %v1086_v30, 5  ;;  %v1087_v35 = vld [vmem:[%s4951_s8 + $0x54] sm:$0xe]  ;;  %v4074_v30 = vrot.slane %v4050_v22, 9 }
  0x50   : > { %4499 = vmatprep.subr.bf16.mxu0 %v4759_v41  ;;  %4529 = vmatprep.subr.bf16.mxu1 %v4760_v56  ;;  %v3961_v39 = vrot.slane %v1087_v35, 9  ;;  %v4051_v25 = vld [vmem:[%s4951_s8 + $0x10] sm:$0xf]  ;;  %v1790_v19 = vrot.slane %v1788_v11, 5 }
  0x51   : > { %4483 = vmatprep.mubr.bf16.mxu1 %v4761_v59  ;;  %v1165_v47 = vsel %vm5089_vm5, %v1163_v42, %v1164_v34  ;;  %v1716_v59 = vshll.u32 %v4010_v55, 16  ;;  %v2195_v34 = vrot.slane %v4051_v25, 5  ;;  %v4017_v55 = vld [vmem:[%s4951_s8 + $0x28] sm:$0xf]  ;;  %v4784_v25 = vld [vmem:[%s5945_s3 + $0x1d0] sm:$0xff]  }
  0x52   : > { %4452 = vmatmul.mubr.bf16.gmra.mrb[20].mxu0 %v3965_v60  ;;  %v1169_v44 = vsel %vm5089_vm5, %v3961_v39, %v1168_v40  ;;  %v4780_v39 = vld [vmem:[%s5945_s3 + $0x1c0] sm:$0xff]  }
  0x53   : > { %4500 = vmatpush3.bf16.msra.mxu0 %v4759_v41  ;;  %4530 = vmatpush3.bf16.msra.mxu1 %v4760_v56  ;;  %v1162_v41 = vsel %vm5089_vm5, %v3960_v31, %v1161_v33  ;;  %v3969_v51 = vcombine.low %v1169_v44, %v1172_v50  ;;  %v4011_v56 = vld [vmem:[%s4951_s8 + $0x10] sm:$0xf]  ;;  %v1718_v2 = vrot.slane %v1716_v59, 5  ;;  %v4053_v31 = vld [vmem:[%s4951_s8 + $0x18] sm:$0xe]  ;;  %v2196_v44 = vsel %vm5089_vm5, %v4074_v30, %v2195_v34 }
  0x54   : > { %4501 = vmatprep.subr.bf16.mxu0 %v4763_v61  ;;  %4531 = vmatprep.subr.bf16.mxu1 %v4764_v62  ;;  %v3968_v49 = vcombine.low %v1162_v41, %v1165_v47  ;;  %v1722_v60 = vshll.u32 %v4011_v56, 16  ;;  %v4075_v37 = vrot.slane %v4053_v31, 9  ;;  %v1744_v41 = vrot.slane %v1743_v28, 4  ;;  %v4057_v30 = vld [vmem:[%s4951_s8 + $0x28] sm:$0xf] }
  0x55   : > { %4455 = vmatprep.mubr.bf16.mxu0 %v3966_v21  ;;  %v1719_v10 = vor.u32 %v1718_v2, %v1715_v1  ;;  %v1752_v21 = vrot.slane %v1750_v13, 4  ;;  %v2197_v45 = vrot.slane %v2195_v34, 4 }
  0x56   : > { %4484 = vmatmul.mubr.bf16.gmra.mrb[20].mxu1 %v4762_v0  ;;  %v4777_v0 = vld [vmem:[%s5945_s3 + $0x178] sm:$0xff]   ;;  %v1724_v5 = vrot.slane %v1722_v60, 5 }
  0x57   : > { %4502 = vmatpush3.bf16.msra.mxu0 %v4763_v61  ;;  %4532 = vmatpush3.bf16.msra.mxu1 %v4764_v62  ;;  %v1726_v61 = vshrl.u32 %v4011_v56, 16  ;;  %v1732_v62 = vshll.u32 %v4012_v57, 16  ;;  %v4018_v56 = vld [vmem:[%s4951_s8 + $0x2c] sm:$0x1] }
  0x58   : > { %4503 = vmatprep.subr.bf16.mxu0 %v4765_v4  ;;  %4487 = vmatprep.mubr.bf16.mxu1 %v4767_v20  ;;  %v1748_v20 = vrot.slane %v1746_v12, 5 }
  0x59   : > { %4533 = vmatprep.subr.bf16.mxu1 %v4766_v18  ;;  %v1728_v7 = vrot.slane %v1726_v61, 4  ;;  %v1734_v8 = vrot.slane %v1732_v62, 5  ;;  %v1770_v61 = vshll.u32 %v4017_v55, 16  ;;  %v1774_v62 = vshrl.u32 %v4017_v55, 16  ;;  %v4022_v55 = vld [vmem:[%s4951_s8 + $0x3c] sm:$0xf] }
  0x5a   : > { %4456 = vmatmul.mubr.bf16.gmra.mrb[24].mxu0 %v3967_v23  ;;  %v1753_v29 = vor.u32 %v1752_v21, %v1748_v20  ;;  %v1749_v47 = vsel %vm4980_vm2, %v1744_v41, %v1748_v20 }
  0x5b   : > { %4504 = vmatpush3.bf16.msra.mxu0 %v4765_v4  ;;  %4534 = vmatpush3.bf16.msra.mxu1 %v4766_v18  ;;  %v4015_v4 = vld [vmem:[%s4951_s8 + $0x20] sm:$0x1]  ;;  %v1729_v15 = vor.u32 %v1728_v7, %v1724_v5  ;;  %v1720_v18 = vrot.slane %v1719_v10, 4  ;;  %v4782_v7 = vld [vmem:[%s5945_s3 + $0x1c8] sm:$0xff]   ;;  %v1776_v9 = vrot.slane %v1774_v62, 4  ;;  %v1785_v10 = vshrl.u32 %v4019_v63, 16 }
  0x5c   : > { %4505 = vmatprep.subr.bf16.mxu0 %v4769_v24  ;;  %4535 = vmatprep.subr.bf16.mxu1 %v4770_v27  ;;  %v1756_v17 = vshll.u32 %v4015_v4, 16  ;;  %v1754_v42 = vrot.slane %v1753_v29, 4  ;;  %v1780_v4 = vshll.u32 %v4018_v56, 16  ;;  %v4056_v29 = vld [vmem:[%s4951_s8 + $0x24] sm:$0xe] }
  0x5d   : > { %4459 = vmatprep.mubr.bf16.mxu0 %v3968_v49  ;;  %v1730_v23 = vrot.slane %v1729_v15, 4  ;;  %v4076_v34 = vrot.slane %v4056_v29, 9  ;;  %v4023_v56 = vld [vmem:[%s4951_s8 + $0x40] sm:$0xf]  ;;  %v4025_v62 = vld [vmem:[%s4951_s8 + $0x48] sm:$0xf] }
  0x5e   : > { %4488 = vmatmul.mubr.bf16.gmra.mrb[24].mxu1 %v4768_v26  ;;  %v4052_v26 = vld [vmem:[%s4951_s8 + $0x14] sm:$0x1]  ;;  %v1782_v13 = vrot.slane %v1780_v4, 5  ;;  %v4788_v63 = vld [vmem:[%s5945_s3 + $0x1e0] sm:$0xff]   ;;  %v4026_v4 = vld [vmem:[%s4951_s8 + $0x4c] sm:$0xf] }
  0x5f   : > { %4506 = vmatpush3.bf16.msra.mxu0 %v4769_v24  ;;  %4536 = vmatpush3.bf16.msra.mxu1 %v4770_v27  ;;  %v1758_v24 = vrot.slane %v1756_v17, 5  ;;  %v1725_v27 = vsel %vm4980_vm2, %v1720_v18, %v1724_v5  ;;  %v1735_v33 = vsel %vm4980_vm2, %v1730_v23, %v1734_v8  ;;  %v2198_v35 = vrot.slane %v4052_v26, 5  ;;  %v4021_v5 = vld [vmem:[%s4951_s8 + $0x38] sm:$0x1]  ;;  %v4781_v17 = vld [vmem:[%s5945_s3 + $0x190] sm:$0xff]  }
  0x60   : > { %4507 = vmatprep.subr.bf16.mxu0 %v4771_v32  ;;  %4537 = vmatprep.subr.bf16.mxu1 %v4772_v46  ;;  %v4034_v40 = vcombine.low %v1725_v27, %v1735_v33  ;;  %v1772_v8 = vrot.slane %v1770_v61, 5  ;;  %v1804_v20 = vshll.u32 %v4021_v5, 16  ;;  %v4058_v33 = vld [vmem:[%s4951_s8 + $0x2c] sm:$0x1]  ;;  %v4024_v61 = vld [vmem:[%s4951_s8 + $0x44] sm:$0x1] }
  0x61   : > { %4491 = vmatprep.mubr.bf16.mxu1 %v4773_v48  ;;  %v1759_v48 = vsel %vm4980_vm2, %v1754_v42, %v1758_v24  ;;  %v4783_v24 = vld [vmem:[%s5945_s3 + $0x198] sm:$0xff]   ;;  %v2212_v41 = vrot.slane %v4058_v33, 5  ;;  %v4060_v42 = vld [vmem:[%s4951_s8 + $0x34] sm:$0xf] }
  0x62   : > { %4460 = vmatmul.mubr.bf16.gmra.mrb[28].mxu0 %v3969_v51  ;;  %v4779_v51 = vld [vmem:[%s5945_s3 + $0x188] sm:$0xff]   ;;  %v1777_v18 = vor.u32 %v1776_v9, %v1772_v8  ;;  %v1806_v28 = vrot.slane %v1804_v20, 5  ;;  %v1833_v9 = vshrl.u32 %v4025_v62, 16  ;;  %v4789_v29 = vld [vmem:[%s5945_s3 + $0x1b0] sm:$0xff]  }
  0x63   : > { %4508 = vmatpush3.bf16.msra.mxu0 %v4771_v32  ;;  %4538 = vmatpush3.bf16.msra.mxu1 %v4772_v46  ;;  %v4054_v32 = vld [vmem:[%s4951_s8 + $0x1c] sm:$0xf]  ;;  %v2205_v46 = vrot.slane %v4055_v36, 5  ;;  %v4059_v36 = vld [vmem:[%s4951_s8 + $0x30] sm:$0xe] }
  0x64   : > { %4509 = vmatprep.subr.bf16.mxu0 %v4775_v53  ;;  %4539 = vmatprep.subr.bf16.mxu1 %v4776_v54  ;;  %v2202_v43 = vrot.slane %v4054_v32, 5  ;;  %v1778_v26 = vrot.slane %v1777_v18, 4 }
  0x65   : > { %4511 = vmatprep.mubr.bf16.mxu0 %v4034_v40 }
  0x66   : > { %4492 = vmatmul.mubr.bf16.gmra.mrb[28].mxu1 %v4774_v52  ;;  %v2203_v49 = vsel %vm5089_vm5, %v4075_v37, %v2202_v43  ;;  %v2204_v50 = vrot.slane %v2202_v43, 4  ;;  %v4016_v52 = vld [vmem:[%s4951_s8 + $0x24] sm:$0xf]  ;;  %v4786_v37 = vld [vmem:[%s5945_s3 + $0x1d8] sm:$0xff]  }
  0x67   : > { %4510 = vmatpush3.bf16.msra.mxu0 %v4775_v53  ;;  %4540 = vmatpush3.bf16.msra.mxu1 %v4776_v54  ;;  %v4035_v53 = vcombine.low %v1749_v47, %v1759_v48  ;;  %v2199_v54 = vsel %vm5089_vm5, %v2197_v45, %v2198_v35  ;;  %v1761_v57 = vshrl.u32 %v4016_v52, 16  ;;  %v1764_v58 = vshll.u32 %v4016_v52, 16  ;;  %v4061_v43 = vld [vmem:[%s4951_s8 + $0x38] sm:$0x1]  ;;  %v4785_v52 = vld [vmem:[%s5945_s3 + $0x1a0] sm:$0xff]  }
  0x68   : > { %4541 = vmatprep.subr.bf16.mxu1 %v4777_v0  ;;  %4559 = vmatprep.subr.bf16.mxu0 %v5232_v14  ;;  %v4082_v59 = vcombine.low %v2196_v44, %v2199_v54  ;;  %v2206_v60 = vsel %vm5089_vm5, %v2204_v50, %v2205_v46  ;;  %v2209_v35 = vrot.slane %v4057_v30, 5  ;;  %v2216_v50 = vrot.slane %v4060_v42, 5 }
  0x69   : > { %v4083_v1 = vcombine.low %v2203_v49, %v2206_v60  ;;  %v1763_v2 = vrot.slane %v1761_v57, 4  ;;  %v1766_v3 = vrot.slane %v1764_v58, 5  ;;  %v4077_v49 = vrot.slane %v4059_v36, 9 }
  0x6a   : > { %4512 = vmatmul.mubr.bf16.vlgmr.msra.gmra.mrb[32].mxu0 %v4035_v53  ;;  %4543 = vmatprep.mubr.bf16.mxu1 %v4082_v59  ;;  %v2210_v46 = vsel %vm5089_vm5, %v4076_v34, %v2209_v35  ;;  %v2211_v47 = vrot.slane %v2209_v35, 4  ;;  %v2218_v60 = vrot.slane %v2216_v50, 4  ;;  %v4064_v34 = vld [vmem:[%s4951_s8 + $0x44] sm:$0x1] }
  0x6b   : > { %4542 = vmatpush3.bf16.msra.mxu1 %v4777_v0  ;;  %v4020_v0 = vld [vmem:[%s4951_s8 + $0x34] sm:$0xf]  ;;  %4560 = vmatpush3.bf16.msra.mxu0 %v5232_v14  ;;  %v1767_v12 = vor.u32 %v1766_v3, %v1763_v2  ;;  %v1787_v14 = vrot.slane %v1785_v10, 4  ;;  %v2217_v59 = vsel %vm5089_vm5, %v4077_v49, %v2216_v50  ;;  %v1818_v2 = vshll.u32 %v4023_v56, 16 }
  0x6c   : > { %4591 = vmatprep.subr.bf16.mxu1 %v4780_v39  ;;  %4561 = vmatprep.subr.bf16.mxu0 %v4779_v51  ;;  %v1794_v15 = vshll.u32 %v4020_v0, 16  ;;  %v1798_v16 = vshrl.u32 %v4020_v0, 16  ;;  %v2213_v54 = vsel %vm5089_vm5, %v2211_v47, %v2212_v41  ;;  %v1809_v0 = vshrl.u32 %v4022_v55, 16 }
  0x6d   : > { %v1768_v21 = vrot.slane %v1767_v12, 4  ;;  %v1791_v27 = vor.u32 %v1790_v19, %v1787_v14  ;;  %v4084_v58 = vcombine.low %v2210_v46, %v2213_v54  ;;  %v1822_v3 = vshrl.u32 %v4023_v56, 16  ;;  %v4791_v56 = vld [vmem:[%s5945_s3 + $0x1b8] sm:$0xff]  }
  0x6e   : > { %4544 = vmatmul.mubr.bf16.vlgmr.msra.gmra.mrb[32].mxu1 %v4083_v1  ;;  %v1796_v22 = vrot.slane %v1794_v15, 5  ;;  %v1800_v23 = vrot.slane %v1798_v16, 4  ;;  %v1812_v1 = vshll.u32 %v4022_v55, 16  ;;  %v1836_v10 = vshll.u32 %v4025_v62, 16  ;;  %v4787_v16 = vld [vmem:[%s5945_s3 + $0x1a8] sm:$0xff]  }
  0x6f   : > { %4592 = vmatpush3.bf16.msra.mxu1 %v4780_v39  ;;  %4562 = vmatpush3.bf16.msra.mxu0 %v4779_v51  ;;  %v1773_v31 = vsel %vm4980_vm2, %v1768_v21, %v1772_v8  ;;  %v1783_v39 = vsel %vm4980_vm2, %v1778_v26, %v1782_v13  ;;  %v1792_v40 = vrot.slane %v1791_v27, 4  ;;  %v2219_v51 = vrot.slane %v4061_v43, 5  ;;  %v4027_v8 = vld [vmem:[%s4951_s8 + $0x50] sm:$0x1]  ;;  %v4062_v27 = vld [vmem:[%s4951_s8 + $0x3c] sm:$0xe] }
  0x70   : > { %4593 = vmatprep.subr.bf16.mxu1 %v4782_v7  ;;  %v1801_v32 = vor.u32 %v1800_v23, %v1796_v22  ;;  %4563 = vmatprep.subr.bf16.mxu0 %v4781_v17  ;;  %v4036_v44 = vcombine.low %v1773_v31, %v1783_v39  ;;  %v1811_v12 = vrot.slane %v1809_v0, 4  ;;  %v1814_v13 = vrot.slane %v1812_v1, 5  ;;  %v4030_v0 = vld [vmem:[%s4951_s8 + $0x5c] sm:$0x1]  ;;  %v4031_v1 = vld [vmem:[%s4951_s8 + $0x60] sm:$0xf] }
  0x71   : > { %v1797_v48 = vsel %vm4980_vm2, %v1792_v40, %v1796_v22  ;;  %4547 = vmatprep.mubr.bf16.mxu1 %v4084_v58  ;;  %v2220_v5 = vsel %vm5089_vm5, %v2218_v60, %v2219_v51  ;;  %v1820_v15 = vrot.slane %v1818_v2, 5  ;;  %v1835_v14 = vrot.slane %v1833_v9, 4  ;;  %v4065_v40 = vld [vmem:[%s4951_s8 + $0x48] sm:$0xe]  ;;  %v4792_v51 = vld [vmem:[%s5945_s3 + $0x1f0] sm:$0xff]  }
  0x72   : > { %v1802_v45 = vrot.slane %v1801_v32, 4  ;;  %4515 = vmatprep.mubr.bf16.mxu0 %v4036_v44  ;;  %v4085_v11 = vcombine.low %v2217_v59, %v2220_v5  ;;  %v1838_v19 = vrot.slane %v1836_v10, 5  ;;  %v1815_v20 = vor.u32 %v1814_v13, %v1811_v12  ;;  %v4066_v44 = vld [vmem:[%s4951_s8 + $0x4c] sm:$0xf]  ;;  %v4028_v58 = vld [vmem:[%s4951_s8 + $0x54] sm:$0xf] }
  0x73   : > { %4594 = vmatpush3.bf16.msra.mxu1 %v4782_v7  ;;  %4564 = vmatpush3.bf16.msra.mxu0 %v4781_v17  ;;  %v1828_v7 = vshll.u32 %v4024_v61, 16  ;;  %v1824_v17 = vrot.slane %v1822_v3, 4  ;;  %v1842_v21 = vshll.u32 %v4026_v4, 16  ;;  %v1846_v22 = vshrl.u32 %v4026_v4, 16  ;;  %v4029_v59 = vld [vmem:[%s4951_s8 + $0x58] sm:$0xf] }
  0x74   : > { %4595 = vmatprep.subr.bf16.mxu1 %v4784_v25  ;;  %v1807_v53 = vsel %vm4980_vm2, %v1802_v45, %v1806_v28  ;;  %4565 = vmatprep.subr.bf16.mxu0 %v4783_v24  ;;  %v1852_v23 = vshll.u32 %v4027_v8, 16  ;;  %v1839_v26 = vor.u32 %v1838_v19, %v1835_v14  ;;  %v4063_v28 = vld [vmem:[%s4951_s8 + $0x40] sm:$0xf]  ;;  %v1816_v30 = vrot.slane %v1815_v20, 4  ;;  %v4067_v45 = vld [vmem:[%s4951_s8 + $0x50] sm:$0x1] }
  0x75   : > { %v4037_v57 = vcombine.low %v1797_v48, %v1807_v53  ;;  %v1830_v18 = vrot.slane %v1828_v7, 5  ;;  %v1844_v31 = vrot.slane %v1842_v21, 5  ;;  %v1848_v32 = vrot.slane %v1846_v22, 4  ;;  %v4032_v7 = vld [vmem:[%s4951_s8 + $0x64] sm:$0xf]  ;;  %v4795_v8 = vld [vmem:[%s5945_s3 + $0x1f8] sm:$0xff]  }
  0x76   : > { %4548 = vmatmul.mubr.bf16.gmra.mrb[36].mxu1 %v4085_v11  ;;  %v1854_v33 = vrot.slane %v1852_v23, 5  ;;  %v1840_v36 = vrot.slane %v1839_v26, 4  ;;  %v2223_v39 = vrot.slane %v4063_v28, 5  ;;  %v1821_v41 = vsel %vm4980_vm2, %v1816_v30, %v1820_v15  ;;  %v4033_v12 = vld [vmem:[%s4951_s8 + $0x68] sm:$0x1]  ;;  %v5368_v14 = vld [vmem:[%s5945_s3 + $0x200] sm:$0xff]  }
  0x77   : > { %4596 = vmatpush3.bf16.msra.mxu1 %v4784_v25  ;;  %4516 = vmatmul.mubr.bf16.gmra.mrb[36].mxu0 %v4037_v57  ;;  %v1825_v25 = vor.u32 %v1824_v17, %v1820_v15  ;;  %v1849_v42 = vor.u32 %v1848_v32, %v1844_v31  ;;  %v2226_v43 = vrot.slane %v4064_v34, 5  ;;  %v4079_v46 = vrot.slane %v4065_v40, 9 }
  0x78   : > { %4597 = vmatprep.subr.bf16.mxu1 %v4786_v37  ;;  %4566 = vmatpush3.bf16.msra.mxu0 %v4783_v24  ;;  %v4790_v24 = vld [vmem:[%s5945_s3 + $0x1e8] sm:$0xff]   ;;  %v1845_v48 = vsel %vm4980_vm2, %v1840_v36, %v1844_v31  ;;  %v2225_v50 = vrot.slane %v2223_v39, 4  ;;  %v2230_v54 = vrot.slane %v4066_v44, 5  ;;  %v2233_v55 = vrot.slane %v4067_v45, 5  ;;  %v4070_v36 = vld [vmem:[%s4951_s8 + $0x5c] sm:$0x1] }
  0x79   : > { %4567 = vmatprep.subr.bf16.mxu0 %v4785_v52  ;;  %v1826_v35 = vrot.slane %v1825_v25, 4  ;;  %v1850_v53 = vrot.slane %v1849_v42, 4  ;;  %v1857_v3 = vshrl.u32 %v4028_v58, 16  ;;  %v1860_v4 = vshll.u32 %v4028_v58, 16  ;;  %v4071_v44 = vld [vmem:[%s4951_s8 + $0x60] sm:$0xe] }
  0x7a   : > { %v2227_v57 = vsel %vm5089_vm5, %v2225_v50, %v2226_v43  ;;  %v2231_v62 = vsel %vm5089_vm5, %v4079_v46, %v2230_v54  ;;  %v1866_v5 = vshll.u32 %v4029_v59, 16  ;;  %v1870_v10 = vshrl.u32 %v4029_v59, 16  ;;  %v4072_v45 = vld [vmem:[%s4951_s8 + $0x64] sm:$0xf]  ;;  %v4073_v50 = vld [vmem:[%s4951_s8 + $0x68] sm:$0x1] }
  0x7b   : > { %4598 = vmatpush3.bf16.msra.mxu1 %v4786_v37  ;;  %v4078_v37 = vrot.slane %v4062_v27, 9  ;;  %v1831_v47 = vsel %vm4980_vm2, %v1826_v35, %v1830_v18  ;;  %v1855_v60 = vsel %vm4980_vm2, %v1850_v53, %v1854_v33  ;;  %v1876_v11 = vshll.u32 %v4030_v0, 16  ;;  %v4069_v33 = vld [vmem:[%s4951_s8 + $0x58] sm:$0xf] }
  0x7c   : > { %4599 = vmatprep.subr.bf16.mxu1 %v4788_v63  ;;  %4568 = vmatpush3.bf16.msra.mxu0 %v4785_v52  ;;  %v4038_v52 = vcombine.low %v1821_v41, %v1831_v47  ;;  %v4039_v2 = vcombine.low %v1845_v48, %v1855_v60  ;;  %v1881_v13 = vshrl.u32 %v4031_v1, 16  ;;  %v1862_v17 = vrot.slane %v1860_v4, 5  ;;  %v4132_v4 = vld [vmem:[%s4951_s8 + $0x20] sm:$0x1] }
  0x7d   : > { %4569 = vmatprep.subr.bf16.mxu0 %v4787_v16  ;;  %v2224_v49 = vsel %vm5089_vm5, %v4078_v37, %v2223_v39  ;;  %v1868_v18 = vrot.slane %v1866_v5, 5  ;;  %v1872_v19 = vrot.slane %v1870_v10, 4  ;;  %v1884_v21 = vshll.u32 %v4031_v1, 16  ;;  %v4133_v10 = vld [vmem:[%s4951_s8 + $0x24] sm:$0xf] }
  0x7e   : > { %4519 = vmatprep.mubr.bf16.mxu0 %v4038_v52  ;;  %v4086_v61 = vcombine.low %v2224_v49, %v2227_v57  ;;  %v1883_v20 = vrot.slane %v1881_v13, 4  ;;  %v1890_v23 = vshll.u32 %v4032_v7, 16  ;;  %v1900_v25 = vshll.u32 %v4033_v12, 16  ;;  %v4134_v13 = vld [vmem:[%s4951_s8 + $0x28] sm:$0xf] }
  0x7f   : > { %4600 = vmatpush3.bf16.msra.mxu1 %v4788_v63  ;;  %v2232_v63 = vrot.slane %v2230_v54, 4  ;;  %4520 = vmatmul.mubr.bf16.gmra.mrb[40].mxu0 %v4039_v2  ;;  %v1873_v26 = vor.u32 %v1872_v19, %v1868_v18  ;;  %v1878_v27 = vrot.slane %v1876_v11, 5  ;;  %v1886_v28 = vrot.slane %v1884_v21, 5  ;;  %v4130_v2 = vld [vmem:[%s4951_s8 + $0x18] sm:$0xf]  ;;  %v4794_v11 = vld [vmem:[%s4951_s8 + $0x24] sm:$0xff]  }
  0x80   : > { %4601 = vmatprep.subr.bf16.mxu1 %v4790_v24  ;;  %4570 = vmatpush3.bf16.msra.mxu0 %v4787_v16  ;;  %v1859_v16 = vrot.slane %v1857_v3, 4  ;;  %v1892_v31 = vrot.slane %v1890_v23, 5  ;;  %v2237_v39 = vrot.slane %v4069_v33, 5  ;;  %v1902_v42 = vrot.slane %v1900_v25, 5  ;;  %v4131_v3 = vld [vmem:[%s4951_s8 + $0x1c] sm:$0xf] }
  0x81   : > { %4571 = vmatprep.subr.bf16.mxu0 %v4789_v29  ;;  %4551 = vmatprep.mubr.bf16.mxu1 %v4086_v61  ;;  %v2234_v9 = vsel %vm5089_vm5, %v2232_v63, %v2233_v55  ;;  %v1874_v34 = vrot.slane %v1873_v26, 4  ;;  %v1887_v35 = vor.u32 %v1886_v28, %v1883_v20  ;;  %v2240_v43 = vrot.slane %v4070_v36, 5  ;;  %v4798_v21 = vld [vmem:[%s4951_s8 + $0x30] sm:$0xff]   ;;  %v5406_v26 = vld [vmem:[%s5945_s3 + $0x208] sm:$0xff]  }
  0x82   : > { %v4087_v15 = vcombine.low %v2231_v62, %v2234_v9  ;;  %v1863_v22 = vor.u32 %v1862_v17, %v1859_v16  ;;  %v2239_v49 = vrot.slane %v2237_v39, 4  ;;  %v4081_v53 = vrot.slane %v4071_v44, 9  ;;  %v4793_v62 = vld [vmem:[%s4951_s8 + $0x18] sm:$0xff]  }
  0x83   : > { %4602 = vmatpush3.bf16.msra.mxu1 %v4790_v24  ;;  %v1894_v24 = vshrl.u32 %v4032_v7, 16  ;;  %v1879_v46 = vsel %vm4980_vm2, %v1874_v34, %v1878_v27  ;;  %v1888_v47 = vrot.slane %v1887_v35, 4  ;;  %v2244_v54 = vrot.slane %v4072_v45, 5  ;;  %v4138_v44 = vld [vmem:[%s4951_s8 + $0x38] sm:$0x1] }
  0x84   : > { %4603 = vmatprep.subr.bf16.mxu1 %v4792_v51  ;;  %4572 = vmatpush3.bf16.msra.mxu0 %v4789_v29  ;;  %v4068_v29 = vld [vmem:[%s4951_s8 + $0x54] sm:$0xe]  ;;  %v1864_v30 = vrot.slane %v1863_v22, 4  ;;  %v2247_v57 = vrot.slane %v4073_v50, 5  ;;  %v2789_v5 = vshrl.u32 %v4130_v2, 16  ;;  %v2792_v7 = vshll.u32 %v4130_v2, 16 }
  0x85   : > { %4573 = vmatprep.subr.bf16.mxu0 %v4791_v56  ;;  %4552 = vmatmul.mubr.bf16.gmra.mrb[40].mxu1 %v4087_v15  ;;  %v1896_v32 = vrot.slane %v1894_v24, 4  ;;  %v4080_v37 = vrot.slane %v4068_v29, 9  ;;  %v1893_v55 = vsel %vm4980_vm2, %v1888_v47, %v1892_v31  ;;  %v2245_v60 = vsel %vm5089_vm5, %v4081_v53, %v2244_v54  ;;  %v4135_v15 = vld [vmem:[%s4951_s8 + $0x2c] sm:$0x1] }
  0x86   : > { %v1869_v40 = vsel %vm4980_vm2, %v1864_v30, %v1868_v18  ;;  %v2246_v61 = vrot.slane %v2244_v54, 4  ;;  %v2802_v9 = vshrl.u32 %v4131_v3, 16  ;;  %v2808_v12 = vshll.u32 %v4132_v4, 16 }
  0x87   : > { %4604 = vmatpush3.bf16.msra.mxu1 %v4792_v51  ;;  %v1897_v41 = vor.u32 %v1896_v32, %v1892_v31  ;;  %v2238_v48 = vsel %vm5089_vm5, %v4080_v37, %v2237_v39  ;;  %v4040_v51 = vcombine.low %v1869_v40, %v1879_v46  ;;  %v2813_v16 = vshrl.u32 %v4133_v10, 16  ;;  %v4136_v39 = vld [vmem:[%s4951_s8 + $0x30] sm:$0xf]  ;;  %v4137_v40 = vld [vmem:[%s4951_s8 + $0x34] sm:$0xf] }
  0x88   : > { %4605 = vmatprep.subr.bf16.mxu1 %v4795_v8  ;;  %4574 = vmatpush3.bf16.msra.mxu0 %v4791_v56  ;;  %v2241_v56 = vsel %vm5089_vm5, %v2239_v49, %v2240_v43  ;;  %v2248_v0 = vsel %vm5089_vm5, %v2246_v61, %v2247_v57  ;;  %v2791_v17 = vrot.slane %v2789_v5, 4  ;;  %v2794_v18 = vrot.slane %v2792_v7, 5  ;;  %v4139_v46 = vld [vmem:[%s4951_s8 + $0x3c] sm:$0xf]  ;;  %v5421_v49 = vld [vmem:[%s5945_s3 + $0x210] sm:$0xff]  }
  0x89   : > { %4623 = vmatprep.subr.bf16.mxu0 %v5368_v14  ;;  %v1898_v52 = vrot.slane %v1897_v41, 4  ;;  %4523 = vmatprep.mubr.bf16.mxu0 %v4040_v51  ;;  %v4088_v59 = vcombine.low %v2238_v48, %v2241_v56  ;;  %v4089_v1 = vcombine.low %v2245_v60, %v2248_v0  ;;  %v2804_v20 = vrot.slane %v2802_v9, 4  ;;  %v4141_v57 = vld [vmem:[%s4951_s8 + $0x44] sm:$0x1] }
  0x8a   : > { %v2810_v22 = vrot.slane %v2808_v12, 5  ;;  %v2815_v23 = vrot.slane %v2813_v16, 4  ;;  %v2816_v24 = vshll.u32 %v4133_v10, 16  ;;  %v2822_v25 = vshll.u32 %v4134_v13, 16 }
  0x8b   : > { %4606 = vmatpush3.bf16.msra.mxu1 %v4795_v8  ;;  %v1903_v58 = vsel %vm4980_vm2, %v1898_v52, %v1902_v42  ;;  %4555 = vmatprep.mubr.bf16.mxu1 %v4088_v59  ;;  %v2798_v8 = vshll.u32 %v4131_v3, 16  ;;  %v2795_v27 = vor.u32 %v2794_v18, %v2791_v17  ;;  %v2826_v29 = vshrl.u32 %v4134_v13, 16  ;;  %v4140_v52 = vld [vmem:[%s4951_s8 + $0x40] sm:$0xf]  ;;  %v5434_v3 = vld [vmem:[%s5945_s3 + $0x218] sm:$0xff]   ;;  %v4802_v13 = vld [vmem:[%s4951_s8 + $0x48] sm:$0xff]  }
  0x8c   : > { %4655 = vmatprep.subr.bf16.mxu1 %v5368_v14  ;;  %v4041_v63 = vcombine.low %v1893_v55, %v1903_v58  ;;  %v2832_v30 = vshll.u32 %v4135_v15, 16  ;;  %v2818_v31 = vrot.slane %v2816_v24, 5  ;;  %v2824_v32 = vrot.slane %v2822_v25, 5  ;;  %v4799_v59 = vld [vmem:[%s4951_s8 + $0x3c] sm:$0xff]   ;;  %v4144_v24 = vld [vmem:[%s4951_s8 + $0x50] sm:$0x1] }
  0x8d   : > { %4556 = vmatmul.mubr.bf16.gmra.mrb[44].mxu1 %v4089_v1  ;;  %v2800_v19 = vrot.slane %v2798_v8, 5  ;;  %v2796_v33 = vrot.slane %v2795_v27, 4  ;;  %v2828_v35 = vrot.slane %v2826_v29, 4  ;;  %v2837_v45 = vshrl.u32 %v4136_v39, 16 }
  0x8e   : > { %4524 = vmatmul.mubr.bf16.gmra.mrb[44].mxu0 %v4041_v63  ;;  %v2834_v36 = vrot.slane %v2832_v30, 5  ;;  %v2819_v37 = vor.u32 %v2818_v31, %v2815_v23  ;;  %v2840_v50 = vshll.u32 %v4136_v39, 16  ;;  %v2846_v51 = vshll.u32 %v4137_v40, 16  ;;  %v4143_v23 = vld [vmem:[%s4951_s8 + $0x4c] sm:$0xf] }
  0x8f   : > { %4575 = vmatprep.mubr.bf16.mxu0 %v4793_v62  ;;  %v2805_v28 = vor.u32 %v2804_v20, %v2800_v19  ;;  %v2801_v41 = vsel %vm4980_vm2, %v2796_v33, %v2800_v19  ;;  %v2829_v43 = vor.u32 %v2828_v35, %v2824_v32  ;;  %v2839_v54 = vrot.slane %v2837_v45, 4  ;;  %v4145_v30 = vld [vmem:[%s4951_s8 + $0x54] sm:$0xf]  ;;  %v4146_v31 = vld [vmem:[%s4951_s8 + $0x58] sm:$0xf] }
  0x90   : > { %v2820_v48 = vrot.slane %v2819_v37, 4  ;;  %v2850_v55 = vshrl.u32 %v4137_v40, 16  ;;  %v2856_v56 = vshll.u32 %v4138_v44, 16  ;;  %v2842_v60 = vrot.slane %v2840_v50, 5  ;;  %v4803_v33 = vld [vmem:[%s4951_s8 + $0x54] sm:$0xff]  }
  0x91   : > { %v2806_v34 = vrot.slane %v2805_v28, 4  ;;  %v2830_v53 = vrot.slane %v2829_v43, 4  ;;  %v2848_v61 = vrot.slane %v2846_v51, 5  ;;  %v2861_v62 = vshrl.u32 %v4139_v46, 16  ;;  %v4147_v37 = vld [vmem:[%s4951_s8 + $0x5c] sm:$0x1] }
  0x92   : > { %v2825_v58 = vsel %vm4980_vm2, %v2820_v48, %v2824_v32  ;;  %v2852_v0 = vrot.slane %v2850_v55, 4  ;;  %v2858_v1 = vrot.slane %v2856_v56, 5  ;;  %v2864_v2 = vshll.u32 %v4139_v46, 16  ;;  %v5465_v43 = vld [vmem:[%s5945_s3 + $0x228] sm:$0xff]  }
  0x93   : > { %v2811_v42 = vsel %vm4980_vm2, %v2806_v34, %v2810_v22  ;;  %v2835_v63 = vsel %vm4980_vm2, %v2830_v53, %v2834_v36  ;;  %v2843_v5 = vor.u32 %v2842_v60, %v2839_v54  ;;  %v2863_v7 = vrot.slane %v2861_v62, 4 }
  0x94   : > { %v4154_v47 = vcombine.low %v2801_v41, %v2811_v42  ;;  %v4155_v4 = vcombine.low %v2825_v58, %v2835_v63  ;;  %v2870_v8 = vshll.u32 %v4140_v52, 16  ;;  %v2853_v9 = vor.u32 %v2852_v0, %v2848_v61  ;;  %v4807_v0 = vld [vmem:[%s4951_s8 + $0x6c] sm:$0xff]  }
  0x95   : > { %v2866_v10 = vrot.slane %v2864_v2, 5  ;;  %v2880_v12 = vshll.u32 %v4141_v57, 16  ;;  %v2844_v15 = vrot.slane %v2843_v5, 4  ;;  %v2894_v35 = vshll.u32 %v4143_v23, 16  ;;  %v5475_v57 = vld [vmem:[%s5945_s3 + $0x230] sm:$0xff]  }
  0x96   : > { %4576 = vmatmul.mubr.bf16.vlgmr.msra.gmra.mrb[48].mxu0 %v4794_v11  ;;  %4607 = vmatprep.mubr.bf16.mxu1 %v4154_v47  ;;  %v2874_v11 = vshrl.u32 %v4140_v52, 16  ;;  %v2872_v16 = vrot.slane %v2870_v8, 5  ;;  %v2854_v17 = vrot.slane %v2853_v9, 4  ;;  %v2898_v36 = vshrl.u32 %v4143_v23, 16  ;;  %v4806_v52 = vld [vmem:[%s4951_s8 + $0x60] sm:$0xff]  }
  0x97   : > { %4624 = vmatpush3.bf16.msra.mxu0 %v5368_v14  ;;  %4579 = vmatprep.mubr.bf16.mxu0 %v4798_v21  ;;  %v2867_v18 = vor.u32 %v2866_v10, %v2863_v7  ;;  %v2882_v20 = vrot.slane %v2880_v12, 5  ;;  %v5443_v21 = vld [vmem:[%s5945_s3 + $0x220] sm:$0xff]   ;;  %v2849_v22 = vsel %vm4980_vm2, %v2844_v15, %v2848_v61  ;;  %v2904_v42 = vshll.u32 %v4144_v24, 16  ;;  %v4150_v9 = vld [vmem:[%s4951_s8 + $0x68] sm:$0x1] }
  0x98   : > { %4625 = vmatprep.subr.bf16.mxu0 %v5406_v26  ;;  %4608 = vmatmul.mubr.bf16.vlgmr.msra.gmra.mrb[48].mxu1 %v4155_v4  ;;  %v2876_v19 = vrot.slane %v2874_v11, 4  ;;  %v2859_v25 = vsel %vm4980_vm2, %v2854_v17, %v2858_v1  ;;  %v2896_v45 = vrot.slane %v2894_v35, 5  ;;  %v2909_v46 = vshrl.u32 %v4145_v30, 16  ;;  %v4149_v5 = vld [vmem:[%s4951_s8 + $0x64] sm:$0xf] }
  0x99   : > { %4663 = vmatpush3.bf16.msra.mxu1 %v5368_v14  ;;  %v4142_v14 = vld [vmem:[%s4951_s8 + $0x48] sm:$0xf]  ;;  %v2868_v27 = vrot.slane %v2867_v18, 4  ;;  %v4156_v32 = vcombine.low %v2849_v22, %v2859_v25  ;;  %v2906_v48 = vrot.slane %v2904_v42, 5  ;;  %v2912_v50 = vshll.u32 %v4145_v30, 16 }
  0x9a   : > { %4656 = vmatprep.subr.bf16.mxu1 %v5406_v26  ;;  %v2877_v28 = vor.u32 %v2876_v19, %v2872_v16  ;;  %v2885_v29 = vshrl.u32 %v4142_v14, 16  ;;  %v2888_v34 = vshll.u32 %v4142_v14, 16  ;;  %v2918_v51 = vshll.u32 %v4146_v31, 16  ;;  %v4151_v12 = vld [vmem:[%s4951_s8 + $0x6c] sm:$0xf]  ;;  %v5496_v19 = vld [vmem:[%s5945_s3 + $0x238] sm:$0xff]  }
  0x9b   : > { %4626 = vmatpush3.bf16.msra.mxu0 %v5406_v26  ;;  %v2873_v39 = vsel %vm4980_vm2, %v2868_v27, %v2872_v16  ;;  %4611 = vmatprep.mubr.bf16.mxu1 %v4156_v32  ;;  %v2911_v56 = vrot.slane %v2909_v46, 4  ;;  %v2914_v58 = vrot.slane %v2912_v50, 5  ;;  %v2922_v60 = vshrl.u32 %v4146_v31, 16  ;;  %v4152_v18 = vld [vmem:[%s4951_s8 + $0x70] sm:$0xf] }
  0x9c   : > { %4627 = vmatprep.subr.bf16.mxu0 %v5421_v49  ;;  %v2878_v40 = vrot.slane %v2877_v28, 4  ;;  %v2887_v41 = vrot.slane %v2885_v29, 4  ;;  %v2890_v44 = vrot.slane %v2888_v34, 5  ;;  %v2928_v61 = vshll.u32 %v4147_v37, 16  ;;  %v4153_v23 = vld [vmem:[%s4951_s8 + $0x74] sm:$0x1] }
  0x9d   : > { %4664 = vmatpush3.bf16.msra.mxu1 %v5406_v26  ;;  %v2900_v26 = vrot.slane %v2898_v36, 4  ;;  %v2915_v1 = vor.u32 %v2914_v58, %v2911_v56  ;;  %v2924_v2 = vrot.slane %v2922_v60, 4  ;;  %v2942_v17 = vshll.u32 %v4149_v5, 16  ;;  %v4174_v50 = vld [vmem:[%s4951_s8 + $0x28] sm:$0xf] }
  0x9e   : > { %4580 = vmatmul.mubr.bf16.gmra.mrb[52].mxu0 %v4799_v59  ;;  %4657 = vmatprep.subr.bf16.mxu1 %v5421_v49  ;;  %v2883_v47 = vsel %vm4980_vm2, %v2878_v40, %v2882_v20  ;;  %v2891_v54 = vor.u32 %v2890_v44, %v2887_v41  ;;  %v2920_v59 = vrot.slane %v2918_v51, 5  ;;  %v2930_v4 = vrot.slane %v2928_v61, 5  ;;  %v4182_v56 = vld [vmem:[%s4951_s8 + $0x48] sm:$0xe] }
  0x9f   : > { %4628 = vmatpush3.bf16.msra.mxu0 %v5421_v49  ;;  %4583 = vmatprep.mubr.bf16.mxu0 %v4802_v13  ;;  %v4157_v53 = vcombine.low %v2873_v39, %v2883_v47  ;;  %v2901_v55 = vor.u32 %v2900_v26, %v2896_v45  ;;  %v2916_v15 = vrot.slane %v2915_v1, 4  ;;  %v2952_v14 = vshll.u32 %v4150_v9, 16  ;;  %v4171_v39 = vld [vmem:[%s4951_s8 + $0x1c] sm:$0xf]  ;;  %v4173_v26 = vld [vmem:[%s4951_s8 + $0x24] sm:$0xe] }
  0xa0   : > { %4629 = vmatprep.subr.bf16.mxu0 %v5434_v3  ;;  %v2892_v62 = vrot.slane %v2891_v54, 4  ;;  %v2925_v16 = vor.u32 %v2924_v2, %v2920_v59  ;;  %v2944_v27 = vrot.slane %v2942_v17, 5  ;;  %v2957_v28 = vshrl.u32 %v4151_v12, 16  ;;  %v4184_v2 = vld [vmem:[%s4951_s8 + $0x50] sm:$0x1] }
  0xa1   : > { %4665 = vmatpush3.bf16.msra.mxu1 %v5421_v49  ;;  %v2902_v63 = vrot.slane %v2901_v55, 4  ;;  %v4148_v49 = vld [vmem:[%s4951_s8 + $0x60] sm:$0xf]  ;;  %v2921_v24 = vsel %vm4980_vm2, %v2916_v15, %v2920_v59  ;;  %v2954_v31 = vrot.slane %v2952_v14, 5  ;;  %v2960_v32 = vshll.u32 %v4151_v12, 16 }
  0xa2   : > { %4612 = vmatmul.mubr.bf16.gmra.mrb[52].mxu1 %v4157_v53  ;;  %4658 = vmatprep.subr.bf16.mxu1 %v5434_v3  ;;  %v2897_v7 = vsel %vm4980_vm2, %v2892_v62, %v2896_v45  ;;  %v2933_v10 = vshrl.u32 %v4148_v49, 16  ;;  %v2936_v11 = vshll.u32 %v4148_v49, 16  ;;  %v2926_v25 = vrot.slane %v2925_v16, 4  ;;  %v4172_v45 = vld [vmem:[%s4951_s8 + $0x20] sm:$0x1] }
  0xa3   : > { %4630 = vmatpush3.bf16.msra.mxu0 %v5434_v3  ;;  %v2907_v8 = vsel %vm4980_vm2, %v2902_v63, %v2906_v48  ;;  %v2959_v35 = vrot.slane %v2957_v28, 4  ;;  %v2966_v36 = vshll.u32 %v4152_v18, 16  ;;  %v2970_v37 = vshrl.u32 %v4152_v18, 16  ;;  %v4175_v55 = vld [vmem:[%s4951_s8 + $0x2c] sm:$0x1] }
  0xa4   : > { %4631 = vmatprep.subr.bf16.mxu0 %v5443_v21  ;;  %v4158_v13 = vcombine.low %v2897_v7, %v2907_v8  ;;  %v2935_v20 = vrot.slane %v2933_v10, 4  ;;  %v2938_v22 = vrot.slane %v2936_v11, 5  ;;  %v2931_v34 = vsel %vm4980_vm2, %v2926_v25, %v2930_v4  ;;  %v4183_v62 = vld [vmem:[%s4951_s8 + $0x4c] sm:$0xf]  ;;  %v4185_v4 = vld [vmem:[%s4951_s8 + $0x54] sm:$0xe] }
  0xa5   : > { %4666 = vmatpush3.bf16.msra.mxu1 %v5434_v3  ;;  %v2946_v3 = vshrl.u32 %v4149_v5, 16  ;;  %v4159_v40 = vcombine.low %v2921_v24, %v2931_v34  ;;  %v2962_v44 = vrot.slane %v2960_v32, 5  ;;  %v2972_v46 = vrot.slane %v2970_v37, 4  ;;  %v4186_v9 = vld [vmem:[%s4951_s8 + $0x58] sm:$0xf] }
  0xa6   : > { %4584 = vmatmul.mubr.bf16.gmra.mrb[56].mxu0 %v4803_v33  ;;  %4659 = vmatprep.subr.bf16.mxu1 %v5443_v21  ;;  %v2939_v29 = vor.u32 %v2938_v22, %v2935_v20  ;;  %v4170_v33 = vld [vmem:[%s4951_s8 + $0x18] sm:$0xe]  ;;  %v2976_v47 = vshll.u32 %v4153_v23, 16  ;;  %v3271_v54 = vrot.slane %v4171_v39, 5  ;;  %v3274_v60 = vrot.slane %v4172_v45, 5 }
  0xa7   : > { %4632 = vmatpush3.bf16.msra.mxu0 %v5443_v21  ;;  %4587 = vmatprep.mubr.bf16.mxu0 %v4806_v52  ;;  %v2948_v30 = vrot.slane %v2946_v3, 4  ;;  %v4194_v48 = vrot.slane %v4170_v33, 9  ;;  %v2963_v53 = vor.u32 %v2962_v44, %v2959_v35  ;;  %v4195_v61 = vrot.slane %v4173_v26, 9  ;;  %v4187_v15 = vld [vmem:[%s4951_s8 + $0x5c] sm:$0x1] }
  0xa8   : > { %4633 = vmatprep.subr.bf16.mxu0 %v5465_v43  ;;  %4615 = vmatprep.mubr.bf16.mxu1 %v4158_v13  ;;  %v2940_v41 = vrot.slane %v2939_v29, 4  ;;  %v2978_v59 = vrot.slane %v2976_v47, 5  ;;  %v3278_v7 = vrot.slane %v4174_v50, 5  ;;  %v3281_v8 = vrot.slane %v4175_v55, 5  ;;  %v4176_v16 = vld [vmem:[%s4951_s8 + $0x30] sm:$0xe] }
  0xa9   : > { %4667 = vmatpush3.bf16.msra.mxu1 %v5443_v21  ;;  %v2949_v42 = vor.u32 %v2948_v30, %v2944_v27  ;;  %v2968_v21 = vrot.slane %v2966_v36, 5  ;;  %v3272_v1 = vsel %vm5089_vm5, %v4194_v48, %v3271_v54  ;;  %v4198_v12 = vrot.slane %v4182_v56, 9  ;;  %v4177_v3 = vld [vmem:[%s4951_s8 + $0x34] sm:$0xf]  ;;  %v4178_v14 = vld [vmem:[%s4951_s8 + $0x38] sm:$0x1] }
  0xaa   : > { %4660 = vmatprep.subr.bf16.mxu1 %v5465_v43  ;;  %4616 = vmatmul.mubr.bf16.gmra.mrb[56].mxu1 %v4159_v40  ;;  %v2945_v51 = vsel %vm4980_vm2, %v2940_v41, %v2944_v27  ;;  %v3299_v13 = vrot.slane %v4183_v62, 5  ;;  %v3279_v20 = vsel %vm5089_vm5, %v4195_v61, %v3278_v7  ;;  %v3280_v22 = vrot.slane %v3278_v7, 4  ;;  %v4179_v27 = vld [vmem:[%s4951_s8 + $0x3c] sm:$0xe]  ;;  %v4181_v32 = vld [vmem:[%s4951_s8 + $0x44] sm:$0x1] }
  0xab   : > { %4634 = vmatpush3.bf16.msra.mxu0 %v5465_v43  ;;  %v2950_v52 = vrot.slane %v2949_v42, 4  ;;  %v2973_v58 = vor.u32 %v2972_v46, %v2968_v21  ;;  %v3302_v38 = vrot.slane %v4184_v2, 5  ;;  %v4199_v29 = vrot.slane %v4185_v4, 9  ;;  %v4188_v37 = vld [vmem:[%s4951_s8 + $0x60] sm:$0xe] }
  0xac   : > { %4635 = vmatprep.subr.bf16.mxu0 %v5475_v57  ;;  %v3300_v24 = vsel %vm5089_vm5, %v4198_v12, %v3299_v13  ;;  %v3301_v25 = vrot.slane %v3299_v13, 4  ;;  %v3282_v28 = vsel %vm5089_vm5, %v3280_v22, %v3281_v8  ;;  %v3306_v30 = vrot.slane %v4186_v9, 5  ;;  %v4189_v39 = vld [vmem:[%s4951_s8 + $0x64] sm:$0xf]  ;;  %v4190_v45 = vld [vmem:[%s4951_s8 + $0x68] sm:$0x1] }
  0xad   : > { %4668 = vmatpush3.bf16.msra.mxu1 %v5465_v43  ;;  %v2955_v63 = vsel %vm4980_vm2, %v2950_v52, %v2954_v31  ;;  %v3273_v43 = vrot.slane %v3271_v54, 4  ;;  %v2974_v5 = vrot.slane %v2973_v58, 4  ;;  %v3309_v31 = vrot.slane %v4187_v15, 5  ;;  %v4191_v26 = vld [vmem:[%s4951_s8 + $0x6c] sm:$0xe]  ;;  %v365_v12 = vld [vmem:[#allocation2] sm:$0xff] }
  0xae   : > { %4588 = vmatmul.mubr.bf16.gmra.mrb[60].mxu0 %v4807_v0  ;;  %v2964_v0 = vrot.slane %v2963_v53, 4  ;;  %4661 = vmatprep.subr.bf16.mxu1 %v5475_v57  ;;  %v4160_v49 = vcombine.low %v2945_v51, %v2955_v63  ;;  %v4203_v33 = vcombine.low %v3279_v20, %v3282_v28  ;;  %v3303_v34 = vsel %vm5089_vm5, %v3301_v25, %v3302_v38  ;;  %v4192_v50 = vld [vmem:[%s4951_s8 + $0x70] sm:$0xf]  ;;  %v4193_v54 = vld [vmem:[%s4951_s8 + $0x74] sm:$0x1]  ;;  %v368_v15 = vld [vmem:[#allocation2 + $0x18] sm:$0xff] }
  0xaf   : > { %4636 = vmatpush3.bf16.msra.mxu0 %v5475_v57  ;;  %v3275_v11 = vsel %vm5089_vm5, %v3273_v43, %v3274_v60  ;;  %v2979_v17 = vsel %vm4980_vm2, %v2974_v5, %v2978_v59  ;;  %v4196_v35 = vrot.slane %v4176_v16, 9  ;;  %v3285_v36 = vrot.slane %v4177_v3, 5 }
  0xb0   : > { %4637 = vmatprep.subr.bf16.mxu0 %v5496_v19  ;;  %v2969_v10 = vsel %vm4980_vm2, %v2964_v0, %v2968_v21  ;;  %4619 = vmatprep.mubr.bf16.mxu1 %v4160_v49  ;;  %v4202_v18 = vcombine.low %v3272_v1, %v3275_v11  ;;  %v4206_v40 = vcombine.low %v3300_v24, %v3303_v34  ;;  %v3308_v42 = vrot.slane %v3306_v30, 4  ;;  %v367_v11 = vld [vmem:[#allocation2 + $0x10] sm:$0xff] }
  0xb1   : > { %4669 = vmatpush3.bf16.msra.mxu1 %v5475_v57  ;;  %v4161_v23 = vcombine.low %v2969_v10, %v2979_v17  ;;  %v4180_v57 = vld [vmem:[%s4951_s8 + $0x40] sm:$0xf]  ;;  %v3307_v41 = vsel %vm5089_vm5, %v4199_v29, %v3306_v30  ;;  %v3288_v44 = vrot.slane %v4178_v14, 5  ;;  %v3286_v21 = vsel %vm5089_vm5, %v4196_v35, %v3285_v36  ;;  %v372_v29 = vld [vmem:[#allocation2 + $0x38] sm:$0xff] }
  0xb2   : > { %4662 = vmatprep.subr.bf16.mxu1 %v5496_v19  ;;  %4639 = vmatprep.mubr.bf16.mxu0 %v4202_v18  ;;  %v3287_v46 = vrot.slane %v3285_v36, 4  ;;  %v4197_v47 = vrot.slane %v4179_v27, 9  ;;  %v3292_v48 = vrot.slane %v4180_v57, 5  ;;  %v3295_v51 = vrot.slane %v4181_v32, 5  ;;  %v366_v18 = vld [vmem:[#allocation2 + $0x8] sm:$0xff]  ;;  %v371_v27 = vld [vmem:[#allocation2 + $0x30] sm:$0xff] }
  0xb3   : > { %4638 = vmatpush3.bf16.msra.mxu0 %v5496_v19  ;;  %4620 = vmatmul.mubr.bf16.gmra.mrb[60].mxu1 %v4161_v23  ;;  %v4200_v52 = vrot.slane %v4188_v37, 9  ;;  %v3313_v53 = vrot.slane %v4189_v39, 5  ;;  %v3316_v63 = vrot.slane %v4190_v45, 5  ;;  %v4201_v1 = vrot.slane %v4191_v26, 9  ;;  %v369_v57 = vld [vmem:[#allocation2 + $0x20] sm:$0xff]  ;;  %v370_v32 = vld [vmem:[#allocation2 + $0x28] sm:$0xff] }
  0xb4   : > { %4647 = vmatprep.mubr.bf16.mxu1 %v4206_v40  ;;  %v3289_v56 = vsel %vm5089_vm5, %v3287_v46, %v3288_v44  ;;  %v3293_v58 = vsel %vm5089_vm5, %v4197_v47, %v3292_v48  ;;  %v3294_v59 = vrot.slane %v3292_v48, 4  ;;  %v3320_v43 = vrot.slane %v4192_v50, 5  ;;  %v375_v48 = vld [vmem:[#allocation2 + $0x50] sm:$0xff] }
  0xb5   : > { %4670 = vmatpush3.bf16.msra.mxu1 %v5496_v19  ;;  %v3310_v19 = vsel %vm5089_vm5, %v3308_v42, %v3309_v31  ;;  %v4204_v60 = vcombine.low %v3286_v21, %v3289_v56  ;;  %v3314_v61 = vsel %vm5089_vm5, %v4200_v52, %v3313_v53  ;;  %v3315_v62 = vrot.slane %v3313_v53, 4  ;;  %v376_v53 = vld [vmem:[#allocation2 + $0x58] sm:$0xff]  ;;  %v374_v56 = vld [vmem:[#allocation2 + $0x48] sm:$0xff] }
  0xb6   : > { %4640 = vmatmul.mubr.bf16.vlgmr.msra.gmra.mrb[64].mxu0 %v4203_v33  ;;  %v4207_v55 = vcombine.low %v3307_v41, %v3310_v19  ;;  %v3296_v0 = vsel %vm5089_vm5, %v3294_v59, %v3295_v51  ;;  %v3323_v2 = vrot.slane %v4193_v54, 5  ;;  %v3322_v7 = vrot.slane %v3320_v43, 4  ;;  %v373_v19 = vld [vmem:[#allocation2 + $0x40] sm:$0xff] }
  0xb7   : > { %4643 = vmatprep.mubr.bf16.mxu0 %v4204_v60  ;;  %v4205_v4 = vcombine.low %v3293_v58, %v3296_v0  ;;  %v3317_v49 = vsel %vm5089_vm5, %v3315_v62, %v3316_v63  ;;  %v3321_v8 = vsel %vm5089_vm5, %v4201_v1, %v3320_v43 }
  0xb8   : > { %v4208_v5 = vcombine.low %v3314_v61, %v3317_v49  ;;  %v3324_v9 = vsel %vm5089_vm5, %v3322_v7, %v3323_v2  ;;  %v379_v7 = vld [vmem:[#allocation2 + $0x70] sm:$0xff] }
  0xb9   : > { %v4209_v10 = vcombine.low %v3321_v8, %v3324_v9  ;;  %v377_v8 = vld [vmem:[#allocation2 + $0x60] sm:$0xff] }
  0xbb   : > { %4648 = vmatmul.mubr.bf16.vlgmr.msra.gmra.mrb[64].mxu1 %v4207_v55 }
  0xbc   : > { %4651 = vmatprep.mubr.bf16.mxu1 %v4208_v5 }
  0xbe   : > { %4644 = vmatmul.mubr.bf16.gmra.mrb[68].mxu0 %v4205_v4 }
  0xc3   : > { %4652 = vmatmul.mubr.bf16.gmra.mrb[68].mxu1 %v4209_v10 }
  0xfd   : > { %v4385_v13 = vpop.f32.mrb[0].mxu0 }
  0xfe   : > { %v576_v16 = vadd.f32 %v4385_v13, %v367_v11  ;;  %v511_v17 = vpop.f32.mrb[1].mxu0  ;;  %v380_v11 = vld [vmem:[#allocation2 + $0x78] sm:$0xff] }
  0xff   : > { %v574_v20 = vadd.f32 %v511_v17, %v365_v12  ;;  %v4386_v22 = vpop.f32.mrb[2].mxu0  ;;  %v4417_v3 = vpop.f32.mrb[0].mxu1 }
 0x100   : > { %592 = vst.msk [vmem:[#allocation2 + $0x10] sm:$0xff] %vm316_vm6, %v576_v16  ;;  %v577_v14 = vadd.f32 %v4386_v22, %v368_v15  ;;  %v514_v23 = vpop.f32.mrb[3].mxu0  ;;  %v971_v24 = vpop.f32.mrb[1].mxu1  ;;  %v378_v16 = vld [vmem:[#allocation2 + $0x68] sm:$0xff] }
 0x101   : > { %590 = vst.msk [vmem:[#allocation2] sm:$0xff] %vm316_vm6, %v574_v20  ;;  %v575_v6 = vadd.f32 %v514_v23, %v366_v18  ;;  %v4418_v25 = vpop.f32.mrb[2].mxu1 }
 0x102   : > { %593 = vst.msk [vmem:[#allocation2 + $0x18] sm:$0xff] %vm316_vm6, %v577_v14  ;;  %v974_v38 = vpop.f32.mrb[3].mxu1 }
 0x103   : > { %591 = vst.msk [vmem:[#allocation2 + $0x8] sm:$0xff] %vm316_vm6, %v575_v6 }
 0x105   : > { %v4389_v28 = vpop.f32.mrb[4].mxu0 }
 0x106   : > { %v580_v30 = vadd.f32 %v4389_v28, %v371_v27  ;;  %v527_v31 = vpop.f32.mrb[5].mxu0 }
 0x107   : > { %v843_v33 = vld [vmem:[#allocation2 + $0x10] sm:$0xff]  ;;  %v578_v34 = vadd.f32 %v527_v31, %v369_v57  ;;  %v4390_v35 = vpop.f32.mrb[6].mxu0  ;;  %v4421_v21 = vpop.f32.mrb[4].mxu1 }
 0x108   : > { %v1036_v36 = vadd.f32 %v4417_v3, %v843_v33  ;;  %v841_v37 = vld [vmem:[#allocation2] sm:$0xff]  ;;  %596 = vst.msk [vmem:[#allocation2 + $0x30] sm:$0xff] %vm316_vm6, %v580_v30  ;;  %v581_v39 = vadd.f32 %v4390_v35, %v372_v29  ;;  %v530_v40 = vpop.f32.mrb[7].mxu0  ;;  %v987_v47 = vpop.f32.mrb[5].mxu1 }
 0x109   : > { %v1034_v41 = vadd.f32 %v971_v24, %v841_v37  ;;  %v844_v42 = vld [vmem:[#allocation2 + $0x18] sm:$0xff]  ;;  %594 = vst.msk [vmem:[#allocation2 + $0x20] sm:$0xff] %vm316_vm6, %v578_v34  ;;  %v579_v44 = vadd.f32 %v530_v40, %v370_v32  ;;  %v4422_v50 = vpop.f32.mrb[6].mxu1 }
 0x10a   : > { %1052 = vst.msk [vmem:[#allocation2 + $0x10] sm:$0xff] %vm316_vm6, %v1036_v36  ;;  %v1037_v45 = vadd.f32 %v4418_v25, %v844_v42  ;;  %v842_v26 = vld [vmem:[#allocation2 + $0x8] sm:$0xff]  ;;  %597 = vst.msk [vmem:[#allocation2 + $0x38] sm:$0xff] %vm316_vm6, %v581_v39  ;;  %v990_v52 = vpop.f32.mrb[7].mxu1 }
 0x10b   : > { %1050 = vst.msk [vmem:[#allocation2] sm:$0xff] %vm316_vm6, %v1034_v41  ;;  %v1035_v46 = vadd.f32 %v974_v38, %v842_v26  ;;  %595 = vst.msk [vmem:[#allocation2 + $0x28] sm:$0xff] %vm316_vm6, %v579_v44 }
 0x10c   : > { %1053 = vst.msk [vmem:[#allocation2 + $0x18] sm:$0xff] %vm316_vm6, %v1037_v45 }
 0x10d   : > { %1051 = vst.msk [vmem:[#allocation2 + $0x8] sm:$0xff] %vm316_vm6, %v1035_v46  ;;  %v4393_v51 = vpop.f32.mrb[8].mxu0 }
 0x10e   : > { %v584_v54 = vadd.f32 %v4393_v51, %v375_v48  ;;  %v543_v55 = vpop.f32.mrb[9].mxu0 }
 0x10f   : > { %v847_v58 = vld [vmem:[#allocation2 + $0x30] sm:$0xff]  ;;  %v582_v59 = vadd.f32 %v543_v55, %v373_v19  ;;  %v4394_v60 = vpop.f32.mrb[10].mxu0  ;;  %v4425_v9 = vpop.f32.mrb[8].mxu1 }
 0x110   : > { %v1040_v61 = vadd.f32 %v4421_v21, %v847_v58  ;;  %v845_v62 = vld [vmem:[#allocation2 + $0x20] sm:$0xff]  ;;  %600 = vst.msk [vmem:[#allocation2 + $0x50] sm:$0xff] %vm316_vm6, %v584_v54  ;;  %v585_v63 = vadd.f32 %v4394_v60, %v376_v53  ;;  %v546_v0 = vpop.f32.mrb[11].mxu0  ;;  %v1003_v12 = vpop.f32.mrb[9].mxu1 }
 0x111   : > { %v1038_v1 = vadd.f32 %v987_v47, %v845_v62  ;;  %v848_v43 = vld [vmem:[#allocation2 + $0x38] sm:$0xff]  ;;  %598 = vst.msk [vmem:[#allocation2 + $0x40] sm:$0xff] %vm316_vm6, %v582_v59  ;;  %v583_v2 = vadd.f32 %v546_v0, %v374_v56  ;;  %v4426_v18 = vpop.f32.mrb[10].mxu1  ;;  %v1191_v36 = vld [vmem:[#allocation2 + $0x10] sm:$0xff] }
 0x112   : > { %1056 = vst.msk [vmem:[#allocation2 + $0x30] sm:$0xff] %vm316_vm6, %v1040_v61  ;;  %v1041_v4 = vadd.f32 %v4422_v50, %v848_v43  ;;  %v846_v49 = vld [vmem:[#allocation2 + $0x28] sm:$0xff]  ;;  %601 = vst.msk [vmem:[#allocation2 + $0x58] sm:$0xff] %vm316_vm6, %v585_v63  ;;  %v1006_v23 = vpop.f32.mrb[11].mxu1  ;;  %v1189_v44 = vld [vmem:[#allocation2] sm:$0xff] }
 0x113   : > { %1054 = vst.msk [vmem:[#allocation2 + $0x20] sm:$0xff] %vm316_vm6, %v1038_v1  ;;  %v1039_v5 = vadd.f32 %v990_v52, %v846_v49  ;;  %599 = vst.msk [vmem:[#allocation2 + $0x48] sm:$0xff] %vm316_vm6, %v583_v2  ;;  %v1192_v47 = vld [vmem:[#allocation2 + $0x18] sm:$0xff] }
 0x114   : > { %1057 = vst.msk [vmem:[#allocation2 + $0x38] sm:$0xff] %vm316_vm6, %v1041_v4  ;;  %v1190_v51 = vld [vmem:[#allocation2 + $0x8] sm:$0xff] }
 0x115   : > { %1055 = vst.msk [vmem:[#allocation2 + $0x28] sm:$0xff] %vm316_vm6, %v1039_v5  ;;  %v4397_v10 = vpop.f32.mrb[12].mxu0 }
 0x116   : > { %v588_v13 = vadd.f32 %v4397_v10, %v379_v7  ;;  %v559_v15 = vpop.f32.mrb[13].mxu0 }
 0x117   : > { %v851_v17 = vld [vmem:[#allocation2 + $0x50] sm:$0xff]  ;;  %v586_v20 = vadd.f32 %v559_v15, %v377_v8  ;;  %v4398_v22 = vpop.f32.mrb[14].mxu0 }
 0x118   : > { %v1044_v3 = vadd.f32 %v4425_v9, %v851_v17  ;;  %v849_v14 = vld [vmem:[#allocation2 + $0x40] sm:$0xff]  ;;  %604 = vst.msk [vmem:[#allocation2 + $0x70] sm:$0xff] %vm316_vm6, %v588_v13  ;;  %v589_v24 = vadd.f32 %v4398_v22, %v380_v11  ;;  %v562_v6 = vpop.f32.mrb[15].mxu0 }
 0x119   : > { %v1042_v25 = vadd.f32 %v1003_v12, %v849_v14  ;;  %v852_v38 = vld [vmem:[#allocation2 + $0x58] sm:$0xff]  ;;  %602 = vst.msk [vmem:[#allocation2 + $0x60] sm:$0xff] %vm316_vm6, %v586_v20  ;;  %v587_v27 = vadd.f32 %v562_v6, %v378_v16  ;;  %v4429_v31 = vpop.f32.mrb[12].mxu1  ;;  %v1195_v58 = vld [vmem:[#allocation2 + $0x30] sm:$0xff] }
 0x11a   : > { %1060 = vst.msk [vmem:[#allocation2 + $0x50] sm:$0xff] %vm316_vm6, %v1044_v3  ;;  %v1045_v57 = vadd.f32 %v4426_v18, %v852_v38  ;;  %v850_v28 = vld [vmem:[#allocation2 + $0x48] sm:$0xff]  ;;  %605 = vst.msk [vmem:[#allocation2 + $0x78] sm:$0xff] %vm316_vm6, %v589_v24  ;;  %v1019_v34 = vpop.f32.mrb[13].mxu1  ;;  %v1193_v63 = vld [vmem:[#allocation2 + $0x20] sm:$0xff] }
 0x11b   : > { %1058 = vst.msk [vmem:[#allocation2 + $0x40] sm:$0xff] %vm316_vm6, %v1042_v25  ;;  %v1043_v29 = vadd.f32 %v1006_v23, %v850_v28  ;;  %603 = vst.msk [vmem:[#allocation2 + $0x68] sm:$0xff] %vm316_vm6, %v587_v27  ;;  %v4430_v40 = vpop.f32.mrb[14].mxu1  ;;  %v1196_v4 = vld [vmem:[#allocation2 + $0x38] sm:$0xff] }
 0x11c   : > { %1061 = vst.msk [vmem:[#allocation2 + $0x58] sm:$0xff] %vm316_vm6, %v1045_v57  ;;  %v1022_v21 = vpop.f32.mrb[15].mxu1  ;;  %v1194_v9 = vld [vmem:[#allocation2 + $0x28] sm:$0xff] }
 0x11d   : > { %1059 = vst.msk [vmem:[#allocation2 + $0x48] sm:$0xff] %vm316_vm6, %v1043_v29  ;;  %v4449_v37 = vpop.f32.mrb[16].mxu0 }
 0x11e   : > { %v1384_v42 = vadd.f32 %v4449_v37, %v1191_v36  ;;  %v1319_v45 = vpop.f32.mrb[17].mxu0 }
 0x11f   : > { %v855_v30 = vld [vmem:[#allocation2 + $0x70] sm:$0xff]  ;;  %v1382_v46 = vadd.f32 %v1319_v45, %v1189_v44  ;;  %v4450_v48 = vpop.f32.mrb[18].mxu0 }
 0x120   : > { %v853_v32 = vld [vmem:[#allocation2 + $0x60] sm:$0xff]  ;;  %v1048_v33 = vadd.f32 %v4429_v31, %v855_v30  ;;  %1400 = vst.msk [vmem:[#allocation2 + $0x10] sm:$0xff] %vm316_vm6, %v1384_v42  ;;  %v1385_v19 = vadd.f32 %v4450_v48, %v1192_v47  ;;  %v1322_v52 = vpop.f32.mrb[19].mxu0 }
 0x121   : > { %v856_v35 = vld [vmem:[#allocation2 + $0x78] sm:$0xff]  ;;  %v1046_v39 = vadd.f32 %v1019_v34, %v853_v32  ;;  %1398 = vst.msk [vmem:[#allocation2] sm:$0xff] %vm316_vm6, %v1382_v46  ;;  %v1383_v53 = vadd.f32 %v1322_v52, %v1190_v51  ;;  %v4481_v54 = vpop.f32.mrb[16].mxu1  ;;  %v1199_v20 = vld [vmem:[#allocation2 + $0x50] sm:$0xff] }
 0x122   : > { %v854_v41 = vld [vmem:[#allocation2 + $0x68] sm:$0xff]  ;;  %1064 = vst.msk [vmem:[#allocation2 + $0x70] sm:$0xff] %vm316_vm6, %v1048_v33  ;;  %v1049_v26 = vadd.f32 %v4430_v40, %v856_v35  ;;  %1401 = vst.msk [vmem:[#allocation2 + $0x18] sm:$0xff] %vm316_vm6, %v1385_v19  ;;  %v1593_v55 = vpop.f32.mrb[17].mxu1  ;;  %v1197_v24 = vld [vmem:[#allocation2 + $0x40] sm:$0xff] }
 0x123   : > { %1062 = vst.msk [vmem:[#allocation2 + $0x60] sm:$0xff] %vm316_vm6, %v1046_v39  ;;  %v1047_v50 = vadd.f32 %v1022_v21, %v854_v41  ;;  %1399 = vst.msk [vmem:[#allocation2 + $0x8] sm:$0xff] %vm316_vm6, %v1383_v53  ;;  %v4482_v56 = vpop.f32.mrb[18].mxu1  ;;  %v1200_v57 = vld [vmem:[#allocation2 + $0x58] sm:$0xff] }
 0x124   : > { %1065 = vst.msk [vmem:[#allocation2 + $0x78] sm:$0xff] %vm316_vm6, %v1049_v26  ;;  %v1596_v62 = vpop.f32.mrb[19].mxu1  ;;  %v1198_v32 = vld [vmem:[#allocation2 + $0x48] sm:$0xff] }
 0x125   : > { %1063 = vst.msk [vmem:[#allocation2 + $0x68] sm:$0xff] %vm316_vm6, %v1047_v50  ;;  %v4453_v59 = vpop.f32.mrb[20].mxu0 }
 0x126   : > { %v1388_v61 = vadd.f32 %v4453_v59, %v1195_v58  ;;  %v1335_v0 = vpop.f32.mrb[21].mxu0 }
 0x127   : > { %v1449_v60 = vld [vmem:[#allocation2 + $0x10] sm:$0xff]  ;;  %v1386_v2 = vadd.f32 %v1335_v0, %v1193_v63  ;;  %v4454_v49 = vpop.f32.mrb[22].mxu0 }
 0x128   : > { %v1658_v1 = vadd.f32 %v4481_v54, %v1449_v60  ;;  %v1447_v43 = vld [vmem:[#allocation2] sm:$0xff]  ;;  %1404 = vst.msk [vmem:[#allocation2 + $0x30] sm:$0xff] %vm316_vm6, %v1388_v61  ;;  %v1389_v8 = vadd.f32 %v4454_v49, %v1196_v4  ;;  %v1338_v10 = vpop.f32.mrb[23].mxu0 }
 0x129   : > { %v1656_v5 = vadd.f32 %v1593_v55, %v1447_v43  ;;  %v1450_v7 = vld [vmem:[#allocation2 + $0x18] sm:$0xff]  ;;  %1402 = vst.msk [vmem:[#allocation2 + $0x20] sm:$0xff] %vm316_vm6, %v1386_v2  ;;  %v1387_v13 = vadd.f32 %v1338_v10, %v1194_v9  ;;  %v4485_v16 = vpop.f32.mrb[20].mxu1  ;;  %v1203_v44 = vld [vmem:[#allocation2 + $0x70] sm:$0xff] }
 0x12a   : > { %1674 = vst.msk [vmem:[#allocation2 + $0x10] sm:$0xff] %vm316_vm6, %v1658_v1  ;;  %v1659_v11 = vadd.f32 %v4482_v56, %v1450_v7  ;;  %v1448_v12 = vld [vmem:[#allocation2 + $0x8] sm:$0xff]  ;;  %1405 = vst.msk [vmem:[#allocation2 + $0x38] sm:$0xff] %vm316_vm6, %v1389_v8  ;;  %v1609_v17 = vpop.f32.mrb[21].mxu1  ;;  %v1201_v46 = vld [vmem:[#allocation2 + $0x60] sm:$0xff] }
 0x12b   : > { %1672 = vst.msk [vmem:[#allocation2] sm:$0xff] %vm316_vm6, %v1656_v5  ;;  %v1657_v15 = vadd.f32 %v1596_v62, %v1448_v12  ;;  %1403 = vst.msk [vmem:[#allocation2 + $0x28] sm:$0xff] %vm316_vm6, %v1387_v13  ;;  %v4486_v18 = vpop.f32.mrb[22].mxu1  ;;  %v1204_v51 = vld [vmem:[#allocation2 + $0x78] sm:$0xff] }
 0x12c   : > { %1675 = vst.msk [vmem:[#allocation2 + $0x18] sm:$0xff] %vm316_vm6, %v1659_v11  ;;  %v1612_v3 = vpop.f32.mrb[23].mxu1  ;;  %v1202_v56 = vld [vmem:[#allocation2 + $0x68] sm:$0xff] }
 0x12d   : > { %1673 = vst.msk [vmem:[#allocation2 + $0x8] sm:$0xff] %vm316_vm6, %v1657_v15  ;;  %v4457_v22 = vpop.f32.mrb[24].mxu0 }
 0x12e   : > { %v1392_v23 = vadd.f32 %v4457_v22, %v1199_v20  ;;  %v1351_v6 = vpop.f32.mrb[25].mxu0 }
 0x12f   : > { %v1453_v14 = vld [vmem:[#allocation2 + $0x30] sm:$0xff]  ;;  %v1390_v27 = vadd.f32 %v1351_v6, %v1197_v24  ;;  %v4458_v28 = vpop.f32.mrb[26].mxu0 }
 0x130   : > { %v1662_v25 = vadd.f32 %v4485_v16, %v1453_v14  ;;  %v1451_v38 = vld [vmem:[#allocation2 + $0x20] sm:$0xff]  ;;  %1408 = vst.msk [vmem:[#allocation2 + $0x50] sm:$0xff] %vm316_vm6, %v1392_v23  ;;  %v1393_v31 = vadd.f32 %v4458_v28, %v1200_v57  ;;  %v1354_v33 = vpop.f32.mrb[27].mxu0 }
 0x131   : > { %v1660_v29 = vadd.f32 %v1609_v17, %v1451_v38  ;;  %v1454_v30 = vld [vmem:[#allocation2 + $0x38] sm:$0xff]  ;;  %1406 = vst.msk [vmem:[#allocation2 + $0x40] sm:$0xff] %vm316_vm6, %v1390_v27  ;;  %v1391_v36 = vadd.f32 %v1354_v33, %v1198_v32  ;;  %v4489_v39 = vpop.f32.mrb[24].mxu1  ;;  %v1922_v11 = vld [vmem:[#allocation2 + $0x10] sm:$0xff] }
 0x132   : > { %1678 = vst.msk [vmem:[#allocation2 + $0x30] sm:$0xff] %vm316_vm6, %v1662_v25  ;;  %v1663_v34 = vadd.f32 %v4486_v18, %v1454_v30  ;;  %v1452_v35 = vld [vmem:[#allocation2 + $0x28] sm:$0xff]  ;;  %1409 = vst.msk [vmem:[#allocation2 + $0x58] sm:$0xff] %vm316_vm6, %v1393_v31  ;;  %v1625_v40 = vpop.f32.mrb[25].mxu1  ;;  %v1920_v15 = vld [vmem:[#allocation2] sm:$0xff] }
 0x133   : > { %1676 = vst.msk [vmem:[#allocation2 + $0x20] sm:$0xff] %vm316_vm6, %v1660_v29  ;;  %v1661_v37 = vadd.f32 %v1612_v3, %v1452_v35  ;;  %1407 = vst.msk [vmem:[#allocation2 + $0x48] sm:$0xff] %vm316_vm6, %v1391_v36  ;;  %v4490_v41 = vpop.f32.mrb[26].mxu1  ;;  %v1923_v18 = vld [vmem:[#allocation2 + $0x18] sm:$0xff] }
 0x134   : > { %1679 = vst.msk [vmem:[#allocation2 + $0x38] sm:$0xff] %vm316_vm6, %v1663_v34  ;;  %v1628_v42 = vpop.f32.mrb[27].mxu1  ;;  %v1921_v14 = vld [vmem:[#allocation2 + $0x8] sm:$0xff] }
 0x135   : > { %1677 = vst.msk [vmem:[#allocation2 + $0x28] sm:$0xff] %vm316_vm6, %v1661_v37  ;;  %v4461_v45 = vpop.f32.mrb[28].mxu0 }
 0x136   : > { %v1396_v21 = vadd.f32 %v4461_v45, %v1203_v44  ;;  %v1367_v47 = vpop.f32.mrb[29].mxu0 }
 0x137   : > { %v1457_v26 = vld [vmem:[#allocation2 + $0x50] sm:$0xff]  ;;  %v1394_v19 = vadd.f32 %v1367_v47, %v1201_v46  ;;  %v4462_v52 = vpop.f32.mrb[30].mxu0 }
 0x138   : > { %v1666_v48 = vadd.f32 %v4489_v39, %v1457_v26  ;;  %v1455_v50 = vld [vmem:[#allocation2 + $0x40] sm:$0xff]  ;;  %1412 = vst.msk [vmem:[#allocation2 + $0x70] sm:$0xff] %vm316_vm6, %v1396_v21  ;;  %v1397_v55 = vadd.f32 %v4462_v52, %v1204_v51  ;;  %v1370_v58 = vpop.f32.mrb[31].mxu0 }
 0x139   : > { %v1664_v53 = vadd.f32 %v1625_v40, %v1455_v50  ;;  %v1458_v54 = vld [vmem:[#allocation2 + $0x58] sm:$0xff]  ;;  %1410 = vst.msk [vmem:[#allocation2 + $0x60] sm:$0xff] %vm316_vm6, %v1394_v19  ;;  %v1395_v61 = vadd.f32 %v1370_v58, %v1202_v56  ;;  %v4493_v62 = vpop.f32.mrb[28].mxu1  ;;  %v1926_v32 = vld [vmem:[#allocation2 + $0x30] sm:$0xff] }
 0x13a   : > { %1682 = vst.msk [vmem:[#allocation2 + $0x50] sm:$0xff] %vm316_vm6, %v1666_v48  ;;  %v1667_v59 = vadd.f32 %v4490_v41, %v1458_v54  ;;  %v1456_v60 = vld [vmem:[#allocation2 + $0x48] sm:$0xff]  ;;  %1413 = vst.msk [vmem:[#allocation2 + $0x78] sm:$0xff] %vm316_vm6, %v1397_v55  ;;  %v1641_v0 = vpop.f32.mrb[29].mxu1  ;;  %v1924_v37 = vld [vmem:[#allocation2 + $0x20] sm:$0xff] }
 0x13b   : > { %1680 = vst.msk [vmem:[#allocation2 + $0x40] sm:$0xff] %vm316_vm6, %v1664_v53  ;;  %v1665_v63 = vadd.f32 %v1628_v42, %v1456_v60  ;;  %1411 = vst.msk [vmem:[#allocation2 + $0x68] sm:$0xff] %vm316_vm6, %v1395_v61  ;;  %v4494_v1 = vpop.f32.mrb[30].mxu1  ;;  %v1927_v41 = vld [vmem:[#allocation2 + $0x38] sm:$0xff] }
 0x13c   : > { %1683 = vst.msk [vmem:[#allocation2 + $0x58] sm:$0xff] %vm316_vm6, %v1667_v59  ;;  %v1644_v43 = vpop.f32.mrb[31].mxu1  ;;  %v1925_v45 = vld [vmem:[#allocation2 + $0x28] sm:$0xff] }
 0x13d   : > { %1681 = vst.msk [vmem:[#allocation2 + $0x48] sm:$0xff] %vm316_vm6, %v1665_v63  ;;  %v4513_v12 = vpop.f32.mrb[32].mxu0 }
 0x13e   : > { %v2115_v13 = vadd.f32 %v4513_v12, %v1922_v11  ;;  %v2050_v16 = vpop.f32.mrb[33].mxu0 }
 0x13f   : > { %v1461_v2 = vld [vmem:[#allocation2 + $0x70] sm:$0xff]  ;;  %v2113_v17 = vadd.f32 %v2050_v16, %v1920_v15  ;;  %v4514_v20 = vpop.f32.mrb[34].mxu0 }
 0x140   : > { %v1670_v4 = vadd.f32 %v4493_v62, %v1461_v2  ;;  %v1459_v49 = vld [vmem:[#allocation2 + $0x60] sm:$0xff]  ;;  %2131 = vst.msk [vmem:[#allocation2 + $0x10] sm:$0xff] %vm316_vm6, %v2115_v13  ;;  %v2116_v3 = vadd.f32 %v4514_v20, %v1923_v18  ;;  %v2053_v23 = vpop.f32.mrb[35].mxu0 }
 0x141   : > { %v1668_v5 = vadd.f32 %v1641_v0, %v1459_v49  ;;  %v1462_v7 = vld [vmem:[#allocation2 + $0x78] sm:$0xff]  ;;  %v4545_v22 = vpop.f32.mrb[32].mxu1  ;;  %2129 = vst.msk [vmem:[#allocation2] sm:$0xff] %vm316_vm6, %v2113_v17  ;;  %v2114_v6 = vadd.f32 %v2053_v23, %v1921_v14  ;;  %v1930_v58 = vld [vmem:[#allocation2 + $0x50] sm:$0xff] }
 0x142   : > { %1686 = vst.msk [vmem:[#allocation2 + $0x70] sm:$0xff] %vm316_vm6, %v1670_v4  ;;  %v1671_v8 = vadd.f32 %v4494_v1, %v1462_v7  ;;  %v1460_v9 = vld [vmem:[#allocation2 + $0x68] sm:$0xff]  ;;  %v2395_v24 = vpop.f32.mrb[33].mxu1  ;;  %2132 = vst.msk [vmem:[#allocation2 + $0x18] sm:$0xff] %vm316_vm6, %v2116_v3  ;;  %v1928_v62 = vld [vmem:[#allocation2 + $0x40] sm:$0xff] }
 0x143   : > { %1684 = vst.msk [vmem:[#allocation2 + $0x60] sm:$0xff] %vm316_vm6, %v1668_v5  ;;  %v1669_v10 = vadd.f32 %v1644_v43, %v1460_v9  ;;  %v4546_v25 = vpop.f32.mrb[34].mxu1  ;;  %2130 = vst.msk [vmem:[#allocation2 + $0x8] sm:$0xff] %vm316_vm6, %v2114_v6  ;;  %v1931_v1 = vld [vmem:[#allocation2 + $0x58] sm:$0xff] }
 0x144   : > { %1687 = vst.msk [vmem:[#allocation2 + $0x78] sm:$0xff] %vm316_vm6, %v1671_v8  ;;  %v2398_v38 = vpop.f32.mrb[35].mxu1  ;;  %v1929_v49 = vld [vmem:[#allocation2 + $0x48] sm:$0xff] }
 0x145   : > { %1685 = vst.msk [vmem:[#allocation2 + $0x68] sm:$0xff] %vm316_vm6, %v1669_v10 }
 0x147   : > { %v2267_v27 = vld [vmem:[#allocation2 + $0x10] sm:$0xff] }
 0x148   : > { %v2460_v57 = vadd.f32 %v4545_v22, %v2267_v27  ;;  %v2265_v28 = vld [vmem:[#allocation2] sm:$0xff] }
 0x149   : > { %v2458_v29 = vadd.f32 %v2395_v24, %v2265_v28  ;;  %v2268_v30 = vld [vmem:[#allocation2 + $0x18] sm:$0xff]  ;;  %v4549_v21 = vpop.f32.mrb[36].mxu1  ;;  %v1934_v18 = vld [vmem:[#allocation2 + $0x70] sm:$0xff] }
 0x14a   : > { %2476 = vst.msk [vmem:[#allocation2 + $0x10] sm:$0xff] %vm316_vm6, %v2460_v57  ;;  %v2461_v31 = vadd.f32 %v4546_v25, %v2268_v30  ;;  %v4517_v33 = vpop.f32.mrb[36].mxu0  ;;  %v2266_v34 = vld [vmem:[#allocation2 + $0x8] sm:$0xff]  ;;  %v2411_v47 = vpop.f32.mrb[37].mxu1  ;;  %v1932_v23 = vld [vmem:[#allocation2 + $0x60] sm:$0xff] }
 0x14b   : > { %2474 = vst.msk [vmem:[#allocation2] sm:$0xff] %vm316_vm6, %v2458_v29  ;;  %v2119_v35 = vadd.f32 %v4517_v33, %v1926_v32  ;;  %v2459_v36 = vadd.f32 %v2398_v38, %v2266_v34  ;;  %v2066_v39 = vpop.f32.mrb[37].mxu0  ;;  %v4550_v48 = vpop.f32.mrb[38].mxu1  ;;  %v1935_v25 = vld [vmem:[#allocation2 + $0x78] sm:$0xff] }
 0x14c   : > { %2477 = vst.msk [vmem:[#allocation2 + $0x18] sm:$0xff] %vm316_vm6, %v2461_v31  ;;  %v2117_v40 = vadd.f32 %v2066_v39, %v1924_v37  ;;  %v4518_v42 = vpop.f32.mrb[38].mxu0  ;;  %v2414_v50 = vpop.f32.mrb[39].mxu1  ;;  %v1933_v28 = vld [vmem:[#allocation2 + $0x68] sm:$0xff] }
 0x14d   : > { %2135 = vst.msk [vmem:[#allocation2 + $0x30] sm:$0xff] %vm316_vm6, %v2119_v35  ;;  %2475 = vst.msk [vmem:[#allocation2 + $0x8] sm:$0xff] %vm316_vm6, %v2459_v36  ;;  %v2120_v44 = vadd.f32 %v4518_v42, %v1927_v41  ;;  %v2069_v26 = vpop.f32.mrb[39].mxu0 }
 0x14e   : > { %2133 = vst.msk [vmem:[#allocation2 + $0x20] sm:$0xff] %vm316_vm6, %v2117_v40  ;;  %v2118_v46 = vadd.f32 %v2069_v26, %v1925_v45 }
 0x14f   : > { %2136 = vst.msk [vmem:[#allocation2 + $0x38] sm:$0xff] %vm316_vm6, %v2120_v44 }
 0x150   : > { %2134 = vst.msk [vmem:[#allocation2 + $0x28] sm:$0xff] %vm316_vm6, %v2118_v46 }
 0x151   : > { %v2525_v34 = vld [vmem:[#allocation2 + $0x10] sm:$0xff] }
 0x152   : > { %v4521_v59 = vpop.f32.mrb[40].mxu0  ;;  %v2523_v37 = vld [vmem:[#allocation2] sm:$0xff] }
 0x153   : > { %v2123_v61 = vadd.f32 %v4521_v59, %v1930_v58  ;;  %v2082_v63 = vpop.f32.mrb[41].mxu0  ;;  %v2526_v42 = vld [vmem:[#allocation2 + $0x18] sm:$0xff] }
 0x154   : > { %v2271_v19 = vld [vmem:[#allocation2 + $0x30] sm:$0xff]  ;;  %v2121_v0 = vadd.f32 %v2082_v63, %v1928_v62  ;;  %v4522_v43 = vpop.f32.mrb[42].mxu0  ;;  %v2524_v46 = vld [vmem:[#allocation2 + $0x8] sm:$0xff] }
 0x155   : > { %v2464_v51 = vadd.f32 %v4549_v21, %v2271_v19  ;;  %v2269_v52 = vld [vmem:[#allocation2 + $0x20] sm:$0xff]  ;;  %2139 = vst.msk [vmem:[#allocation2 + $0x50] sm:$0xff] %vm316_vm6, %v2123_v61  ;;  %v2124_v4 = vadd.f32 %v4522_v43, %v1931_v1  ;;  %v2085_v5 = vpop.f32.mrb[43].mxu0 }
 0x156   : > { %v2462_v53 = vadd.f32 %v2411_v47, %v2269_v52  ;;  %v2272_v54 = vld [vmem:[#allocation2 + $0x38] sm:$0xff]  ;;  %2137 = vst.msk [vmem:[#allocation2 + $0x40] sm:$0xff] %vm316_vm6, %v2121_v0  ;;  %v2122_v8 = vadd.f32 %v2085_v5, %v1929_v49 }
 0x157   : > { %2480 = vst.msk [vmem:[#allocation2 + $0x30] sm:$0xff] %vm316_vm6, %v2464_v51  ;;  %v2465_v55 = vadd.f32 %v4550_v48, %v2272_v54  ;;  %v2270_v56 = vld [vmem:[#allocation2 + $0x28] sm:$0xff]  ;;  %2140 = vst.msk [vmem:[#allocation2 + $0x58] sm:$0xff] %vm316_vm6, %v2124_v4 }
 0x158   : > { %2478 = vst.msk [vmem:[#allocation2 + $0x20] sm:$0xff] %vm316_vm6, %v2462_v53  ;;  %v2463_v60 = vadd.f32 %v2414_v50, %v2270_v56  ;;  %v4553_v2 = vpop.f32.mrb[40].mxu1  ;;  %2138 = vst.msk [vmem:[#allocation2 + $0x48] sm:$0xff] %vm316_vm6, %v2122_v8 }
 0x159   : > { %2481 = vst.msk [vmem:[#allocation2 + $0x38] sm:$0xff] %vm316_vm6, %v2465_v55  ;;  %v2427_v7 = vpop.f32.mrb[41].mxu1 }
 0x15a   : > { %2479 = vst.msk [vmem:[#allocation2 + $0x28] sm:$0xff] %vm316_vm6, %v2463_v60  ;;  %v4554_v9 = vpop.f32.mrb[42].mxu1 }
 0x15b   : > { %v2430_v10 = vpop.f32.mrb[43].mxu1 }
 0x15c   : > { %v2275_v11 = vld [vmem:[#allocation2 + $0x50] sm:$0xff] }
 0x15d   : > { %v2468_v12 = vadd.f32 %v4553_v2, %v2275_v11  ;;  %v2273_v13 = vld [vmem:[#allocation2 + $0x40] sm:$0xff] }
 0x15e   : > { %v2466_v15 = vadd.f32 %v2427_v7, %v2273_v13  ;;  %v2276_v16 = vld [vmem:[#allocation2 + $0x58] sm:$0xff]  ;;  %v2529_v55 = vld [vmem:[#allocation2 + $0x30] sm:$0xff] }
 0x15f   : > { %2484 = vst.msk [vmem:[#allocation2 + $0x50] sm:$0xff] %vm316_vm6, %v2468_v12  ;;  %v2469_v17 = vadd.f32 %v4554_v9, %v2276_v16  ;;  %v2274_v22 = vld [vmem:[#allocation2 + $0x48] sm:$0xff]  ;;  %v2527_v60 = vld [vmem:[#allocation2 + $0x20] sm:$0xff] }
 0x160   : > { %2482 = vst.msk [vmem:[#allocation2 + $0x40] sm:$0xff] %vm316_vm6, %v2466_v15  ;;  %v2467_v14 = vadd.f32 %v2430_v10, %v2274_v22  ;;  %v4557_v27 = vpop.f32.mrb[44].mxu1  ;;  %v2530_v1 = vld [vmem:[#allocation2 + $0x38] sm:$0xff] }
 0x161   : > { %v4525_v20 = vpop.f32.mrb[44].mxu0  ;;  %2485 = vst.msk [vmem:[#allocation2 + $0x58] sm:$0xff] %vm316_vm6, %v2469_v17  ;;  %v2443_v30 = vpop.f32.mrb[45].mxu1  ;;  %v2528_v7 = vld [vmem:[#allocation2 + $0x28] sm:$0xff] }
 0x162   : > { %v2127_v3 = vadd.f32 %v4525_v20, %v1934_v18  ;;  %v2098_v24 = vpop.f32.mrb[45].mxu0  ;;  %2483 = vst.msk [vmem:[#allocation2 + $0x48] sm:$0xff] %vm316_vm6, %v2467_v14  ;;  %v4558_v32 = vpop.f32.mrb[46].mxu1 }
 0x163   : > { %v2125_v6 = vadd.f32 %v2098_v24, %v1932_v23  ;;  %v4526_v38 = vpop.f32.mrb[46].mxu0  ;;  %v2446_v33 = vpop.f32.mrb[47].mxu1 }
 0x164   : > { %2143 = vst.msk [vmem:[#allocation2 + $0x70] sm:$0xff] %vm316_vm6, %v2127_v3  ;;  %v2128_v57 = vadd.f32 %v4526_v38, %v1935_v25  ;;  %v2101_v29 = vpop.f32.mrb[47].mxu0 }
 0x165   : > { %2141 = vst.msk [vmem:[#allocation2 + $0x60] sm:$0xff] %vm316_vm6, %v2125_v6  ;;  %v2126_v31 = vadd.f32 %v2101_v29, %v1933_v28 }
 0x166   : > { %2144 = vst.msk [vmem:[#allocation2 + $0x78] sm:$0xff] %vm316_vm6, %v2128_v57  ;;  %v2533_v16 = vld [vmem:[#allocation2 + $0x50] sm:$0xff] }
 0x167   : > { %2142 = vst.msk [vmem:[#allocation2 + $0x68] sm:$0xff] %vm316_vm6, %v2126_v31  ;;  %v2531_v20 = vld [vmem:[#allocation2 + $0x40] sm:$0xff] }
 0x168   : > { %v2534_v24 = vld [vmem:[#allocation2 + $0x58] sm:$0xff] }
 0x169   : > { %v4577_v35 = vpop.f32.mrb[48].mxu0  ;;  %v2532_v28 = vld [vmem:[#allocation2 + $0x48] sm:$0xff] }
 0x16a   : > { %v2734_v36 = vadd.f32 %v4577_v35, %v2525_v34  ;;  %v2669_v39 = vpop.f32.mrb[49].mxu0 }
 0x16b   : > { %v2279_v40 = vld [vmem:[#allocation2 + $0x70] sm:$0xff]  ;;  %v2732_v41 = vadd.f32 %v2669_v39, %v2523_v37  ;;  %v4578_v44 = vpop.f32.mrb[50].mxu0  ;;  %v4609_v54 = vpop.f32.mrb[48].mxu1 }
 0x16c   : > { %v2472_v45 = vadd.f32 %v4557_v27, %v2279_v40  ;;  %v2277_v26 = vld [vmem:[#allocation2 + $0x60] sm:$0xff]  ;;  %2750 = vst.msk [vmem:[#allocation2 + $0x10] sm:$0xff] %vm316_vm6, %v2734_v36  ;;  %v2735_v21 = vadd.f32 %v4578_v44, %v2526_v42  ;;  %v2672_v47 = vpop.f32.mrb[51].mxu0  ;;  %v3126_v58 = vpop.f32.mrb[49].mxu1 }
 0x16d   : > { %v2470_v48 = vadd.f32 %v2443_v30, %v2277_v26  ;;  %v2280_v50 = vld [vmem:[#allocation2 + $0x78] sm:$0xff]  ;;  %2748 = vst.msk [vmem:[#allocation2] sm:$0xff] %vm316_vm6, %v2732_v41  ;;  %v2733_v19 = vadd.f32 %v2672_v47, %v2524_v46  ;;  %v4610_v63 = vpop.f32.mrb[50].mxu1 }
 0x16e   : > { %2488 = vst.msk [vmem:[#allocation2 + $0x70] sm:$0xff] %vm316_vm6, %v2472_v45  ;;  %v2473_v51 = vadd.f32 %v4558_v32, %v2280_v50  ;;  %v2278_v52 = vld [vmem:[#allocation2 + $0x68] sm:$0xff]  ;;  %2751 = vst.msk [vmem:[#allocation2 + $0x18] sm:$0xff] %vm316_vm6, %v2735_v21  ;;  %v3129_v49 = vpop.f32.mrb[51].mxu1 }
 0x16f   : > { %2486 = vst.msk [vmem:[#allocation2 + $0x60] sm:$0xff] %vm316_vm6, %v2470_v48  ;;  %v2471_v53 = vadd.f32 %v2446_v33, %v2278_v52  ;;  %2749 = vst.msk [vmem:[#allocation2 + $0x8] sm:$0xff] %vm316_vm6, %v2733_v19 }
 0x170   : > { %2489 = vst.msk [vmem:[#allocation2 + $0x78] sm:$0xff] %vm316_vm6, %v2473_v51 }
 0x171   : > { %2487 = vst.msk [vmem:[#allocation2 + $0x68] sm:$0xff] %vm316_vm6, %v2471_v53  ;;  %v4581_v56 = vpop.f32.mrb[52].mxu0 }
 0x172   : > { %v2738_v59 = vadd.f32 %v4581_v56, %v2529_v55  ;;  %v2685_v61 = vpop.f32.mrb[53].mxu0 }
 0x173   : > { %v2998_v62 = vld [vmem:[#allocation2 + $0x10] sm:$0xff]  ;;  %v2736_v0 = vadd.f32 %v2685_v61, %v2527_v60  ;;  %v4582_v43 = vpop.f32.mrb[54].mxu0 }
 0x174   : > { %v3191_v2 = vadd.f32 %v4609_v54, %v2998_v62  ;;  %v2996_v4 = vld [vmem:[#allocation2] sm:$0xff]  ;;  %2754 = vst.msk [vmem:[#allocation2 + $0x30] sm:$0xff] %vm316_vm6, %v2738_v59  ;;  %v2739_v5 = vadd.f32 %v4582_v43, %v2530_v1  ;;  %v2688_v8 = vpop.f32.mrb[55].mxu0 }
 0x175   : > { %v3189_v9 = vadd.f32 %v3126_v58, %v2996_v4  ;;  %v2999_v10 = vld [vmem:[#allocation2 + $0x18] sm:$0xff]  ;;  %2752 = vst.msk [vmem:[#allocation2 + $0x20] sm:$0xff] %vm316_vm6, %v2736_v0  ;;  %v2737_v11 = vadd.f32 %v2688_v8, %v2528_v7  ;;  %v4613_v14 = vpop.f32.mrb[52].mxu1  ;;  %v2537_v39 = vld [vmem:[#allocation2 + $0x70] sm:$0xff] }
 0x176   : > { %3207 = vst.msk [vmem:[#allocation2 + $0x10] sm:$0xff] %vm316_vm6, %v3191_v2  ;;  %v3192_v12 = vadd.f32 %v4610_v63, %v2999_v10  ;;  %v2997_v13 = vld [vmem:[#allocation2 + $0x8] sm:$0xff]  ;;  %2755 = vst.msk [vmem:[#allocation2 + $0x38] sm:$0xff] %vm316_vm6, %v2739_v5  ;;  %v3142_v27 = vpop.f32.mrb[53].mxu1  ;;  %v2535_v42 = vld [vmem:[#allocation2 + $0x60] sm:$0xff] }
 0x177   : > { %3205 = vst.msk [vmem:[#allocation2] sm:$0xff] %vm316_vm6, %v3189_v9  ;;  %v3190_v15 = vadd.f32 %v3129_v49, %v2997_v13  ;;  %2753 = vst.msk [vmem:[#allocation2 + $0x28] sm:$0xff] %vm316_vm6, %v2737_v11  ;;  %v4614_v32 = vpop.f32.mrb[54].mxu1  ;;  %v2538_v21 = vld [vmem:[#allocation2 + $0x78] sm:$0xff] }
 0x178   : > { %3208 = vst.msk [vmem:[#allocation2 + $0x18] sm:$0xff] %vm316_vm6, %v3192_v12  ;;  %v3145_v36 = vpop.f32.mrb[55].mxu1  ;;  %v2536_v50 = vld [vmem:[#allocation2 + $0x68] sm:$0xff] }
 0x179   : > { %3206 = vst.msk [vmem:[#allocation2 + $0x8] sm:$0xff] %vm316_vm6, %v3190_v15  ;;  %v4585_v17 = vpop.f32.mrb[56].mxu0 }
 0x17a   : > { %v2742_v18 = vadd.f32 %v4585_v17, %v2533_v16  ;;  %v2701_v22 = vpop.f32.mrb[57].mxu0 }
 0x17b   : > { %v3002_v3 = vld [vmem:[#allocation2 + $0x30] sm:$0xff]  ;;  %v2740_v23 = vadd.f32 %v2701_v22, %v2531_v20  ;;  %v4586_v6 = vpop.f32.mrb[58].mxu0 }
 0x17c   : > { %v3195_v25 = vadd.f32 %v4613_v14, %v3002_v3  ;;  %v3000_v38 = vld [vmem:[#allocation2 + $0x20] sm:$0xff]  ;;  %2758 = vst.msk [vmem:[#allocation2 + $0x50] sm:$0xff] %vm316_vm6, %v2742_v18  ;;  %v2743_v57 = vadd.f32 %v4586_v6, %v2534_v24  ;;  %v2704_v29 = vpop.f32.mrb[59].mxu0 }
 0x17d   : > { %v3193_v30 = vadd.f32 %v3142_v27, %v3000_v38  ;;  %v3003_v31 = vld [vmem:[#allocation2 + $0x38] sm:$0xff]  ;;  %2756 = vst.msk [vmem:[#allocation2 + $0x40] sm:$0xff] %vm316_vm6, %v2740_v23  ;;  %v2741_v33 = vadd.f32 %v2704_v29, %v2532_v28  ;;  %v4617_v51 = vpop.f32.mrb[56].mxu1  ;;  %v3343_v8 = vld [vmem:[#allocation2 + $0x10] sm:$0xff] }
 0x17e   : > { %3211 = vst.msk [vmem:[#allocation2 + $0x30] sm:$0xff] %vm316_vm6, %v3195_v25  ;;  %v3196_v34 = vadd.f32 %v4614_v32, %v3003_v31  ;;  %v3001_v35 = vld [vmem:[#allocation2 + $0x28] sm:$0xff]  ;;  %2759 = vst.msk [vmem:[#allocation2 + $0x58] sm:$0xff] %vm316_vm6, %v2743_v57  ;;  %v3158_v55 = vpop.f32.mrb[57].mxu1  ;;  %v3341_v13 = vld [vmem:[#allocation2] sm:$0xff] }
 0x17f   : > { %3209 = vst.msk [vmem:[#allocation2 + $0x20] sm:$0xff] %vm316_vm6, %v3193_v30  ;;  %v3194_v37 = vadd.f32 %v3145_v36, %v3001_v35  ;;  %2757 = vst.msk [vmem:[#allocation2 + $0x48] sm:$0xff] %vm316_vm6, %v2741_v33  ;;  %v4618_v59 = vpop.f32.mrb[58].mxu1  ;;  %v3344_v18 = vld [vmem:[#allocation2 + $0x18] sm:$0xff]  ;;  %v5714_v33 = vld [vmem:[%s5946_s4] ss:$0 sm:$0xff] }
 0x180   : > { %3212 = vst.msk [vmem:[#allocation2 + $0x38] sm:$0xff] %vm316_vm6, %v3196_v34  ;;  %v3161_v61 = vpop.f32.mrb[59].mxu1  ;;  %v3342_v3 = vld [vmem:[#allocation2 + $0x8] sm:$0xff] }
 0x181   : > { %3210 = vst.msk [vmem:[#allocation2 + $0x28] sm:$0xff] %vm316_vm6, %v3194_v37  ;;  %v4589_v40 = vpop.f32.mrb[60].mxu0 }
 0x182   : > { %v2746_v41 = vadd.f32 %v4589_v40, %v2537_v39  ;;  %v2717_v44 = vpop.f32.mrb[61].mxu0 }
 0x183   : > { %v3006_v45 = vld [vmem:[#allocation2 + $0x50] sm:$0xff]  ;;  %v2744_v26 = vadd.f32 %v2717_v44, %v2535_v42  ;;  %v4590_v46 = vpop.f32.mrb[62].mxu0 }
 0x184   : > { %v3004_v47 = vld [vmem:[#allocation2 + $0x40] sm:$0xff]  ;;  %2762 = vst.msk [vmem:[#allocation2 + $0x70] sm:$0xff] %vm316_vm6, %v2746_v41  ;;  %v2747_v48 = vadd.f32 %v4590_v46, %v2538_v21  ;;  %v2720_v19 = vpop.f32.mrb[63].mxu0  ;;  %v3199_v54 = vadd.f32 %v4617_v51, %v3006_v45 }
 0x185   : > { %v3007_v52 = vld [vmem:[#allocation2 + $0x58] sm:$0xff]  ;;  %2760 = vst.msk [vmem:[#allocation2 + $0x60] sm:$0xff] %vm316_vm6, %v2744_v26  ;;  %v2745_v53 = vadd.f32 %v2720_v19, %v2536_v50  ;;  %v3197_v58 = vadd.f32 %v3158_v55, %v3004_v47  ;;  %v3347_v31 = vld [vmem:[#allocation2 + $0x30] sm:$0xff] }
 0x186   : > { %v3005_v56 = vld [vmem:[#allocation2 + $0x48] sm:$0xff]  ;;  %2763 = vst.msk [vmem:[#allocation2 + $0x78] sm:$0xff] %vm316_vm6, %v2747_v48  ;;  %3215 = vst.msk [vmem:[#allocation2 + $0x50] sm:$0xff] %vm316_vm6, %v3199_v54  ;;  %v3200_v60 = vadd.f32 %v4618_v59, %v3007_v52  ;;  %v4621_v1 = vpop.f32.mrb[60].mxu1  ;;  %v3345_v37 = vld [vmem:[#allocation2 + $0x20] sm:$0xff] }
 0x187   : > { %2761 = vst.msk [vmem:[#allocation2 + $0x68] sm:$0xff] %vm316_vm6, %v2745_v53  ;;  %3213 = vst.msk [vmem:[#allocation2 + $0x40] sm:$0xff] %vm316_vm6, %v3197_v58  ;;  %v3198_v62 = vadd.f32 %v3161_v61, %v3005_v56  ;;  %v3174_v4 = vpop.f32.mrb[61].mxu1  ;;  %v3348_v42 = vld [vmem:[#allocation2 + $0x38] sm:$0xff] }
 0x188   : > { %3216 = vst.msk [vmem:[#allocation2 + $0x58] sm:$0xff] %vm316_vm6, %v3200_v60  ;;  %v4622_v7 = vpop.f32.mrb[62].mxu1  ;;  %v3346_v21 = vld [vmem:[#allocation2 + $0x28] sm:$0xff] }
 0x189   : > { %3214 = vst.msk [vmem:[#allocation2 + $0x48] sm:$0xff] %vm316_vm6, %v3198_v62  ;;  %v4641_v9 = vpop.f32.mrb[64].mxu0  ;;  %v3177_v11 = vpop.f32.mrb[63].mxu1 }
 0x18a   : > { %v3536_v12 = vadd.f32 %v4641_v9, %v3343_v8  ;;  %v3471_v15 = vpop.f32.mrb[65].mxu0 }
 0x18b   : > { %v3010_v63 = vld [vmem:[#allocation2 + $0x70] sm:$0xff]  ;;  %v3534_v17 = vadd.f32 %v3471_v15, %v3341_v13  ;;  %v4642_v20 = vpop.f32.mrb[66].mxu0 }
 0x18c   : > { %v3008_v0 = vld [vmem:[#allocation2 + $0x60] sm:$0xff]  ;;  %v3203_v2 = vadd.f32 %v4621_v1, %v3010_v63  ;;  %3552 = vst.msk [vmem:[#allocation2 + $0x10] sm:$0xff] %vm316_vm6, %v3536_v12  ;;  %v3537_v22 = vadd.f32 %v4642_v20, %v3344_v18  ;;  %v3474_v14 = vpop.f32.mrb[67].mxu0 }
 0x18d   : > { %v3011_v43 = vld [vmem:[#allocation2 + $0x78] sm:$0xff]  ;;  %v3201_v5 = vadd.f32 %v3174_v4, %v3008_v0  ;;  %3550 = vst.msk [vmem:[#allocation2] sm:$0xff] %vm316_vm6, %v3534_v17  ;;  %v3535_v23 = vadd.f32 %v3474_v14, %v3342_v3  ;;  %v3351_v24 = vld [vmem:[#allocation2 + $0x50] sm:$0xff] }
 0x18e   : > { %v3009_v49 = vld [vmem:[#allocation2 + $0x68] sm:$0xff]  ;;  %3219 = vst.msk [vmem:[#allocation2 + $0x70] sm:$0xff] %vm316_vm6, %v3203_v2  ;;  %v3204_v10 = vadd.f32 %v4622_v7, %v3011_v43  ;;  %3553 = vst.msk [vmem:[#allocation2 + $0x18] sm:$0xff] %vm316_vm6, %v3537_v22  ;;  %v3349_v6 = vld [vmem:[#allocation2 + $0x40] sm:$0xff]  ;;  %v4649_v25 = vpop.f32.mrb[64].mxu1 }
 0x18f   : > { %3217 = vst.msk [vmem:[#allocation2 + $0x60] sm:$0xff] %vm316_vm6, %v3201_v5  ;;  %v3202_v16 = vadd.f32 %v3177_v11, %v3009_v49  ;;  %3551 = vst.msk [vmem:[#allocation2 + $0x8] sm:$0xff] %vm316_vm6, %v3535_v23  ;;  %v3352_v38 = vld [vmem:[#allocation2 + $0x58] sm:$0xff]  ;;  %v3544_v27 = vadd.f32 %v4649_v25, %v3351_v24  ;;  %v3503_v57 = vpop.f32.mrb[65].mxu1 }
 0x190   : > { %3220 = vst.msk [vmem:[#allocation2 + $0x78] sm:$0xff] %vm316_vm6, %v3204_v10  ;;  %v3350_v28 = vld [vmem:[#allocation2 + $0x48] sm:$0xff]  ;;  %v3542_v29 = vadd.f32 %v3503_v57, %v3349_v6  ;;  %v4650_v30 = vpop.f32.mrb[66].mxu1  ;;  %v3607_v57 = vld [vmem:[%s5817_s29 + $0x10] sm:$0xff] }
 0x191   : > { %3218 = vst.msk [vmem:[#allocation2 + $0x68] sm:$0xff] %vm316_vm6, %v3202_v16  ;;  %v4645_v32 = vpop.f32.mrb[68].mxu0  ;;  %3560 = vst.msk [vmem:[#allocation2 + $0x50] sm:$0xff] %vm316_vm6, %v3544_v27  ;;  %v3545_v34 = vadd.f32 %v4650_v30, %v3352_v38  ;;  %v3506_v35 = vpop.f32.mrb[67].mxu1 }
 0x192   : > { %v3540_v36 = vadd.f32 %v4645_v32, %v3347_v31  ;;  %v3487_v39 = vpop.f32.mrb[69].mxu0  ;;  %3558 = vst.msk [vmem:[#allocation2 + $0x40] sm:$0xff] %vm316_vm6, %v3542_v29  ;;  %v3543_v40 = vadd.f32 %v3506_v35, %v3350_v28  ;;  %v5823_v28 = vld [vmem:[%s295_s18] ss:$0 sm:$0xff]  ;;  %v3608_v31 = vld [vmem:[%s5817_s29 + $0x18] sm:$0xff] }
 0x193   : > { %v3538_v41 = vadd.f32 %v3487_v39, %v3345_v37  ;;  %v4646_v44 = vpop.f32.mrb[70].mxu0  ;;  %v3568_v45 = vld [vmem:[#allocation2 + $0x10] sm:$0xff]  ;;  %3561 = vst.msk [vmem:[#allocation2 + $0x58] sm:$0xff] %vm316_vm6, %v3545_v34  ;;  %v3605_v29 = vld [vmem:[%s5817_s29] sm:$0xff]  ;;  %v3629_v30 = vsub.f32 %v3607_v57, %v5823_v28  ;;  %v3606_v34 = vld [vmem:[%s5817_s29 + $0x8] sm:$0xff]  ;;  %v3630_v35 = vsub.f32 %v3608_v31, %v5823_v28 }
 0x194   : > { %3556 = vst.msk [vmem:[#allocation2 + $0x30] sm:$0xff] %vm316_vm6, %v3540_v36  ;;  %v3541_v26 = vadd.f32 %v4646_v44, %v3348_v42  ;;  %v3490_v46 = vpop.f32.mrb[71].mxu0  ;;  %v5721_v47 = vadd.f32 %v5714_v33, %v3568_v45  ;;  %v3566_v48 = vld [vmem:[#allocation2] sm:$0xff]  ;;  %3559 = vst.msk [vmem:[#allocation2 + $0x48] sm:$0xff] %vm316_vm6, %v3543_v40  ;;  %v3616_v42 = vld [vmem:[%s5817_s29 + $0x58] sm:$0xff] }
 0x195   : > { %3554 = vst.msk [vmem:[#allocation2 + $0x20] sm:$0xff] %vm316_vm6, %v3538_v41  ;;  %v3539_v50 = vadd.f32 %v3490_v46, %v3346_v21  ;;  %v3355_v19 = vld [vmem:[#allocation2 + $0x70] sm:$0xff]  ;;  %v5726_v51 = vadd.f32 %v5714_v33, %v3566_v48  ;;  %v3569_v52 = vld [vmem:[#allocation2 + $0x18] sm:$0xff]  ;;  %v5828_v32 = vld [vmem:[%s295_s18 + $0x1] ss:$0 sm:$0xff]  ;;  %v3628_v41 = vsub.f32 %v3606_v34, %v5823_v28  ;;  %v3638_v46 = vsub.f32 %v3616_v42, %v5823_v28 }
 0x196   : > { %3557 = vst.msk [vmem:[#allocation2 + $0x38] sm:$0xff] %vm316_vm6, %v3541_v26  ;;  %v3353_v53 = vld [vmem:[#allocation2 + $0x60] sm:$0xff]  ;;  %3715 = vrot.lane.b32.xlu1 %v5721_v47, %s4851_s14  ;;  %v3567_v54 = vld [vmem:[#allocation2 + $0x8] sm:$0xff]  ;;  %v4653_v55 = vpop.f32.mrb[68].mxu1  ;;  %v5735_v61 = vadd.f32 %v5714_v33, %v3569_v52  ;;  %v3665_v36 = vadd.f32 1.0, %v5721_v47  ;;  %v3649_v37 = vmul.f32 %v5828_v32, %v3629_v30  ;;  %v3615_v44 = vld [vmem:[%s5817_s29 + $0x50] sm:$0xff]  ;;  %v3650_v45 = vmul.f32 %v5828_v32, %v3630_v35 }
 0x197   : > { %3555 = vst.msk [vmem:[#allocation2 + $0x28] sm:$0xff] %vm316_vm6, %v3539_v50  ;;  %v3356_v56 = vld [vmem:[#allocation2 + $0x78] sm:$0xff]  ;;  %3711 = vrot.lane.b32.xlu0 %v5726_v51, %s4851_s14  ;;  %v3548_v58 = vadd.f32 %v4653_v55, %v3355_v19  ;;  %v3519_v59 = vpop.f32.mrb[69].mxu1  ;;  %v5738_v0 = vadd.f32 %v5714_v33, %v3567_v54  ;;  %v3663_v39 = vadd.f32 1.0, %v5726_v51  ;;  %v3637_v47 = vsub.f32 %v3615_v44, %v5823_v28  ;;  %v3614_v52 = vld [vmem:[%s5817_s29 + $0x48] sm:$0xff]  ;;  %v3613_v55 = vld [vmem:[%s5817_s29 + $0x40] sm:$0xff] }
 0x198   : > { %v3354_v60 = vld [vmem:[#allocation2 + $0x68] sm:$0xff]  ;;  %v3546_v62 = vadd.f32 %v3519_v59, %v3353_v53  ;;  %v4654_v63 = vpop.f32.mrb[70].mxu1  ;;  %v3576_v2 = vld [vmem:[#allocation2 + $0x50] sm:$0xff]  ;;  %v3681_v26 = vmul.f32 %v3665_v36, %v3649_v37  ;;  %v3666_v21 = vadd.f32 1.0, %v5735_v61  ;;  %v3648_v19 = vmul.f32 %v5828_v32, %v3628_v41 }
 0x199   : > { %3564 = vst.msk [vmem:[#allocation2 + $0x70] sm:$0xff] %vm316_vm6, %v3548_v58  ;;  %v3549_v1 = vadd.f32 %v4654_v63, %v3356_v56  ;;  %v3522_v43 = vpop.f32.mrb[71].mxu1  ;;  %v5752_v7 = vadd.f32 %v5714_v33, %v3576_v2  ;;  %v3574_v9 = vld [vmem:[#allocation2 + $0x40] sm:$0xff]  ;;  %v3664_v51 = vadd.f32 1.0, %v5738_v0  ;;  %v3612_v2 = vld [vmem:[%s5817_s29 + $0x38] sm:$0xff]  ;;  %v3618_v41 = vld [vmem:[%s5817_s29 + $0x68] sm:$0xff] }
 0x19a   : > { %3717 = vrot.lane.b32.xlu1 %v5735_v61, %s4851_s14  ;;  %3562 = vst.msk [vmem:[#allocation2 + $0x60] sm:$0xff] %vm316_vm6, %v3546_v62  ;;  %v3547_v4 = vadd.f32 %v3522_v43, %v3354_v60  ;;  %v3577_v49 = vld [vmem:[#allocation2 + $0x58] sm:$0xff]  ;;  %v5762_v11 = vadd.f32 %v5714_v33, %v3574_v9  ;;  %v3682_v58 = vmul.f32 %v3666_v21, %v3650_v45  ;;  %v3617_v45 = vld [vmem:[%s5817_s29 + $0x60] sm:$0xff] }
 0x19b   : > { %3713 = vrot.lane.b32.xlu0 %v5738_v0, %s4851_s14  ;;  %3565 = vst.msk [vmem:[#allocation2 + $0x78] sm:$0xff] %vm316_vm6, %v3549_v1  ;;  %v5748_v5 = vadd.f32 %v5714_v33, %v3577_v49  ;;  %v3575_v8 = vld [vmem:[#allocation2 + $0x48] sm:$0xff]  ;;  %v3572_v13 = vld [vmem:[#allocation2 + $0x30] sm:$0xff]  ;;  %v3658_v60 = vmul.f32 %v5828_v32, %v3638_v46  ;;  %v3636_v61 = vsub.f32 %v3614_v52, %v5823_v28  ;;  %v3673_v0 = vadd.f32 1.0, %v5752_v7  ;;  %v3620_v52 = vld [vmem:[%s5817_s29 + $0x78] sm:$0xff] }
 0x19c   : > { %3563 = vst.msk [vmem:[#allocation2 + $0x68] sm:$0xff] %vm316_vm6, %v3547_v4  ;;  %v5759_v10 = vadd.f32 %v5714_v33, %v3575_v8  ;;  %v5772_v16 = vadd.f32 %v5714_v33, %v3572_v13  ;;  %v3570_v18 = vld [vmem:[#allocation2 + $0x20] sm:$0xff]  ;;  %v3680_v63 = vmul.f32 %v3664_v51, %v3648_v19  ;;  %v3657_v1 = vmul.f32 %v5828_v32, %v3637_v47 }
 0x19d   : > { %v3573_v12 = vld [vmem:[#allocation2 + $0x38] sm:$0xff]  ;;  %v5782_v22 = vadd.f32 %v5714_v33, %v3570_v18  ;;  %v3674_v59 = vadd.f32 1.0, %v5748_v5  ;;  %v3635_v43 = vsub.f32 %v3613_v55, %v5823_v28  ;;  %v3656_v13 = vmul.f32 %v5828_v32, %v3636_v61  ;;  %v3619_v55 = vld [vmem:[%s5817_s29 + $0x70] sm:$0xff] }
 0x19e   : > { %3733 = vrot.lane.b32.xlu1 %v5748_v5, %s4851_s14  ;;  %v5769_v15 = vadd.f32 %v5714_v33, %v3573_v12  ;;  %v3571_v17 = vld [vmem:[#allocation2 + $0x28] sm:$0xff]  ;;  %v3611_v5 = vld [vmem:[%s5817_s29 + $0x30] sm:$0xff]  ;;  %v3672_v12 = vadd.f32 1.0, %v5759_v10  ;;  %v3689_v18 = vmul.f32 %v3673_v0, %v3657_v1  ;;  %v3640_v47 = vsub.f32 %v3618_v41, %v5823_v28 }
 0x19f   : > { %3731 = vrot.lane.b32.xlu0 %v5752_v7, %s4851_s14  ;;  %v5779_v20 = vadd.f32 %v5714_v33, %v3571_v17  ;;  %v3690_v9 = vmul.f32 %v3674_v59, %v3658_v60  ;;  %v3634_v7 = vsub.f32 %v3612_v2, %v5823_v28  ;;  %v3667_v19 = vadd.f32 1.0, %v5782_v22 }
 0x1a0   : > { %v3580_v25 = vld [vmem:[#allocation2 + $0x70] sm:$0xff]  ;;  %v3688_v31 = vmul.f32 %v3672_v12, %v3656_v13  ;;  %v3670_v34 = vadd.f32 1.0, %v5769_v15  ;;  %v3639_v51 = vsub.f32 %v3617_v45, %v5823_v28  ;;  %v3642_v60 = vsub.f32 %v3620_v52, %v5823_v28 }
 0x1a1   : > { %v3578_v14 = vld [vmem:[#allocation2 + $0x60] sm:$0xff]  ;;  %v5802_v27 = vadd.f32 %v5714_v33, %v3580_v25  ;;  %v3610_v25 = vld [vmem:[%s5817_s29 + $0x28] sm:$0xff]  ;;  %v3668_v46 = vadd.f32 1.0, %v5779_v20  ;;  %v3641_v0 = vsub.f32 %v3619_v55, %v5823_v28 }
 0x1a2   : > { %3729 = vrot.lane.b32.xlu1 %v5759_v10, %s4851_s14  ;;  %v5792_v24 = vadd.f32 %v5714_v33, %v3578_v14  ;;  %v3581_v6 = vld [vmem:[#allocation2 + $0x78] sm:$0xff]  ;;  %v3655_v14 = vmul.f32 %v5828_v32, %v3635_v43  ;;  %v3609_v10 = vld [vmem:[%s5817_s29 + $0x20] sm:$0xff] }
 0x1a3   : > { %3727 = vrot.lane.b32.xlu0 %v5762_v11, %s4851_s14  ;;  %v3579_v3 = vld [vmem:[#allocation2 + $0x68] sm:$0xff]  ;;  %v5799_v38 = vadd.f32 %v5714_v33, %v3581_v6  ;;  %v3633_v6 = vsub.f32 %v3611_v5, %v5823_v28 }
 0x1a4   : > { %v5789_v23 = vadd.f32 %v5714_v33, %v3579_v3  ;;  %v3627_v33 = vsub.f32 %v3605_v29, %v5823_v28  ;;  %v3671_v3 = vadd.f32 1.0, %v5762_v11  ;;  %v3632_v11 = vsub.f32 %v3610_v25, %v5823_v28 }
 0x1a5   : > { %v3653_v37 = vmul.f32 %v5828_v32, %v3633_v6 }
 0x1a6   : > { %3725 = vrot.lane.b32.xlu1 %v5769_v15, %s4851_s14  ;;  %v3647_v40 = vmul.f32 %v5828_v32, %v3627_v33  ;;  %v3654_v33 = vmul.f32 %v5828_v32, %v3634_v7  ;;  %v3687_v36 = vmul.f32 %v3671_v3, %v3655_v14  ;;  %v3652_v21 = vmul.f32 %v5828_v32, %v3632_v11 }
 0x1a7   : > { %3723 = vrot.lane.b32.xlu0 %v5772_v16, %s4851_s14  ;;  %v3676_v59 = vadd.f32 1.0, %v5789_v23 }
 0x1a8   : > { %v3679_v50 = vmul.f32 %v3663_v39, %v3647_v40  ;;  %v3669_v39 = vadd.f32 1.0, %v5772_v16  ;;  %v3631_v40 = vsub.f32 %v3609_v10, %v5823_v28  ;;  %v3677_v28 = vadd.f32 1.0, %v5802_v27 }
 0x1aa   : > { %3721 = vrot.lane.b32.xlu1 %v5779_v20, %s4851_s14  ;;  %v3684_v20 = vmul.f32 %v3668_v46, %v3652_v21 }
 0x1ab   : > { %3719 = vrot.lane.b32.xlu0 %v5782_v22, %s4851_s14 }
 0x1ae   : > { %3737 = vrot.lane.b32.xlu1 %v5789_v23, %s4851_s14 }
 0x1af   : > { %3735 = vrot.lane.b32.xlu0 %v5792_v24, %s4851_s14 }
 0x1b2   : > { %3741 = vrot.lane.b32.xlu1 %v5799_v38, %s4851_s14 }
 0x1b3   : > { %3739 = vrot.lane.b32.xlu0 %v5802_v27, %s4851_s14 }
 0x208   : > { %v3716_v48 = vpop.permute.xlu1 %3715 }
 0x209   : > { %v3761_v53 = vadd.f32 %v3716_v48, %v3681_v26  ;;  %v3712_v54 = vpop.permute.xlu0 %3711  ;;  %v3686_v26 = vmul.f32 %v3670_v34, %v3654_v33  ;;  %v3685_v48 = vmul.f32 %v3669_v39, %v3653_v37 }
 0x20a   : > { %v3759_v56 = vadd.f32 %v3712_v54, %v3679_v50  ;;  %v3651_v50 = vmul.f32 %v5828_v32, %v3631_v40 }
 0x20b   : > { %3778 = vst.msk [vmem:[%s5847_s9 + $0x10] sm:$0xff] %vm3775_vm7, %v3761_v53 }
 0x20c   : > { %3776 = vst.msk [vmem:[%s5847_s9] sm:$0xff] %vm3775_vm7, %v3759_v56  ;;  %v3718_v62 = vpop.permute.xlu1 %3717  ;;  %v3683_v61 = vmul.f32 %v3667_v19, %v3651_v50 }
 0x20d   : > { %v3762_v4 = vadd.f32 %v3718_v62, %v3682_v58  ;;  %v3714_v49 = vpop.permute.xlu0 %3713  ;;  %v3660_v58 = vmul.f32 %v5828_v32, %v3640_v47  ;;  %v3675_v62 = vadd.f32 1.0, %v5792_v24 }
 0x20e   : > { %v3760_v8 = vadd.f32 %v3714_v49, %v3680_v63  ;;  %v3659_v63 = vmul.f32 %v5828_v32, %v3639_v51  ;;  %v3662_v49 = vmul.f32 %v5828_v32, %v3642_v60 }
 0x20f   : > { %3779 = vst.msk [vmem:[%s5847_s9 + $0x18] sm:$0xff] %vm3775_vm7, %v3762_v4  ;;  %v3692_v23 = vmul.f32 %v3676_v59, %v3660_v58  ;;  %v3678_v4 = vadd.f32 1.0, %v5799_v38 }
 0x210   : > { %3777 = vst.msk [vmem:[%s5847_s9 + $0x8] sm:$0xff] %vm3775_vm7, %v3760_v8  ;;  %v3734_v17 = vpop.permute.xlu1 %3733  ;;  %v3691_v5 = vmul.f32 %v3675_v62, %v3659_v63  ;;  %v3661_v8 = vmul.f32 %v5828_v32, %v3641_v0 }
 0x211   : > { %v3770_v57 = vadd.f32 %v3734_v17, %v3690_v9  ;;  %v3732_v29 = vpop.permute.xlu0 %3731  ;;  %v3694_v7 = vmul.f32 %v3678_v4, %v3662_v49 }
 0x212   : > { %v3769_v30 = vadd.f32 %v3732_v29, %v3689_v18  ;;  %v3693_v17 = vmul.f32 %v3677_v28, %v3661_v8 }
 0x213   : > { %3787 = vst.msk [vmem:[%s5847_s9 + $0x58] sm:$0xff] %vm3775_vm7, %v3770_v57 }
 0x214   : > { %3786 = vst.msk [vmem:[%s5847_s9 + $0x50] sm:$0xff] %vm3775_vm7, %v3769_v30  ;;  %v3730_v35 = vpop.permute.xlu1 %3729 }
 0x215   : > { %v3768_v42 = vadd.f32 %v3730_v35, %v3688_v31  ;;  %v3728_v44 = vpop.permute.xlu0 %3727 }
 0x216   : > { %v3767_v15 = vadd.f32 %v3728_v44, %v3687_v36 }
 0x217   : > { %3785 = vst.msk [vmem:[%s5847_s9 + $0x48] sm:$0xff] %vm3775_vm7, %v3768_v42 }
 0x218   : > { %3784 = vst.msk [vmem:[%s5847_s9 + $0x40] sm:$0xff] %vm3775_vm7, %v3767_v15  ;;  %v3726_v16 = vpop.permute.xlu1 %3725 }
 0x219   : > { %v3766_v53 = vadd.f32 %v3726_v16, %v3686_v26  ;;  %v3724_v54 = vpop.permute.xlu0 %3723 }
 0x21a   : > { %v3765_v56 = vadd.f32 %v3724_v54, %v3685_v48 }
 0x21b   : > { %3783 = vst.msk [vmem:[%s5847_s9 + $0x38] sm:$0xff] %vm3775_vm7, %v3766_v53 }
 0x21c   : > { %3782 = vst.msk [vmem:[%s5847_s9 + $0x30] sm:$0xff] %vm3775_vm7, %v3765_v56  ;;  %v3722_v22 = vpop.permute.xlu1 %3721 }
 0x21d   : > { %v3764_v1 = vadd.f32 %v3722_v22, %v3684_v20  ;;  %v3720_v43 = vpop.permute.xlu0 %3719 }
 0x21e   : > { %v3763_v2 = vadd.f32 %v3720_v43, %v3683_v61 }
 0x21f   : > { %3781 = vst.msk [vmem:[%s5847_s9 + $0x28] sm:$0xff] %vm3775_vm7, %v3764_v1 }
 0x220   : > { %3780 = vst.msk [vmem:[%s5847_s9 + $0x20] sm:$0xff] %vm3775_vm7, %v3763_v2  ;;  %v3738_v24 = vpop.permute.xlu1 %3737 }
 0x221   : > { %v3772_v9 = vadd.f32 %v3738_v24, %v3692_v23  ;;  %v3736_v12 = vpop.permute.xlu0 %3735 }
 0x222   : > { %v3771_v13 = vadd.f32 %v3736_v12, %v3691_v5 }
 0x223   : > { %3789 = vst.msk [vmem:[%s5847_s9 + $0x68] sm:$0xff] %vm3775_vm7, %v3772_v9 }
 0x224   : > { %3788 = vst.msk [vmem:[%s5847_s9 + $0x60] sm:$0xff] %vm3775_vm7, %v3771_v13  ;;  %v3742_v38 = vpop.permute.xlu1 %3741 }
 0x225   : > { %v3774_v18 = vadd.f32 %v3742_v38, %v3694_v7  ;;  %v3740_v3 = vpop.permute.xlu0 %3739 }
 0x226   : > { %v3773_v14 = vadd.f32 %v3740_v3, %v3693_v17 }
 0x227   : > { %3791 = vst.msk [vmem:[%s5847_s9 + $0x78] sm:$0xff] %vm3775_vm7, %v3774_v18 }
 0x228   : > { %3790 = vst.msk [vmem:[%s5847_s9 + $0x70] sm:$0xff] %vm3775_vm7, %v3773_v14 }
 0x229 PF: > { %s15_s22 = sadd.s32 1, %s4848_s22   ;;  %s5952_s18 = smov %s4840_s20 }
 0x22a   : > { %p12_p8 = scmp.ge.s32.totalorder %s15_s22, 6   ;;  %s5953_s19 = smov %s4844_s21 }
 0x22b   : > { %s5954_s20 = smov %s5957_s23  ;;  %s5955_s21 = smov %s5961_s24 }
 0x22c   :  { %14 = sbr.rel (!%p12_p8) target bundleno = 3 (0x3), region = 78 }

</bundles_post_ra>
